<compile_context>
chip_gen: v5e
topology: v5e:2x2
jax: 0.10.0
libtpu: 0.0.40
codegen_flags: <defaults>
</compile_context>

<pallas_src>
import functools

import jax
import jax.numpy as jnp
from jax.experimental import pallas as pl
from jax.experimental.pallas import tpu as pltpu


# ------------------------------ Pallas kernel -------------------------------

def _bottleneck_kernel(x_ref, w1_ref, w2_ref, w3_ref,
                       s1_ref, b1_ref, s2_ref, b2_ref, s3_ref, b3_ref,
                       o_ref, t1_ref, *, h, w, cin, planes, cout, rt, unroll):
    """Fused Bottleneck for one NHWC image (stride=1, identity residual).

    x_ref:  (h, w, cin)            bf16  input image (batch dim squeezed)
    w1_ref: (cin, planes)          bf16  1x1 conv1 weight
    w2_ref: (3, 3*planes, planes)  bf16  3x3 conv2 weight, kw folded into K
    w3_ref: (planes, cout)         bf16  1x1 conv3 weight
    s*/b*:  (1, C)                 f32   folded inference-BatchNorm scale / bias
    o_ref:  (h, w, cout)           bf16  output image
    t1_ref: (h+2, w+2, planes)     f32   conv1 output, halo-padded along H and W
    """
    num_rt = h // rt

    # Hoisted parameter reads: the row loop below may be unrolled, and
    # re-reading these per iteration re-emits the loads/broadcasts every time.
    w1 = w1_ref[...]
    w2 = w2_ref[...]
    w3 = w3_ref[...]
    s1 = s1_ref[...]
    b1 = b1_ref[...]
    s2 = s2_ref[...]
    b2 = b2_ref[...]
    s3 = s3_ref[...]
    b3 = b3_ref[...]

    # Zero the halo ring (rows 0 / h+1, cols 0 / w+1) once per image.  Done
    # unconditionally so it stays correct when the batch grid axis is sharded
    # across TensorCores (each core has its own scratch).
    zrow = jnp.zeros((1, w + 2, planes), t1_ref.dtype)
    zcol = jnp.zeros((h + 2, 1, planes), t1_ref.dtype)
    t1_ref[pl.ds(0, 1), :, :] = zrow
    t1_ref[pl.ds(h + 1, 1), :, :] = zrow
    t1_ref[:, pl.ds(0, 1), :] = zcol
    t1_ref[:, pl.ds(w + 1, 1), :] = zcol

    # ---- stage 1 (1x1 conv + BN1 + ReLU) for one row tile -> scratch --------
    def conv1_tile(r):
        r0 = r * rt
        xr = x_ref[pl.ds(r0, rt), :, :].reshape(rt * w, cin)      # bf16
        t = jnp.dot(xr, w1, preferred_element_type=jnp.float32)
        t = jnp.maximum(t * s1 + b1, 0.0)
        t1_ref[pl.ds(r0 + 1, rt), pl.ds(1, w), :] = (
            t.reshape(rt, w, planes).astype(t1_ref.dtype))

    # ---- stages 2 + 3 (3x3 conv, 1x1 conv, residual, ReLU) for one tile -----
    def conv23_tile(r):
        r0 = r * rt
        acc = jnp.zeros((rt * w, planes), jnp.float32)
        for kh in range(3):            # 3 MXU taps, each with K = 3*planes
            taps = [t1_ref[pl.ds(r0 + kh, rt), pl.ds(kw, w), :]
                    for kw in range(3)]                 # overlapping W windows
            im = jnp.concatenate(taps, axis=-1).reshape(rt * w, 3 * planes)
            acc = acc + jnp.dot(im.astype(jnp.bfloat16), w2[kh],
                                preferred_element_type=jnp.float32)
        t2 = jnp.maximum(acc * s2 + b2, 0.0)                     # BN2 + ReLU

        y = jnp.dot(t2.astype(jnp.bfloat16), w3,                 # 1x1 conv3
                    preferred_element_type=jnp.float32)
        res = x_ref[pl.ds(r0, rt), :, :].reshape(rt * w, cout).astype(jnp.float32)
        y = jnp.maximum(y * s3 + b3 + res, 0.0)                  # BN3 + add + ReLU
        o_ref[pl.ds(r0, rt), :, :] = y.reshape(rt, w, cout).astype(o_ref.dtype)

    # Software pipeline: conv1 of tile r+1 is issued just ahead of conv2/conv3
    # of tile r (which needs its first row as the bottom halo).
    conv1_tile(0)

    def body(r, carry):
        @pl.when(r + 1 < num_rt)
        def _():
            conv1_tile(r + 1)
        conv23_tile(r)
        return carry

    jax.lax.fori_loop(0, num_rt, body, 0, unroll=unroll)


# ------------------------------ host wrappers --------------------------------

def _fold_bn(bn_params, eps=1e-5):
    gamma, beta, mean, var = bn_params
    scale = gamma / jnp.sqrt(var + eps)
    bias = beta - mean * scale
    return scale.astype(jnp.float32), bias.astype(jnp.float32)


def _pick_row_tile(h, preferred):
    # Largest divisor of h that is <= preferred (avoids the rt = h spill cliff).
    # TODO(synk): mask a tail tile with pl.when instead for awkward h.
    preferred = max(1, min(preferred, h))
    for rt in range(preferred, 0, -1):
        if h % rt == 0:
            return rt
    return 1


def bottleneck_forward_nhwc(x, params, *, row_tile=8):
    """Bottleneck forward, NHWC in / NHWC out (stride=1, downsample=None)."""
    n, h, w, cin = x.shape
    planes = params["w1"].shape[1]
    cout = params["w3"].shape[1]
    assert cin == cout, "identity residual requires inplanes == planes*expansion"

    rt = _pick_row_tile(h, row_tile)
    num_rt = h // rt
    if num_rt <= 4:
        unroll = num_rt                      # short trip count: full unroll
    else:
        unroll = next((d for d in (4, 3, 2) if num_rt % d == 0), 1)

    s1, b1 = _fold_bn(params["bn1"])
    s2, b2 = _fold_bn(params["bn2"])
    s3, b3 = _fold_bn(params["bn3"])

    # Weights in bf16 for the MXU; 3x3 pre-reshaped so kw folds into K.
    w1 = params["w1"].astype(jnp.bfloat16)                               # (cin, planes)
    w2 = params["w2"].reshape(3, 3 * planes, planes).astype(jnp.bfloat16)
    w3 = params["w3"].astype(jnp.bfloat16)                               # (planes, cout)

    x_bf16 = x.astype(jnp.bfloat16)          # bf16 through HBM/VMEM

    kernel = functools.partial(_bottleneck_kernel, h=h, w=w, cin=cin,
                               planes=planes, cout=cout, rt=rt, unroll=unroll)

    # Rough VMEM budget: double-buffered x/out blocks + weights + scratch,
    # with headroom, clamped to stay below any generation's physical VMEM.
    vmem_bytes = (2 * h * w * cin * 2 + 2 * h * w * cout * 2
                  + (h + 2) * (w + 2) * planes * 4
                  + 2 * 2 * (cin * planes + 9 * planes * planes + planes * cout)
                  + 2 * 4 * 4 * (planes + cout))
    vmem_limit = int(min(100 * 2**20, max(32 * 2**20, 2 * vmem_bytes)))

    grid_spec = pltpu.PrefetchScalarGridSpec(
        num_scalar_prefetch=0,
        grid=(n,),
        in_specs=[
            pl.BlockSpec((None, h, w, cin), lambda i: (i, 0, 0, 0)),      # x
            pl.BlockSpec((cin, planes), lambda i: (0, 0)),                # w1
            pl.BlockSpec((3, 3 * planes, planes), lambda i: (0, 0, 0)),   # w2
            pl.BlockSpec((planes, cout), lambda i: (0, 0)),               # w3
            pl.BlockSpec((1, planes), lambda i: (0, 0)),                  # s1
            pl.BlockSpec((1, planes), lambda i: (0, 0)),                  # b1
            pl.BlockSpec((1, planes), lambda i: (0, 0)),                  # s2
            pl.BlockSpec((1, planes), lambda i: (0, 0)),                  # b2
            pl.BlockSpec((1, cout), lambda i: (0, 0)),                    # s3
            pl.BlockSpec((1, cout), lambda i: (0, 0)),                    # b3
        ],
        out_specs=pl.BlockSpec((None, h, w, cout), lambda i: (i, 0, 0, 0)),
        scratch_shapes=[pltpu.VMEM((h + 2, w + 2, planes), jnp.float32)],
    )

    return pl.pallas_call(
        kernel,
        out_shape=jax.ShapeDtypeStruct((n, h, w, cout), jnp.bfloat16),
        grid_spec=grid_spec,
        compiler_params=pltpu.CompilerParams(
            dimension_semantics=("parallel",),
            vmem_limit_bytes=vmem_limit),
    )(x_bf16, w1, w2, w3,
      s1.reshape(1, planes), b1.reshape(1, planes),
      s2.reshape(1, planes), b2.reshape(1, planes),
      s3.reshape(1, cout), b3.reshape(1, cout))


def bottleneck_forward_nchw(x_nchw, params, *, row_tile=8):
    """Drop-in NCHW adapter (PyTorch layout).  Prefer the NHWC entry point:
    these transposes re-read/write the largest tensors in HBM and roughly
    halve the throughput of this memory-bound op."""
    x = jnp.transpose(x_nchw, (0, 2, 3, 1))
    out = bottleneck_forward_nhwc(x, params, row_tile=row_tile)
    return jnp.transpose(out, (0, 3, 1, 2))


# --------------------------- pure-JAX reference -----------------------------

def _ref_forward_nhwc(x, params, eps=1e-5):
    def conv(y, wgt, pad):
        return jax.lax.conv_general_dilated(
            y, wgt, (1, 1), pad, dimension_numbers=("NHWC", "HWIO", "NHWC"))

    def bn(y, p):
        g, b, m, v = p
        return (y - m) * (g / jnp.sqrt(v + eps)) + b

    cin = params["w1"].shape[0]
    planes = params["w1"].shape[1]
    cout = params["w3"].shape[1]
    out = jax.nn.relu(bn(conv(x, params["w1"].reshape(1, 1, cin, planes), "VALID"),
                         params["bn1"]))
    out = jax.nn.relu(bn(conv(out, params["w2"], ((1, 1), (1, 1))), params["bn2"]))
    out = bn(conv(out, params["w3"].reshape(1, 1, planes, cout), "VALID"),
             params["bn3"]) + x
    return jax.nn.relu(out)


# ---------------------------------- main ------------------------------------

if __name__ == "__main__":
    key = jax.random.PRNGKey(0)
    ks = jax.random.split(key, 16)

    # Shapes consistent with the module: inplanes = planes * expansion so the
    # identity residual (downsample=None) type-checks.
    batch, planes, expansion = 2, 4, 4
    inplanes = planes * expansion          # 16
    h = w = 16

    def bn_init(k, c):
        k1, k2, k3, k4 = jax.random.split(k, 4)
        gamma = 1.0 + 0.1 * jax.random.normal(k1, (c,), jnp.float32)
        beta = 0.1 * jax.random.normal(k2, (c,), jnp.float32)
        mean = 0.1 * jax.random.normal(k3, (c,), jnp.float32)
        var = 0.5 + 0.1 * jnp.abs(jax.random.normal(k4, (c,), jnp.float32))
        return (gamma, beta, mean, var)

    params = {
        # 1x1 conv weights stored as (Cin, Cout); 3x3 as HWIO (3,3,Cin,Cout).
        "w1": 0.1 * jax.random.normal(ks[0], (inplanes, planes), jnp.float32),
        "w2": 0.1 * jax.random.normal(ks[1], (3, 3, planes, planes), jnp.float32),
        "w3": 0.1 * jax.random.normal(ks[2], (planes, planes * expansion), jnp.float32),
        "bn1": bn_init(ks[3], planes),
        "bn2": bn_init(ks[4], planes),
        "bn3": bn_init(ks[5], planes * expansion),
    }

    # NHWC activations end-to-end (the NCHW adapter exists only for layout
    # compatibility with the original PyTorch module).
    x = jax.random.normal(ks[6], (batch, h, w, inplanes), jnp.float32)

    out = jax.block_until_ready(jax.jit(bottleneck_forward_nhwc)(x, params))
    ref = _ref_forward_nhwc(x, params)

    assert out.shape == (batch, h, w, inplanes) and out.dtype == jnp.bfloat16
    err = float(jnp.max(jnp.abs(out.astype(jnp.float32) - ref)))
    # bf16 activations + bf16 MXU operands vs f32 reference -> loosened tol.
    assert jnp.allclose(out.astype(jnp.float32), ref, atol=5e-2, rtol=5e-2), err
    print("KERNEL_OK")
</pallas_src>

<mosaic_0001>
module attributes {stable_mosaic.version = 11 : i64} {
  func.func @_bottleneck_kernel(%arg0: i32, %arg1: memref<1x16x16x16xbf16, #tpu.memory_space<vmem>>, %arg2: memref<16x4xbf16, #tpu.memory_space<vmem>>, %arg3: memref<3x12x4xbf16, #tpu.memory_space<vmem>>, %arg4: memref<4x16xbf16, #tpu.memory_space<vmem>>, %arg5: memref<1x4xf32, #tpu.memory_space<vmem>>, %arg6: memref<1x4xf32, #tpu.memory_space<vmem>>, %arg7: memref<1x4xf32, #tpu.memory_space<vmem>>, %arg8: memref<1x4xf32, #tpu.memory_space<vmem>>, %arg9: memref<1x16xf32, #tpu.memory_space<vmem>>, %arg10: memref<1x16xf32, #tpu.memory_space<vmem>>, %arg11: memref<1x16x16x16xbf16, #tpu.memory_space<vmem>>, %arg12: memref<18x18x4xf32, #tpu.memory_space<vmem>>) attributes {dimension_semantics = [#tpu.dimension_semantics<parallel>], iteration_bounds = array<i64: 2>, scalar_prefetch = 0 : i64, scratch_operands = 1 : i64, tpu.core_type = #tpu.core_type<tc>, window_params = [{transform_indices = @transform_0, window_bounds = array<i64: 1, 16, 16, 16>}, {pipeline_mode = #tpu.pipeline_mode<synchronous>, transform_indices = @transform_1, window_bounds = array<i64: 16, 4>}, {pipeline_mode = #tpu.pipeline_mode<synchronous>, transform_indices = @transform_2, window_bounds = array<i64: 3, 12, 4>}, {pipeline_mode = #tpu.pipeline_mode<synchronous>, transform_indices = @transform_3, window_bounds = array<i64: 4, 16>}, {pipeline_mode = #tpu.pipeline_mode<synchronous>, transform_indices = @transform_4, window_bounds = array<i64: 1, 4>}, {pipeline_mode = #tpu.pipeline_mode<synchronous>, transform_indices = @transform_5, window_bounds = array<i64: 1, 4>}, {pipeline_mode = #tpu.pipeline_mode<synchronous>, transform_indices = @transform_6, window_bounds = array<i64: 1, 4>}, {pipeline_mode = #tpu.pipeline_mode<synchronous>, transform_indices = @transform_7, window_bounds = array<i64: 1, 4>}, {pipeline_mode = #tpu.pipeline_mode<synchronous>, transform_indices = @transform_8, window_bounds = array<i64: 1, 16>}, {pipeline_mode = #tpu.pipeline_mode<synchronous>, transform_indices = @transform_9, window_bounds = array<i64: 1, 16>}, {transform_indices = @transform_10, window_bounds = array<i64: 1, 16, 16, 16>}]} {
    %c0 = arith.constant 0 : index
    %c0_0 = arith.constant 0 : index
    %0 = vector.load %arg2[%c0, %c0_0] : memref<16x4xbf16, #tpu.memory_space<vmem>>, vector<16x4xbf16>
    %c0_1 = arith.constant 0 : index
    %c0_2 = arith.constant 0 : index
    %c0_3 = arith.constant 0 : index
    %1 = vector.load %arg3[%c0_1, %c0_2, %c0_3] : memref<3x12x4xbf16, #tpu.memory_space<vmem>>, vector<3x12x4xbf16>
    %c0_4 = arith.constant 0 : index
    %c0_5 = arith.constant 0 : index
    %2 = vector.load %arg4[%c0_4, %c0_5] : memref<4x16xbf16, #tpu.memory_space<vmem>>, vector<4x16xbf16>
    %c0_6 = arith.constant 0 : index
    %c0_7 = arith.constant 0 : index
    %3 = vector.load %arg5[%c0_6, %c0_7] : memref<1x4xf32, #tpu.memory_space<vmem>>, vector<1x4xf32>
    %c0_8 = arith.constant 0 : index
    %c0_9 = arith.constant 0 : index
    %4 = vector.load %arg6[%c0_8, %c0_9] : memref<1x4xf32, #tpu.memory_space<vmem>>, vector<1x4xf32>
    %c0_10 = arith.constant 0 : index
    %c0_11 = arith.constant 0 : index
    %5 = vector.load %arg7[%c0_10, %c0_11] : memref<1x4xf32, #tpu.memory_space<vmem>>, vector<1x4xf32>
    %c0_12 = arith.constant 0 : index
    %c0_13 = arith.constant 0 : index
    %6 = vector.load %arg8[%c0_12, %c0_13] : memref<1x4xf32, #tpu.memory_space<vmem>>, vector<1x4xf32>
    %c0_14 = arith.constant 0 : index
    %c0_15 = arith.constant 0 : index
    %7 = vector.load %arg9[%c0_14, %c0_15] : memref<1x16xf32, #tpu.memory_space<vmem>>, vector<1x16xf32>
    %c0_16 = arith.constant 0 : index
    %c0_17 = arith.constant 0 : index
    %8 = vector.load %arg10[%c0_16, %c0_17] : memref<1x16xf32, #tpu.memory_space<vmem>>, vector<1x16xf32>
    %cst = arith.constant 0.000000e+00 : f32
    %9 = vector.broadcast %cst : f32 to vector<1x18x4xf32>
    %cst_18 = arith.constant 0.000000e+00 : f32
    %10 = vector.broadcast %cst_18 : f32 to vector<18x1x4xf32>
    %c0_19 = arith.constant 0 : index
    %c0_20 = arith.constant 0 : index
    %c0_21 = arith.constant 0 : index
    %11 = vector.load %arg12[%c0_19, %c0_20, %c0_21] : memref<18x18x4xf32, #tpu.memory_space<vmem>>, vector<1x18x4xf32>
    tpu.vector_store %arg12[%c0_19, %c0_20, %c0_21], %9 {strides = array<i32>} : memref<18x18x4xf32, #tpu.memory_space<vmem>>, vector<1x18x4xf32>,
    %c17 = arith.constant 17 : index
    %c0_22 = arith.constant 0 : index
    %c0_23 = arith.constant 0 : index
    %12 = vector.load %arg12[%c17, %c0_22, %c0_23] : memref<18x18x4xf32, #tpu.memory_space<vmem>>, vector<1x18x4xf32>
    tpu.vector_store %arg12[%c17, %c0_22, %c0_23], %9 {strides = array<i32>} : memref<18x18x4xf32, #tpu.memory_space<vmem>>, vector<1x18x4xf32>,
    %c0_24 = arith.constant 0 : index
    %c0_25 = arith.constant 0 : index
    %c0_26 = arith.constant 0 : index
    %13 = vector.load %arg12[%c0_24, %c0_25, %c0_26] : memref<18x18x4xf32, #tpu.memory_space<vmem>>, vector<18x1x4xf32>
    tpu.vector_store %arg12[%c0_24, %c0_25, %c0_26], %10 {strides = array<i32>} : memref<18x18x4xf32, #tpu.memory_space<vmem>>, vector<18x1x4xf32>,
    %c0_27 = arith.constant 0 : index
    %c17_28 = arith.constant 17 : index
    %c0_29 = arith.constant 0 : index
    %14 = vector.load %arg12[%c0_27, %c17_28, %c0_29] : memref<18x18x4xf32, #tpu.memory_space<vmem>>, vector<18x1x4xf32>
    tpu.vector_store %arg12[%c0_27, %c17_28, %c0_29], %10 {strides = array<i32>} : memref<18x18x4xf32, #tpu.memory_space<vmem>>, vector<18x1x4xf32>,
    %c0_30 = arith.constant 0 : index
    %c0_31 = arith.constant 0 : index
    %c0_32 = arith.constant 0 : index
    %c0_33 = arith.constant 0 : index
    %15 = vector.load %arg1[%c0_30, %c0_31, %c0_32, %c0_33] : memref<1x16x16x16xbf16, #tpu.memory_space<vmem>>, vector<1x8x16x16xbf16>
    %16 = vector.shape_cast %15 : vector<1x8x16x16xbf16> to vector<8x16x16xbf16>
    %17 = vector.shape_cast %16 : vector<8x16x16xbf16> to vector<128x16xbf16>
    %cst_34 = arith.constant dense<0.000000e+00> : vector<128x4xf32>
    %18 = tpu.matmul %17, %0, %cst_34 {dimension_numbers = #tpu.dot_dimension_numbers<[1], [0], [0], [1], [0, 0, 1, 1], [], []>} : vector<128x16xbf16>, vector<16x4xbf16>, vector<128x4xf32> -> vector<128x4xf32>
    %19 = vector.broadcast %3 : vector<1x4xf32> to vector<128x4xf32>
    %20 = arith.mulf %18, %19 : vector<128x4xf32>
    %21 = vector.broadcast %4 : vector<1x4xf32> to vector<128x4xf32>
    %22 = arith.addf %20, %21 : vector<128x4xf32>
    %cst_35 = arith.constant 0.000000e+00 : f32
    %23 = vector.broadcast %cst_35 : f32 to vector<128x4xf32>
    %24 = arith.maximumf %22, %23 : vector<128x4xf32>
    %25 = vector.shape_cast %24 : vector<128x4xf32> to vector<8x16x4xf32>
    %c1 = arith.constant 1 : index
    %c1_36 = arith.constant 1 : index
    %c0_37 = arith.constant 0 : index
    %26 = vector.load %arg12[%c1, %c1_36, %c0_37] : memref<18x18x4xf32, #tpu.memory_space<vmem>>, vector<8x16x4xf32>
    tpu.vector_store %arg12[%c1, %c1_36, %c0_37], %25 {strides = array<i32>} : memref<18x18x4xf32, #tpu.memory_space<vmem>>, vector<8x16x4xf32>,
    %c0_i32 = arith.constant 0 : i32
    %c1_i32 = arith.constant 1 : i32
    %27 = arith.addi %c0_i32, %c1_i32 : i32
    %c2_i32 = arith.constant 2 : i32
    %28 = arith.cmpi slt, %27, %c2_i32 : i32
    %29 = arith.extui %28 : i1 to i32
    %c0_i32_38 = arith.constant 0 : i32
    %30 = arith.cmpi ne, %29, %c0_i32_38 : i32
    scf.if %30 {
      %c1_i32_124 = arith.constant 1 : i32
      %187 = arith.addi %c0_i32, %c1_i32_124 : i32
      %c8_i32_125 = arith.constant 8 : i32
      %188 = arith.muli %187, %c8_i32_125 : i32
      %c0_126 = arith.constant 0 : index
      %189 = arith.index_cast %188 : i32 to index
      %c0_127 = arith.constant 0 : index
      %c0_128 = arith.constant 0 : index
      %190 = vector.load %arg1[%c0_126, %189, %c0_127, %c0_128] : memref<1x16x16x16xbf16, #tpu.memory_space<vmem>>, vector<1x8x16x16xbf16>
      %191 = vector.shape_cast %190 : vector<1x8x16x16xbf16> to vector<8x16x16xbf16>
      %192 = vector.shape_cast %191 : vector<8x16x16xbf16> to vector<128x16xbf16>
      %cst_129 = arith.constant dense<0.000000e+00> : vector<128x4xf32>
      %193 = tpu.matmul %192, %0, %cst_129 {dimension_numbers = #tpu.dot_dimension_numbers<[1], [0], [0], [1], [0, 0, 1, 1], [], []>} : vector<128x16xbf16>, vector<16x4xbf16>, vector<128x4xf32> -> vector<128x4xf32>
      %194 = vector.broadcast %3 : vector<1x4xf32> to vector<128x4xf32>
      %195 = arith.mulf %193, %194 : vector<128x4xf32>
      %196 = vector.broadcast %4 : vector<1x4xf32> to vector<128x4xf32>
      %197 = arith.addf %195, %196 : vector<128x4xf32>
      %cst_130 = arith.constant 0.000000e+00 : f32
      %198 = vector.broadcast %cst_130 : f32 to vector<128x4xf32>
      %199 = arith.maximumf %197, %198 : vector<128x4xf32>
      %200 = vector.shape_cast %199 : vector<128x4xf32> to vector<8x16x4xf32>
      %c1_i32_131 = arith.constant 1 : i32
      %201 = arith.addi %188, %c1_i32_131 : i32
      %202 = arith.index_cast %201 : i32 to index
      %c1_132 = arith.constant 1 : index
      %c0_133 = arith.constant 0 : index
      %203 = vector.load %arg12[%202, %c1_132, %c0_133] : memref<18x18x4xf32, #tpu.memory_space<vmem>>, vector<8x16x4xf32>
      tpu.vector_store %arg12[%202, %c1_132, %c0_133], %200 {strides = array<i32>} : memref<18x18x4xf32, #tpu.memory_space<vmem>>, vector<8x16x4xf32>,
    } else {
    }
    %c8_i32 = arith.constant 8 : i32
    %31 = arith.muli %c0_i32, %c8_i32 : i32
    %cst_39 = arith.constant 0.000000e+00 : f32
    %32 = vector.broadcast %cst_39 : f32 to vector<128x4xf32>
    %c0_i32_40 = arith.constant 0 : i32
    %33 = arith.addi %31, %c0_i32_40 : i32
    %34 = arith.index_cast %33 : i32 to index
    %c0_41 = arith.constant 0 : index
    %c0_42 = arith.constant 0 : index
    %35 = vector.load %arg12[%34, %c0_41, %c0_42] : memref<18x18x4xf32, #tpu.memory_space<vmem>>, vector<8x16x4xf32>
    %c0_i32_43 = arith.constant 0 : i32
    %36 = arith.addi %31, %c0_i32_43 : i32
    %37 = arith.index_cast %36 : i32 to index
    %c1_44 = arith.constant 1 : index
    %c0_45 = arith.constant 0 : index
    %38 = vector.load %arg12[%37, %c1_44, %c0_45] : memref<18x18x4xf32, #tpu.memory_space<vmem>>, vector<8x16x4xf32>
    %c0_i32_46 = arith.constant 0 : i32
    %39 = arith.addi %31, %c0_i32_46 : i32
    %40 = arith.index_cast %39 : i32 to index
    %c2 = arith.constant 2 : index
    %c0_47 = arith.constant 0 : index
    %41 = vector.load %arg12[%40, %c2, %c0_47] : memref<18x18x4xf32, #tpu.memory_space<vmem>>, vector<8x16x4xf32>
    %42 = tpu.concatenate %35, %38, %41 in 2 : vector<8x16x4xf32>, vector<8x16x4xf32>, vector<8x16x4xf32> -> vector<8x16x12xf32>
    %43 = vector.shape_cast %42 : vector<8x16x12xf32> to vector<128x12xf32>
    %44 = arith.truncf %43 : vector<128x12xf32> to vector<128x12xbf16>
    %45 = vector.extract_strided_slice %1 {offsets = [0, 0, 0], sizes = [1, 12, 4], strides = [1, 1, 1]} : vector<3x12x4xbf16> to vector<1x12x4xbf16>
    %46 = vector.shape_cast %45 : vector<1x12x4xbf16> to vector<12x4xbf16>
    %cst_48 = arith.constant dense<0.000000e+00> : vector<128x4xf32>
    %47 = tpu.matmul %44, %46, %cst_48 {dimension_numbers = #tpu.dot_dimension_numbers<[1], [0], [0], [1], [0, 0, 1, 1], [], []>} : vector<128x12xbf16>, vector<12x4xbf16>, vector<128x4xf32> -> vector<128x4xf32>
    %48 = arith.addf %32, %47 : vector<128x4xf32>
    %c1_i32_49 = arith.constant 1 : i32
    %49 = arith.addi %31, %c1_i32_49 : i32
    %50 = arith.index_cast %49 : i32 to index
    %c0_50 = arith.constant 0 : index
    %c0_51 = arith.constant 0 : index
    %51 = vector.load %arg12[%50, %c0_50, %c0_51] : memref<18x18x4xf32, #tpu.memory_space<vmem>>, vector<8x16x4xf32>
    %c1_i32_52 = arith.constant 1 : i32
    %52 = arith.addi %31, %c1_i32_52 : i32
    %53 = arith.index_cast %52 : i32 to index
    %c1_53 = arith.constant 1 : index
    %c0_54 = arith.constant 0 : index
    %54 = vector.load %arg12[%53, %c1_53, %c0_54] : memref<18x18x4xf32, #tpu.memory_space<vmem>>, vector<8x16x4xf32>
    %c1_i32_55 = arith.constant 1 : i32
    %55 = arith.addi %31, %c1_i32_55 : i32
    %56 = arith.index_cast %55 : i32 to index
    %c2_56 = arith.constant 2 : index
    %c0_57 = arith.constant 0 : index
    %57 = vector.load %arg12[%56, %c2_56, %c0_57] : memref<18x18x4xf32, #tpu.memory_space<vmem>>, vector<8x16x4xf32>
    %58 = tpu.concatenate %51, %54, %57 in 2 : vector<8x16x4xf32>, vector<8x16x4xf32>, vector<8x16x4xf32> -> vector<8x16x12xf32>
    %59 = vector.shape_cast %58 : vector<8x16x12xf32> to vector<128x12xf32>
    %60 = arith.truncf %59 : vector<128x12xf32> to vector<128x12xbf16>
    %61 = vector.extract_strided_slice %1 {offsets = [1, 0, 0], sizes = [1, 12, 4], strides = [1, 1, 1]} : vector<3x12x4xbf16> to vector<1x12x4xbf16>
    %62 = vector.shape_cast %61 : vector<1x12x4xbf16> to vector<12x4xbf16>
    %cst_58 = arith.constant dense<0.000000e+00> : vector<128x4xf32>
    %63 = tpu.matmul %60, %62, %cst_58 {dimension_numbers = #tpu.dot_dimension_numbers<[1], [0], [0], [1], [0, 0, 1, 1], [], []>} : vector<128x12xbf16>, vector<12x4xbf16>, vector<128x4xf32> -> vector<128x4xf32>
    %64 = arith.addf %48, %63 : vector<128x4xf32>
    %c2_i32_59 = arith.constant 2 : i32
    %65 = arith.addi %31, %c2_i32_59 : i32
    %66 = arith.index_cast %65 : i32 to index
    %c0_60 = arith.constant 0 : index
    %c0_61 = arith.constant 0 : index
    %67 = vector.load %arg12[%66, %c0_60, %c0_61] : memref<18x18x4xf32, #tpu.memory_space<vmem>>, vector<8x16x4xf32>
    %c2_i32_62 = arith.constant 2 : i32
    %68 = arith.addi %31, %c2_i32_62 : i32
    %69 = arith.index_cast %68 : i32 to index
    %c1_63 = arith.constant 1 : index
    %c0_64 = arith.constant 0 : index
    %70 = vector.load %arg12[%69, %c1_63, %c0_64] : memref<18x18x4xf32, #tpu.memory_space<vmem>>, vector<8x16x4xf32>
    %c2_i32_65 = arith.constant 2 : i32
    %71 = arith.addi %31, %c2_i32_65 : i32
    %72 = arith.index_cast %71 : i32 to index
    %c2_66 = arith.constant 2 : index
    %c0_67 = arith.constant 0 : index
    %73 = vector.load %arg12[%72, %c2_66, %c0_67] : memref<18x18x4xf32, #tpu.memory_space<vmem>>, vector<8x16x4xf32>
    %74 = tpu.concatenate %67, %70, %73 in 2 : vector<8x16x4xf32>, vector<8x16x4xf32>, vector<8x16x4xf32> -> vector<8x16x12xf32>
    %75 = vector.shape_cast %74 : vector<8x16x12xf32> to vector<128x12xf32>
    %76 = arith.truncf %75 : vector<128x12xf32> to vector<128x12xbf16>
    %77 = vector.extract_strided_slice %1 {offsets = [2, 0, 0], sizes = [1, 12, 4], strides = [1, 1, 1]} : vector<3x12x4xbf16> to vector<1x12x4xbf16>
    %78 = vector.shape_cast %77 : vector<1x12x4xbf16> to vector<12x4xbf16>
    %cst_68 = arith.constant dense<0.000000e+00> : vector<128x4xf32>
    %79 = tpu.matmul %76, %78, %cst_68 {dimension_numbers = #tpu.dot_dimension_numbers<[1], [0], [0], [1], [0, 0, 1, 1], [], []>} : vector<128x12xbf16>, vector<12x4xbf16>, vector<128x4xf32> -> vector<128x4xf32>
    %80 = arith.addf %64, %79 : vector<128x4xf32>
    %81 = vector.broadcast %5 : vector<1x4xf32> to vector<128x4xf32>
    %82 = arith.mulf %80, %81 : vector<128x4xf32>
    %83 = vector.broadcast %6 : vector<1x4xf32> to vector<128x4xf32>
    %84 = arith.addf %82, %83 : vector<128x4xf32>
    %cst_69 = arith.constant 0.000000e+00 : f32
    %85 = vector.broadcast %cst_69 : f32 to vector<128x4xf32>
    %86 = arith.maximumf %84, %85 : vector<128x4xf32>
    %87 = arith.truncf %86 : vector<128x4xf32> to vector<128x4xbf16>
    %cst_70 = arith.constant dense<0.000000e+00> : vector<128x16xf32>
    %88 = tpu.matmul %87, %2, %cst_70 {dimension_numbers = #tpu.dot_dimension_numbers<[1], [0], [0], [1], [0, 0, 1, 1], [], []>} : vector<128x4xbf16>, vector<4x16xbf16>, vector<128x16xf32> -> vector<128x16xf32>
    %c0_71 = arith.constant 0 : index
    %89 = arith.index_cast %31 : i32 to index
    %c0_72 = arith.constant 0 : index
    %c0_73 = arith.constant 0 : index
    %90 = vector.load %arg1[%c0_71, %89, %c0_72, %c0_73] : memref<1x16x16x16xbf16, #tpu.memory_space<vmem>>, vector<1x8x16x16xbf16>
    %91 = vector.shape_cast %90 : vector<1x8x16x16xbf16> to vector<8x16x16xbf16>
    %92 = vector.shape_cast %91 : vector<8x16x16xbf16> to vector<128x16xbf16>
    %93 = arith.extf %92 : vector<128x16xbf16> to vector<128x16xf32>
    %94 = vector.broadcast %7 : vector<1x16xf32> to vector<128x16xf32>
    %95 = arith.mulf %88, %94 : vector<128x16xf32>
    %96 = vector.broadcast %8 : vector<1x16xf32> to vector<128x16xf32>
    %97 = arith.addf %95, %96 : vector<128x16xf32>
    %98 = arith.addf %97, %93 : vector<128x16xf32>
    %cst_74 = arith.constant 0.000000e+00 : f32
    %99 = vector.broadcast %cst_74 : f32 to vector<128x16xf32>
    %100 = arith.maximumf %98, %99 : vector<128x16xf32>
    %101 = vector.shape_cast %100 : vector<128x16xf32> to vector<8x16x16xf32>
    %102 = arith.truncf %101 : vector<8x16x16xf32> to vector<8x16x16xbf16>
    %c0_75 = arith.constant 0 : index
    %103 = arith.index_cast %31 : i32 to index
    %c0_76 = arith.constant 0 : index
    %c0_77 = arith.constant 0 : index
    %104 = vector.load %arg11[%c0_75, %103, %c0_76, %c0_77] : memref<1x16x16x16xbf16, #tpu.memory_space<vmem>>, vector<1x8x16x16xbf16>
    %105 = vector.shape_cast %104 : vector<1x8x16x16xbf16> to vector<8x16x16xbf16>
    %106 = vector.shape_cast %102 : vector<8x16x16xbf16> to vector<1x8x16x16xbf16>
    tpu.vector_store %arg11[%c0_75, %103, %c0_76, %c0_77], %106 {strides = array<i32>} : memref<1x16x16x16xbf16, #tpu.memory_space<vmem>>, vector<1x8x16x16xbf16>,
    %c1_i32_78 = arith.constant 1 : i32
    %c1_i32_79 = arith.constant 1 : i32
    %107 = arith.addi %c1_i32_78, %c1_i32_79 : i32
    %c2_i32_80 = arith.constant 2 : i32
    %108 = arith.cmpi slt, %107, %c2_i32_80 : i32
    %109 = arith.extui %108 : i1 to i32
    %c0_i32_81 = arith.constant 0 : i32
    %110 = arith.cmpi ne, %109, %c0_i32_81 : i32
    scf.if %110 {
      %c1_i32_124 = arith.constant 1 : i32
      %187 = arith.addi %c1_i32_78, %c1_i32_124 : i32
      %c8_i32_125 = arith.constant 8 : i32
      %188 = arith.muli %187, %c8_i32_125 : i32
      %c0_126 = arith.constant 0 : index
      %189 = arith.index_cast %188 : i32 to index
      %c0_127 = arith.constant 0 : index
      %c0_128 = arith.constant 0 : index
      %190 = vector.load %arg1[%c0_126, %189, %c0_127, %c0_128] : memref<1x16x16x16xbf16, #tpu.memory_space<vmem>>, vector<1x8x16x16xbf16>
      %191 = vector.shape_cast %190 : vector<1x8x16x16xbf16> to vector<8x16x16xbf16>
      %192 = vector.shape_cast %191 : vector<8x16x16xbf16> to vector<128x16xbf16>
      %cst_129 = arith.constant dense<0.000000e+00> : vector<128x4xf32>
      %193 = tpu.matmul %192, %0, %cst_129 {dimension_numbers = #tpu.dot_dimension_numbers<[1], [0], [0], [1], [0, 0, 1, 1], [], []>} : vector<128x16xbf16>, vector<16x4xbf16>, vector<128x4xf32> -> vector<128x4xf32>
      %194 = vector.broadcast %3 : vector<1x4xf32> to vector<128x4xf32>
      %195 = arith.mulf %193, %194 : vector<128x4xf32>
      %196 = vector.broadcast %4 : vector<1x4xf32> to vector<128x4xf32>
      %197 = arith.addf %195, %196 : vector<128x4xf32>
      %cst_130 = arith.constant 0.000000e+00 : f32
      %198 = vector.broadcast %cst_130 : f32 to vector<128x4xf32>
      %199 = arith.maximumf %197, %198 : vector<128x4xf32>
      %200 = vector.shape_cast %199 : vector<128x4xf32> to vector<8x16x4xf32>
      %c1_i32_131 = arith.constant 1 : i32
      %201 = arith.addi %188, %c1_i32_131 : i32
      %202 = arith.index_cast %201 : i32 to index
      %c1_132 = arith.constant 1 : index
      %c0_133 = arith.constant 0 : index
      %203 = vector.load %arg12[%202, %c1_132, %c0_133] : memref<18x18x4xf32, #tpu.memory_space<vmem>>, vector<8x16x4xf32>
      tpu.vector_store %arg12[%202, %c1_132, %c0_133], %200 {strides = array<i32>} : memref<18x18x4xf32, #tpu.memory_space<vmem>>, vector<8x16x4xf32>,
    } else {
    }
    %c8_i32_82 = arith.constant 8 : i32
    %111 = arith.muli %c1_i32_78, %c8_i32_82 : i32
    %cst_83 = arith.constant 0.000000e+00 : f32
    %112 = vector.broadcast %cst_83 : f32 to vector<128x4xf32>
    %c0_i32_84 = arith.constant 0 : i32
    %113 = arith.addi %111, %c0_i32_84 : i32
    %114 = arith.index_cast %113 : i32 to index
    %c0_85 = arith.constant 0 : index
    %c0_86 = arith.constant 0 : index
    %115 = vector.load %arg12[%114, %c0_85, %c0_86] : memref<18x18x4xf32, #tpu.memory_space<vmem>>, vector<8x16x4xf32>
    %c0_i32_87 = arith.constant 0 : i32
    %116 = arith.addi %111, %c0_i32_87 : i32
    %117 = arith.index_cast %116 : i32 to index
    %c1_88 = arith.constant 1 : index
    %c0_89 = arith.constant 0 : index
    %118 = vector.load %arg12[%117, %c1_88, %c0_89] : memref<18x18x4xf32, #tpu.memory_space<vmem>>, vector<8x16x4xf32>
    %c0_i32_90 = arith.constant 0 : i32
    %119 = arith.addi %111, %c0_i32_90 : i32
    %120 = arith.index_cast %119 : i32 to index
    %c2_91 = arith.constant 2 : index
    %c0_92 = arith.constant 0 : index
    %121 = vector.load %arg12[%120, %c2_91, %c0_92] : memref<18x18x4xf32, #tpu.memory_space<vmem>>, vector<8x16x4xf32>
    %122 = tpu.concatenate %115, %118, %121 in 2 : vector<8x16x4xf32>, vector<8x16x4xf32>, vector<8x16x4xf32> -> vector<8x16x12xf32>
    %123 = vector.shape_cast %122 : vector<8x16x12xf32> to vector<128x12xf32>
    %124 = arith.truncf %123 : vector<128x12xf32> to vector<128x12xbf16>
    %125 = vector.extract_strided_slice %1 {offsets = [0, 0, 0], sizes = [1, 12, 4], strides = [1, 1, 1]} : vector<3x12x4xbf16> to vector<1x12x4xbf16>
    %126 = vector.shape_cast %125 : vector<1x12x4xbf16> to vector<12x4xbf16>
    %cst_93 = arith.constant dense<0.000000e+00> : vector<128x4xf32>
    %127 = tpu.matmul %124, %126, %cst_93 {dimension_numbers = #tpu.dot_dimension_numbers<[1], [0], [0], [1], [0, 0, 1, 1], [], []>} : vector<128x12xbf16>, vector<12x4xbf16>, vector<128x4xf32> -> vector<128x4xf32>
    %128 = arith.addf %112, %127 : vector<128x4xf32>
    %c1_i32_94 = arith.constant 1 : i32
    %129 = arith.addi %111, %c1_i32_94 : i32
    %130 = arith.index_cast %129 : i32 to index
    %c0_95 = arith.constant 0 : index
    %c0_96 = arith.constant 0 : index
    %131 = vector.load %arg12[%130, %c0_95, %c0_96] : memref<18x18x4xf32, #tpu.memory_space<vmem>>, vector<8x16x4xf32>
    %c1_i32_97 = arith.constant 1 : i32
    %132 = arith.addi %111, %c1_i32_97 : i32
    %133 = arith.index_cast %132 : i32 to index
    %c1_98 = arith.constant 1 : index
    %c0_99 = arith.constant 0 : index
    %134 = vector.load %arg12[%133, %c1_98, %c0_99] : memref<18x18x4xf32, #tpu.memory_space<vmem>>, vector<8x16x4xf32>
    %c1_i32_100 = arith.constant 1 : i32
    %135 = arith.addi %111, %c1_i32_100 : i32
    %136 = arith.index_cast %135 : i32 to index
    %c2_101 = arith.constant 2 : index
    %c0_102 = arith.constant 0 : index
    %137 = vector.load %arg12[%136, %c2_101, %c0_102] : memref<18x18x4xf32, #tpu.memory_space<vmem>>, vector<8x16x4xf32>
    %138 = tpu.concatenate %131, %134, %137 in 2 : vector<8x16x4xf32>, vector<8x16x4xf32>, vector<8x16x4xf32> -> vector<8x16x12xf32>
    %139 = vector.shape_cast %138 : vector<8x16x12xf32> to vector<128x12xf32>
    %140 = arith.truncf %139 : vector<128x12xf32> to vector<128x12xbf16>
    %141 = vector.extract_strided_slice %1 {offsets = [1, 0, 0], sizes = [1, 12, 4], strides = [1, 1, 1]} : vector<3x12x4xbf16> to vector<1x12x4xbf16>
    %142 = vector.shape_cast %141 : vector<1x12x4xbf16> to vector<12x4xbf16>
    %cst_103 = arith.constant dense<0.000000e+00> : vector<128x4xf32>
    %143 = tpu.matmul %140, %142, %cst_103 {dimension_numbers = #tpu.dot_dimension_numbers<[1], [0], [0], [1], [0, 0, 1, 1], [], []>} : vector<128x12xbf16>, vector<12x4xbf16>, vector<128x4xf32> -> vector<128x4xf32>
    %144 = arith.addf %128, %143 : vector<128x4xf32>
    %c2_i32_104 = arith.constant 2 : i32
    %145 = arith.addi %111, %c2_i32_104 : i32
    %146 = arith.index_cast %145 : i32 to index
    %c0_105 = arith.constant 0 : index
    %c0_106 = arith.constant 0 : index
    %147 = vector.load %arg12[%146, %c0_105, %c0_106] : memref<18x18x4xf32, #tpu.memory_space<vmem>>, vector<8x16x4xf32>
    %c2_i32_107 = arith.constant 2 : i32
    %148 = arith.addi %111, %c2_i32_107 : i32
    %149 = arith.index_cast %148 : i32 to index
    %c1_108 = arith.constant 1 : index
    %c0_109 = arith.constant 0 : index
    %150 = vector.load %arg12[%149, %c1_108, %c0_109] : memref<18x18x4xf32, #tpu.memory_space<vmem>>, vector<8x16x4xf32>
    %c2_i32_110 = arith.constant 2 : i32
    %151 = arith.addi %111, %c2_i32_110 : i32
    %152 = arith.index_cast %151 : i32 to index
    %c2_111 = arith.constant 2 : index
    %c0_112 = arith.constant 0 : index
    %153 = vector.load %arg12[%152, %c2_111, %c0_112] : memref<18x18x4xf32, #tpu.memory_space<vmem>>, vector<8x16x4xf32>
    %154 = tpu.concatenate %147, %150, %153 in 2 : vector<8x16x4xf32>, vector<8x16x4xf32>, vector<8x16x4xf32> -> vector<8x16x12xf32>
    %155 = vector.shape_cast %154 : vector<8x16x12xf32> to vector<128x12xf32>
    %156 = arith.truncf %155 : vector<128x12xf32> to vector<128x12xbf16>
    %157 = vector.extract_strided_slice %1 {offsets = [2, 0, 0], sizes = [1, 12, 4], strides = [1, 1, 1]} : vector<3x12x4xbf16> to vector<1x12x4xbf16>
    %158 = vector.shape_cast %157 : vector<1x12x4xbf16> to vector<12x4xbf16>
    %cst_113 = arith.constant dense<0.000000e+00> : vector<128x4xf32>
    %159 = tpu.matmul %156, %158, %cst_113 {dimension_numbers = #tpu.dot_dimension_numbers<[1], [0], [0], [1], [0, 0, 1, 1], [], []>} : vector<128x12xbf16>, vector<12x4xbf16>, vector<128x4xf32> -> vector<128x4xf32>
    %160 = arith.addf %144, %159 : vector<128x4xf32>
    %161 = vector.broadcast %5 : vector<1x4xf32> to vector<128x4xf32>
    %162 = arith.mulf %160, %161 : vector<128x4xf32>
    %163 = vector.broadcast %6 : vector<1x4xf32> to vector<128x4xf32>
    %164 = arith.addf %162, %163 : vector<128x4xf32>
    %cst_114 = arith.constant 0.000000e+00 : f32
    %165 = vector.broadcast %cst_114 : f32 to vector<128x4xf32>
    %166 = arith.maximumf %164, %165 : vector<128x4xf32>
    %167 = arith.truncf %166 : vector<128x4xf32> to vector<128x4xbf16>
    %cst_115 = arith.constant dense<0.000000e+00> : vector<128x16xf32>
    %168 = tpu.matmul %167, %2, %cst_115 {dimension_numbers = #tpu.dot_dimension_numbers<[1], [0], [0], [1], [0, 0, 1, 1], [], []>} : vector<128x4xbf16>, vector<4x16xbf16>, vector<128x16xf32> -> vector<128x16xf32>
    %c0_116 = arith.constant 0 : index
    %169 = arith.index_cast %111 : i32 to index
    %c0_117 = arith.constant 0 : index
    %c0_118 = arith.constant 0 : index
    %170 = vector.load %arg1[%c0_116, %169, %c0_117, %c0_118] : memref<1x16x16x16xbf16, #tpu.memory_space<vmem>>, vector<1x8x16x16xbf16>
    %171 = vector.shape_cast %170 : vector<1x8x16x16xbf16> to vector<8x16x16xbf16>
    %172 = vector.shape_cast %171 : vector<8x16x16xbf16> to vector<128x16xbf16>
    %173 = arith.extf %172 : vector<128x16xbf16> to vector<128x16xf32>
    %174 = vector.broadcast %7 : vector<1x16xf32> to vector<128x16xf32>
    %175 = arith.mulf %168, %174 : vector<128x16xf32>
    %176 = vector.broadcast %8 : vector<1x16xf32> to vector<128x16xf32>
    %177 = arith.addf %175, %176 : vector<128x16xf32>
    %178 = arith.addf %177, %173 : vector<128x16xf32>
    %cst_119 = arith.constant 0.000000e+00 : f32
    %179 = vector.broadcast %cst_119 : f32 to vector<128x16xf32>
    %180 = arith.maximumf %178, %179 : vector<128x16xf32>
    %181 = vector.shape_cast %180 : vector<128x16xf32> to vector<8x16x16xf32>
    %182 = arith.truncf %181 : vector<8x16x16xf32> to vector<8x16x16xbf16>
    %c0_120 = arith.constant 0 : index
    %183 = arith.index_cast %111 : i32 to index
    %c0_121 = arith.constant 0 : index
    %c0_122 = arith.constant 0 : index
    %184 = vector.load %arg11[%c0_120, %183, %c0_121, %c0_122] : memref<1x16x16x16xbf16, #tpu.memory_space<vmem>>, vector<1x8x16x16xbf16>
    %185 = vector.shape_cast %184 : vector<1x8x16x16xbf16> to vector<8x16x16xbf16>
    %186 = vector.shape_cast %182 : vector<8x16x16xbf16> to vector<1x8x16x16xbf16>
    tpu.vector_store %arg11[%c0_120, %183, %c0_121, %c0_122], %186 {strides = array<i32>} : memref<1x16x16x16xbf16, #tpu.memory_space<vmem>>, vector<1x8x16x16xbf16>,
    %c2_i32_123 = arith.constant 2 : i32
    return
  }
  func.func @transform_0(%arg0: i32) -> (i32, i32, i32, i32) {
    %c0_i32 = arith.constant 0 : i32
    %c0_i32_0 = arith.constant 0 : i32
    %c0_i32_1 = arith.constant 0 : i32
    %c0_i32_2 = arith.constant 0 : i32
    return %arg0, %c0_i32, %c0_i32_0, %c0_i32_1 : i32, i32, i32, i32
  }
  func.func @transform_1(%arg0: i32) -> (i32, i32) {
    %c0_i32 = arith.constant 0 : i32
    %c0_i32_0 = arith.constant 0 : i32
    %c0_i32_1 = arith.constant 0 : i32
    return %c0_i32, %c0_i32_0 : i32, i32
  }
  func.func @transform_2(%arg0: i32) -> (i32, i32, i32) {
    %c0_i32 = arith.constant 0 : i32
    %c0_i32_0 = arith.constant 0 : i32
    %c0_i32_1 = arith.constant 0 : i32
    %c0_i32_2 = arith.constant 0 : i32
    return %c0_i32, %c0_i32_0, %c0_i32_1 : i32, i32, i32
  }
  func.func @transform_3(%arg0: i32) -> (i32, i32) {
    %c0_i32 = arith.constant 0 : i32
    %c0_i32_0 = arith.constant 0 : i32
    %c0_i32_1 = arith.constant 0 : i32
    return %c0_i32, %c0_i32_0 : i32, i32
  }
  func.func @transform_4(%arg0: i32) -> (i32, i32) {
    %c0_i32 = arith.constant 0 : i32
    %c0_i32_0 = arith.constant 0 : i32
    %c0_i32_1 = arith.constant 0 : i32
    return %c0_i32, %c0_i32_0 : i32, i32
  }
  func.func @transform_5(%arg0: i32) -> (i32, i32) {
    %c0_i32 = arith.constant 0 : i32
    %c0_i32_0 = arith.constant 0 : i32
    %c0_i32_1 = arith.constant 0 : i32
    return %c0_i32, %c0_i32_0 : i32, i32
  }
  func.func @transform_6(%arg0: i32) -> (i32, i32) {
    %c0_i32 = arith.constant 0 : i32
    %c0_i32_0 = arith.constant 0 : i32
    %c0_i32_1 = arith.constant 0 : i32
    return %c0_i32, %c0_i32_0 : i32, i32
  }
  func.func @transform_7(%arg0: i32) -> (i32, i32) {
    %c0_i32 = arith.constant 0 : i32
    %c0_i32_0 = arith.constant 0 : i32
    %c0_i32_1 = arith.constant 0 : i32
    return %c0_i32, %c0_i32_0 : i32, i32
  }
  func.func @transform_8(%arg0: i32) -> (i32, i32) {
    %c0_i32 = arith.constant 0 : i32
    %c0_i32_0 = arith.constant 0 : i32
    %c0_i32_1 = arith.constant 0 : i32
    return %c0_i32, %c0_i32_0 : i32, i32
  }
  func.func @transform_9(%arg0: i32) -> (i32, i32) {
    %c0_i32 = arith.constant 0 : i32
    %c0_i32_0 = arith.constant 0 : i32
    %c0_i32_1 = arith.constant 0 : i32
    return %c0_i32, %c0_i32_0 : i32, i32
  }
  func.func @transform_10(%arg0: i32) -> (i32, i32, i32, i32) {
    %c0_i32 = arith.constant 0 : i32
    %c0_i32_0 = arith.constant 0 : i32
    %c0_i32_1 = arith.constant 0 : i32
    %c0_i32_2 = arith.constant 0 : i32
    return %arg0, %c0_i32, %c0_i32_0, %c0_i32_1 : i32, i32, i32, i32
  }
}

</mosaic_0001>

<bundles_post_ra>
// kernel: bottleneck_forward_nhwc.1
= control target key start
LH: loop header
LB: loop body
LE: loop exit
PB: predicated region body
PF: predicated region fallthrough
CT: control target
= control target key end

     0   :  { %15 = vsyncpa [#allocation4], 0  ;;  %s5252_s0 = inlined_call_operand.vmem [shape: bf16[2,16,16,16], index: 0, kind: input, shape index: {}]   ;;  %s5253_s1 = inlined_call_operand.vmem [shape: bf16[16,4], index: 1, kind: input, shape index: {}]   ;;  %s5254_s2 = inlined_call_operand.vmem [shape: bf16[3,12,4], index: 2, kind: input, shape index: {}]   ;;  %s5255_s3 = inlined_call_operand.vmem [shape: bf16[4,16], index: 3, kind: input, shape index: {}]   ;;  %s5256_s4 = inlined_call_operand.vmem [shape: f32[1,4], index: 4, kind: input, shape index: {}]   ;;  %s5257_s5 = inlined_call_operand.vmem [shape: f32[1,4], index: 5, kind: input, shape index: {}]   ;;  %s5258_s6 = inlined_call_operand.vmem [shape: f32[1,4], index: 6, kind: input, shape index: {}]   ;;  %s5259_s7 = inlined_call_operand.vmem [shape: f32[1,4], index: 7, kind: input, shape index: {}]   ;;  %s5260_s8 = inlined_call_operand.vmem [shape: f32[1,16], index: 8, kind: input, shape index: {}]   ;;  %s5261_s9 = inlined_call_operand.vmem [shape: f32[1,16], index: 9, kind: input, shape index: {}]   ;;  %s5262_s10 = inlined_call_operand.hbm [shape: bf16[2,16,16,16], index: 10, kind: output, shape index: {}]  }
   0x1   :  { %17 = vsyncpa [#allocation4 + $0x1], 0  ;;  %s4207_s13 = smov 0   ;;  %s4209_s14 = smov 0  }
   0x2   :  { %s4211_s15 = smov 0   ;;  %s4213_s16 = smov 0  }
   0x3 LB: > { %s4228_s17 = sadd.s32 4294967295, %s4146_s16   ;;  %s3228_s18 = sadd.s32 4294967294, %s4146_s16   ;;  %s4146_s16 = sphi %s4213_s16, %s5270_s16   ;;  %s4142_s15 = sphi %s4211_s15, %s5269_s15   ;;  %s4138_s14 = sphi %s4209_s14, %s5268_s14   ;;  %s4134_s13 = sphi %s4207_s13, %s5267_s13  }
   0x4   : > { %s4232_s19 = sadd.s32 1, %s4146_s16   ;;  %s245_s20 = sadd.s32 1, %s4142_s15 }
   0x5   : > { %s242_s21 = ssub.s32 %s4146_s16, %s4232_s19  ;;  %p255_p0 = scmp.ne.s32.totalorder %s4142_s15, %s4138_s14 }
   0x6   : > { %p243_p1 = scmp.eq.s32.totalorder %s242_s21, 0  ;;  %p256_p2 = scmp.eq.s32.totalorder %s4228_s17, 1 }
   0x7   : > { %p261_p3 = scmp.ne.s32.totalorder %s4138_s14, %s4134_s13  ;;  %p262_p4 = scmp.eq.s32.totalorder %s3228_s18, 1 }
   0x8   : > { %s4243_s22 = scalar_select %p243_p1, %s4142_s15, %s245_s20  }
   0x9   : > { %p4245_p5 = por %p256_p2, %p255_p0  ;;  %p4249_p6 = por %p262_p4, %p261_p3 }
   0xa   : > { %p3231_p7 = scmp.ge.s32.totalorder %s4146_s16, 1  ;;  %p315_p8 = scmp.lt.s32.totalorder %s4146_s16, 3 }
   0xc   : > { %p316_p9 = pnand %p3231_p7, %p315_p8 }
   0xd   : > { %p353_p10 = scmp.lt.s32.totalorder (!%p316_p9), %s4228_s17, 1  ;;  %s5263_s12 = smov (!%p316_p9), 4  }
   0xe   : > { %319 = sbr.rel (%p316_p9) target bundleno = 844 (0x34c), region = 60  ;;  %s4150_s18 = smov (!%p316_p9), 8  }
   0xf   : > { %s3469_s26 = sshll.u32 (!%p316_p9), %s4228_s17, 7 }
  0x13   : > { %v3449_v0 = vld [vmem:[%s5253_s1] sm:$0xff]  ;;  %s354_s27 = scalar_select %p353_p10, %s4228_s17, 1  ;;  %vm482_vm0 = vcmask 130048   ;;  %vm374_vm1 = vcmask 31744   ;;  %vm377_vm2 = vcmask 25600   ;;  %v4148_v10 = vmov 0.0  }
  0x14   : > { %514 = vmatpush.bf16.msra.mxu0 %v3449_v0  ;;  %3549 = vmatpush.bf16.msra.mxu2 %v3449_v0  ;;  %375 = vst.msk [vmem:[#allocation2] sm:$0xff] %vm374_vm1, %v4148_v10  ;;  %vm383_vm3 = vcmask 24576   ;;  %v4336_v19 = vld [vmem:[%s5256_s4] ss:$0 sm:$0xff]  ;;  %vm1285_vm4 = vcmask 1045504   ;;  %vm1014_vm5 = vcmask 64512  }
  0x15   : > { %715 = vmatpush.bf16.msra.mxu1 %v3449_v0  ;;  %3550 = vmatpush.bf16.msra.mxu3 %v3449_v0  ;;  %s3448_s28 = sshll.u32 %s354_s27, 7  ;;  %376 = vst.msk [vmem:[#allocation2 + $0x8] sm:$0xff] %vm374_vm1, %v4148_v10  ;;  %v4345_v20 = vld [vmem:[%s5257_s5] ss:$0 sm:$0xff]  ;;  %vm1260_vm6 = vcmask 97280   ;;  %vm1819_vm7 = vcmask 1041408  }
  0x16   : > { %s4263_s11 = scalar_lea.vmem %s5252_s0, %s3448_s28  ;;  %378 = vst.msk [vmem:[#allocation2 + $0x10] sm:$0x3] %vm377_vm2, %v4148_v10  ;;  %s350_s28 = sand.u32 1, %s4138_s14   ;;  %vm1990_vm8 = vcmask 125952  }
  0x17   : > { %v3453_v1 = vld [vmem:[%s4263_s11] sm:$0xff]  ;;  %v3454_v2 = vld [vmem:[%s4263_s11 + $0x8] sm:$0xff]  ;;  %v3455_v4 = vld [vmem:[%s4263_s11 + $0x10] sm:$0xff]  ;;  %382 = vst.msk [vmem:[#allocation2 + $0x1a8] sm:$0x3] %vm377_vm2, %v4148_v10  ;;  %s3232_s29 = sshll.u32 %s350_s28, 7 }
  0x18   : > { %3271 = vmatmul.msk.bf16.vlgmr.msra.gmra.mxu0 %vm482_vm0, %v3453_v1  ;;  %v3457_v3 = vld [vmem:[%s4263_s11 + $0x20] sm:$0xff]  ;;  %v3458_v5 = vld [vmem:[%s4263_s11 + $0x28] sm:$0xff]  ;;  %v3456_v7 = vld [vmem:[%s4263_s11 + $0x18] sm:$0xff]  ;;  %402 = vst.msk [vmem:[#allocation2 + $0x11] sm:$0x1] %vm383_vm3, %v4148_v10  ;;  %s5030_s30 = scalar_lea.vmem [#allocation3], %s3232_s29  ;;  %s3162_s29 = scalar_lea.hbm %s5262_s10, %s3469_s26 }
  0x19   : > { %3275 = vmatmul.msk.bf16.vlgmr.msra.gmra.mxu2 %vm482_vm0, %v3457_v3  ;;  %v3461_v6 = vld [vmem:[%s4263_s11 + $0x40] sm:$0xff]  ;;  %v3459_v8 = vld [vmem:[%s4263_s11 + $0x30] sm:$0xff]  ;;  %v3460_v9 = vld [vmem:[%s4263_s11 + $0x38] sm:$0xff]  ;;  %384 = vst.msk [vmem:[#allocation2] sm:$0x1] %vm383_vm3, %v4148_v10  ;;  %s3163_s20 = sshll.u32 %s5030_s30, 4  ;;  %s3164_s20 = int_to_ptr.vmem [resolvable:$true] %s3163_s20 }
  0x1a   : > { %3327 = vmatmul.msk.bf16.vlgmr.msra.gmra.mxu1 %vm482_vm0, %v3461_v6  ;;  %v3462_v11 = vld [vmem:[%s4263_s11 + $0x48] sm:$0xff]  ;;  %380 = vst.msk [vmem:[#allocation2 + $0x198] sm:$0xff] %vm374_vm1, %v4148_v10  ;;  %v3463_v18 = vld [vmem:[%s4263_s11 + $0x50] sm:$0xff]  ;;  %v3464_v27 = vld [vmem:[%s4263_s11 + $0x58] sm:$0xff]  ;;  %s3165_s21 = sshll.u32 %s3162_s29, 4  ;;  %s3151_s17 = scalar_lea.sflag [#allocation4], %s350_s28  ;;  %s3166_s21 = int_to_ptr.hbm [resolvable:$true] %s3165_s21 }
  0x1b   : > { %381 = vst.msk [vmem:[#allocation2 + $0x1a0] sm:$0xff] %vm374_vm1, %v4148_v10  ;;  %v3465_v33 = vld [vmem:[%s4263_s11 + $0x60] sm:$0xff]  ;;  %v3466_v52 = vld [vmem:[%s4263_s11 + $0x68] sm:$0xff]  ;;  %s4104_s27 = scalar_lea.hbm %s5262_s10, 256 }
  0x1c   : > { %385 = vst.msk [vmem:[#allocation2 + $0x18] sm:$0x1] %vm383_vm3, %v4148_v10  ;;  %v838_v12 = vld [vmem:[#allocation2 + $0x1] sm:$0xff]  ;;  %3331 = vmatmul.msk.bf16.vlgmr.msra.gmra.mxu3 %vm482_vm0, %v3465_v33 }
  0x1d   : > { %v854_v13 = vld [vmem:[#allocation2 + $0x2] sm:$0xff]  ;;  %386 = vst.msk [vmem:[#allocation2 + $0x30] sm:$0x1] %vm383_vm3, %v4148_v10 }
  0x1e   : > { %v839_v14 = vld [vmem:[#allocation2 + $0x9] sm:$0xff]  ;;  %387 = vst.msk [vmem:[#allocation2 + $0x48] sm:$0x1] %vm383_vm3, %v4148_v10  ;;  %v3349_v33 = vld [vmem:[%s5254_s2] sm:$0xf] }
  0x1f   : > { %v3594_v15 = vpack.i.bf16 %v839_v14, %v838_v12  ;;  %v855_v16 = vld [vmem:[#allocation2 + $0xa] sm:$0xff]  ;;  %388 = vst.msk [vmem:[#allocation2 + $0x60] sm:$0x1] %vm383_vm3, %v4148_v10 }
  0x20   : > { %v3604_v17 = vpack.i.bf16 %v855_v16, %v854_v13  ;;  %389 = vst.msk [vmem:[#allocation2 + $0x78] sm:$0x1] %vm383_vm3, %v4148_v10  ;;  %v3467_v12 = vld [vmem:[%s4263_s11 + $0x70] sm:$0xff] }
  0x21   : > { %3595 = vrot.lane.b32.xlu0 %v3594_v15, %s5263_s12  ;;  %390 = vst.msk [vmem:[#allocation2 + $0x90] sm:$0x1] %vm383_vm3, %v4148_v10 }
  0x22   : > { %3605 = vrot.lane.b32.xlu1 %v3604_v17, %s4150_s18  ;;  %391 = vst.msk [vmem:[#allocation2 + $0xa8] sm:$0x1] %vm383_vm3, %v4148_v10 }
  0x23   : > { %392 = vst.msk [vmem:[#allocation2 + $0xc0] sm:$0x1] %vm383_vm3, %v4148_v10 }
  0x24   : > { %393 = vst.msk [vmem:[#allocation2 + $0xd8] sm:$0x1] %vm383_vm3, %v4148_v10 }
  0x25   : > { %394 = vst.msk [vmem:[#allocation2 + $0xf0] sm:$0x1] %vm383_vm3, %v4148_v10 }
  0x26   : > { %395 = vst.msk [vmem:[#allocation2 + $0x108] sm:$0x1] %vm383_vm3, %v4148_v10 }
  0x27   : > { %396 = vst.msk [vmem:[#allocation2 + $0x120] sm:$0x1] %vm383_vm3, %v4148_v10 }
  0x28   : > { %3272 = vmatmul.msk.bf16.gmra.mxu0 %vm482_vm0, %v3454_v2  ;;  %397 = vst.msk [vmem:[#allocation2 + $0x138] sm:$0x1] %vm383_vm3, %v4148_v10 }
  0x29   : > { %3276 = vmatmul.msk.bf16.gmra.mxu2 %vm482_vm0, %v3458_v5  ;;  %398 = vst.msk [vmem:[#allocation2 + $0x150] sm:$0x1] %vm383_vm3, %v4148_v10 }
  0x2a   : > { %3328 = vmatmul.msk.bf16.gmra.mxu1 %vm482_vm0, %v3462_v11  ;;  %399 = vst.msk [vmem:[#allocation2 + $0x168] sm:$0x1] %vm383_vm3, %v4148_v10 }
  0x2b   : > { %400 = vst.msk [vmem:[#allocation2 + $0x180] sm:$0x1] %vm383_vm3, %v4148_v10 }
  0x2c   : > { %403 = vst.msk [vmem:[#allocation2 + $0x29] sm:$0x1] %vm383_vm3, %v4148_v10  ;;  %3332 = vmatmul.msk.bf16.gmra.mxu3 %vm482_vm0, %v3466_v52 }
  0x2d   : > { %404 = vst.msk [vmem:[#allocation2 + $0x41] sm:$0x1] %vm383_vm3, %v4148_v10 }
  0x2e   : > { %405 = vst.msk [vmem:[#allocation2 + $0x59] sm:$0x1] %vm383_vm3, %v4148_v10 }
  0x2f   : > { %406 = vst.msk [vmem:[#allocation2 + $0x71] sm:$0x1] %vm383_vm3, %v4148_v10 }
  0x30   : > { %407 = vst.msk [vmem:[#allocation2 + $0x89] sm:$0x1] %vm383_vm3, %v4148_v10 }
  0x31   : > { %408 = vst.msk [vmem:[#allocation2 + $0xa1] sm:$0x1] %vm383_vm3, %v4148_v10 }
  0x32   : > { %409 = vst.msk [vmem:[#allocation2 + $0xb9] sm:$0x1] %vm383_vm3, %v4148_v10 }
  0x33   : > { %410 = vst.msk [vmem:[#allocation2 + $0xd1] sm:$0x1] %vm383_vm3, %v4148_v10 }
  0x34   : > { %411 = vst.msk [vmem:[#allocation2 + $0xe9] sm:$0x1] %vm383_vm3, %v4148_v10 }
  0x35   : > { %412 = vst.msk [vmem:[#allocation2 + $0x101] sm:$0x1] %vm383_vm3, %v4148_v10 }
  0x36   : > { %413 = vst.msk [vmem:[#allocation2 + $0x119] sm:$0x1] %vm383_vm3, %v4148_v10 }
  0x37   : > { %414 = vst.msk [vmem:[#allocation2 + $0x131] sm:$0x1] %vm383_vm3, %v4148_v10 }
  0x38   : > { %3273 = vmatmul.msk.bf16.gmra.mxu0 %vm482_vm0, %v3455_v4  ;;  %415 = vst.msk [vmem:[#allocation2 + $0x149] sm:$0x1] %vm383_vm3, %v4148_v10 }
  0x39   : > { %3277 = vmatmul.msk.bf16.gmra.mxu2 %vm482_vm0, %v3459_v8  ;;  %416 = vst.msk [vmem:[#allocation2 + $0x161] sm:$0x1] %vm383_vm3, %v4148_v10 }
  0x3a   : > { %3329 = vmatmul.msk.bf16.gmra.mxu1 %vm482_vm0, %v3463_v18  ;;  %417 = vst.msk [vmem:[#allocation2 + $0x179] sm:$0x1] %vm383_vm3, %v4148_v10 }
  0x3b   : > { %418 = vst.msk [vmem:[#allocation2 + $0x191] sm:$0x1] %vm383_vm3, %v4148_v10 }
  0x3c   : > { %419 = vst.msk [vmem:[#allocation2 + $0x1a9] sm:$0x1] %vm383_vm3, %v4148_v10  ;;  %3333 = vmatmul.msk.bf16.gmra.mxu3 %vm482_vm0, %v3467_v12 }
  0x3d   : > { %401 = vst.msk [vmem:[#allocation2 + $0x198] sm:$0x1] %vm383_vm3, %v4148_v10 }
  0x48   : > { %3274 = vmatmul.msk.bf16.gmra.mxu0 %vm482_vm0, %v3456_v7 }
  0x49   : > { %3278 = vmatmul.msk.bf16.gmra.mxu2 %vm482_vm0, %v3460_v9 }
  0x4a   : > { %3330 = vmatmul.msk.bf16.gmra.mxu1 %vm482_vm0, %v3464_v27 }
  0x95   : > { %v516_v21 = vpop.f32.mrf.mxu0 }
  0x96   : > { %v559_v22 = vmul.f32 %v4336_v19, %v516_v21 }
  0x98   : > { %v578_v23 = vadd.f32 %v4345_v20, %v559_v22 }
  0x9a   : > { %v594_v24 = vmax.f32 %v578_v23, 0.0 }
  0x9c   : > { %611 = vst.msk [vmem:[#allocation2 + $0x19] sm:$0xff] %vm374_vm1, %v594_v24  ;;  %v536_v43 = vpop.f32.mrf.mxu2 }
  0x9d   : > { %v518_v25 = vpop.f32.mrf.mxu0  ;;  %v567_v46 = vmul.f32 %v4336_v19, %v536_v43  ;;  %v3361_v43 = vld [vmem:[%s5254_s2 + $0x10] sm:$0xf] }
  0x9e   : > { %v560_v26 = vmul.f32 %v4336_v19, %v518_v25 }
  0x9f   : > { %v586_v49 = vadd.f32 %v4345_v20, %v567_v46 }
  0xa0   : > { %v579_v28 = vadd.f32 %v4345_v20, %v560_v26 }
  0xa1   : > { %v602_v54 = vmax.f32 %v586_v49, 0.0 }
  0xa2   : > { %v595_v29 = vmax.f32 %v579_v28, 0.0 }
  0xa3   : > { %v1055_v35 = vld [vmem:[#allocation2 + $0x19] sm:$0xff]  ;;  %619 = vst.msk [vmem:[#allocation2 + $0x79] sm:$0xff] %vm374_vm1, %v602_v54 }
  0xa4   : > { %612 = vst.msk [vmem:[#allocation2 + $0x21] sm:$0xff] %vm374_vm1, %v595_v29  ;;  %v538_v50 = vpop.f32.mrf.mxu2  ;;  %v3337_v29 = vld [vmem:[%s5254_s2 + $0x8] sm:$0xf] }
  0xa5   : > { %v521_v30 = vpop.f32.mrf.mxu0  ;;  %v568_v51 = vmul.f32 %v4336_v19, %v538_v50 }
  0xa6   : > { %v561_v31 = vmul.f32 %v4336_v19, %v521_v30  ;;  %v3451_v30 = vld [vmem:[%s5254_s2 + $0x8] sm:$0x30] }
  0xa7   : > { %v587_v55 = vadd.f32 %v4345_v20, %v568_v51 }
  0xa8   : > { %v580_v32 = vadd.f32 %v4345_v20, %v561_v31 }
  0xa9   : > { %v603_v61 = vmax.f32 %v587_v55, 0.0 }
  0xaa   : > { %v596_v34 = vmax.f32 %v580_v32, 0.0  ;;  %v3338_v32 = vor.u32 %v3451_v30, %v3337_v29 }
  0xab   : > { %v1071_v36 = vld [vmem:[#allocation2 + $0x1a] sm:$0xff]  ;;  %v1072_v37 = vld [vmem:[#allocation2 + $0x22] sm:$0xff]  ;;  %620 = vst.msk [vmem:[#allocation2 + $0x81] sm:$0xff] %vm374_vm1, %v603_v61 }
  0xac   : > { %v1056_v38 = vld [vmem:[#allocation2 + $0x21] sm:$0xff]  ;;  %613 = vst.msk [vmem:[#allocation2 + $0x31] sm:$0xff] %vm374_vm1, %v596_v34  ;;  %v4394_v39 = vpack.i.bf16 %v1072_v37, %v1071_v36  ;;  %v541_v2 = vpop.f32.mrf.mxu2 }
  0xad   : > { %v3599_v40 = vpack.i.bf16 %v1056_v38, %v1055_v35  ;;  %v523_v41 = vpop.f32.mrf.mxu0  ;;  %v569_v3 = vmul.f32 %v4336_v19, %v541_v2  ;;  %v3450_v34 = vld [vmem:[%s5254_s2] sm:$0x30]  ;;  %v1287_v38 = vsel %vm1285_vm4, %v3338_v32, 0 }
  0xae   : > { %v562_v42 = vmul.f32 %v4336_v19, %v523_v41  ;;  %3610 = vrot.lane.b32.xlu1 %v4394_v39, %s4150_s18  ;;  %v3350_v36 = vor.u32 %v3450_v34, %v3349_v33  ;;  %1296 = vmatpush.bf16.msrb.mxu2 %v1287_v38 }
  0xaf   : > { %3600 = vrot.lane.b32.xlu0 %v3599_v40, %s5263_s12  ;;  %v588_v5 = vadd.f32 %v4345_v20, %v569_v3 }
  0xb0   : > { %v581_v44 = vadd.f32 %v4345_v20, %v562_v42 }
  0xb1   : > { %v604_v7 = vmax.f32 %v588_v5, 0.0 }
  0xb2   : > { %v597_v45 = vmax.f32 %v581_v44, 0.0  ;;  %2471 = vmatpush.bf16.msra.mxu2 %v1287_v38  ;;  %v3452_v44 = vld [vmem:[%s5254_s2 + $0x10] sm:$0x30]  ;;  %v1079_v3 = vld [vmem:[#allocation2 + $0x7a] sm:$0xff] }
  0xb3   : > { %v1436_v57 = vld [vmem:[#allocation2 + $0x31] sm:$0xff]  ;;  %621 = vst.msk [vmem:[#allocation2 + $0x91] sm:$0xff] %vm374_vm1, %v604_v7  ;;  %v3362_v46 = vor.u32 %v3452_v44, %v3361_v43 }
  0xb4   : > { %614 = vst.msk [vmem:[#allocation2 + $0x39] sm:$0xff] %vm374_vm1, %v597_v45  ;;  %v543_v10 = vpop.f32.mrf.mxu2  ;;  %v3468_v45 = vld [vmem:[%s4263_s11 + $0x78] sm:$0xff] }
  0xb5   : > { %v526_v47 = vpop.f32.mrf.mxu0  ;;  %v570_v11 = vmul.f32 %v4336_v19, %v543_v10  ;;  %v1666_v49 = vsel %vm1285_vm4, %v3362_v46, 0  ;;  %3334 = vmatmul.msk.bf16.gmra.mxu3 %vm482_vm0, %v3468_v45 }
  0xb6   : > { %v563_v48 = vmul.f32 %v4336_v19, %v526_v47  ;;  %1675 = vmatpush.bf16.msrb.mxu0 %v1666_v49 }
  0xb7   : > { %3615 = vrot.lane.b32.xlu0 %v3599_v40, %s5263_s12  ;;  %v589_v14 = vadd.f32 %v4345_v20, %v570_v11  ;;  %v1368_v40 = vsel %vm1285_vm4, %v3350_v36, 0 }
  0xb8   : > { %v582_v53 = vadd.f32 %v4345_v20, %v563_v48  ;;  %1377 = vmatpush.bf16.msrb.mxu3 %v1368_v40 }
  0xb9   : > { %v605_v22 = vmax.f32 %v589_v14, 0.0 }
  0xba   : > { %v598_v56 = vmax.f32 %v582_v53, 0.0  ;;  %2834 = vmatpush.bf16.msra.mxu0 %v1666_v49  ;;  %v1444_v14 = vld [vmem:[#allocation2 + $0x91] sm:$0xff] }
  0xbb   : > { %v1437_v58 = vld [vmem:[#allocation2 + $0x39] sm:$0xff]  ;;  %622 = vst.msk [vmem:[#allocation2 + $0x99] sm:$0xff] %vm374_vm1, %v605_v22 }
  0xbc   : > { %v1073_v59 = vld [vmem:[#allocation2 + $0x32] sm:$0xff]  ;;  %v1074_v60 = vld [vmem:[#allocation2 + $0x3a] sm:$0xff]  ;;  %615 = vst.msk [vmem:[#allocation2 + $0x49] sm:$0xff] %vm374_vm1, %v598_v56  ;;  %v3619_v62 = vpack.i.bf16 %v1437_v58, %v1436_v57  ;;  %v546_v27 = vpop.f32.mrf.mxu2  ;;  %2544 = vmatpush.bf16.msra.mxu3 %v1368_v40 }
  0xbd   : > { %v4413_v63 = vpack.i.bf16 %v1074_v60, %v1073_v59  ;;  %v528_v0 = vpop.f32.mrf.mxu0  ;;  %v571_v28 = vmul.f32 %v4336_v19, %v546_v27 }
  0xbe   : > { %v564_v1 = vmul.f32 %v4336_v19, %v528_v0  ;;  %3620 = vrot.lane.b32.xlu2 %v3619_v62, %s5263_s12  ;;  %3635 = vrot.lane.b32.xlu1 %v3619_v62, %s5263_s12  ;;  %v1442_v0 = vld [vmem:[#allocation2 + $0x79] sm:$0xff] }
  0xbf   : > { %3640 = vrot.lane.b32.xlu0 %v4413_v63, %s4150_s18  ;;  %v590_v35 = vadd.f32 %v4345_v20, %v571_v28 }
  0xc0   : > { %v583_v4 = vadd.f32 %v4345_v20, %v564_v1  ;;  %v1443_v1 = vld [vmem:[#allocation2 + $0x81] sm:$0xff] }
  0xc1   : > { %v3699_v7 = vpack.i.bf16 %v1443_v1, %v1442_v0 }
  0xc2   : > { %v599_v6 = vmax.f32 %v583_v4, 0.0  ;;  %v1080_v4 = vld [vmem:[#allocation2 + $0x82] sm:$0xff]  ;;  %v1082_v22 = vld [vmem:[#allocation2 + $0x9a] sm:$0xff] }
  0xc3   : > { %v1438_v16 = vld [vmem:[#allocation2 + $0x49] sm:$0xff] }
  0xc4   : > { %616 = vst.msk [vmem:[#allocation2 + $0x51] sm:$0xff] %vm374_vm1, %v599_v6  ;;  %v548_v41 = vpop.f32.mrf.mxu2 }
  0xc5   : > { %v531_v8 = vpop.f32.mrf.mxu0  ;;  %v572_v42 = vmul.f32 %v4336_v19, %v548_v41 }
  0xc6   : > { %v565_v9 = vmul.f32 %v4336_v19, %v531_v8  ;;  %3625 = vrot.lane.b32.xlu2 %v4413_v63, %s4150_s18 }
  0xc7   : > { %3645 = vrot.lane.b32.xlu0 %v3619_v62, %s5263_s12  ;;  %v591_v47 = vadd.f32 %v4345_v20, %v572_v42  ;;  %v717_v62 = vpop.f32.mrf.mxu1 }
  0xc8   : > { %v584_v13 = vadd.f32 %v4345_v20, %v565_v9  ;;  %v3724_v9 = vpack.i.bf16 %v1080_v4, %v1079_v3 }
  0xc9   : > { %v607_v53 = vmax.f32 %v591_v47, 0.0 }
  0xca   : > { %v600_v15 = vmax.f32 %v584_v13, 0.0 }
  0xcb   : > { %v1439_v17 = vld [vmem:[#allocation2 + $0x51] sm:$0xff]  ;;  %624 = vst.msk [vmem:[#allocation2 + $0xb1] sm:$0xff] %vm374_vm1, %v607_v53 }
  0xcc   : > { %v1075_v18 = vld [vmem:[#allocation2 + $0x4a] sm:$0xff]  ;;  %v1076_v21 = vld [vmem:[#allocation2 + $0x52] sm:$0xff]  ;;  %617 = vst.msk [vmem:[#allocation2 + $0x61] sm:$0xff] %vm374_vm1, %v600_v15  ;;  %v3649_v23 = vpack.i.bf16 %v1439_v17, %v1438_v16  ;;  %v551_v56 = vpop.f32.mrf.mxu2  ;;  %v3596_v17 = vpop.permute.xlu0 %3595 }
  0xcd   : > { %v4436_v24 = vpack.i.bf16 %v1076_v21, %v1075_v18  ;;  %v533_v25 = vpop.f32.mrf.mxu0  ;;  %v573_v57 = vmul.f32 %v4336_v19, %v551_v56  ;;  %v1445_v15 = vld [vmem:[#allocation2 + $0x99] sm:$0xff]  ;;  %v823_v16 = vld [vmem:[#allocation2 + $0x8] sm:$0xff] }
  0xce   : > { %v566_v26 = vmul.f32 %v4336_v19, %v533_v25  ;;  %3630 = vrot.lane.b32.xlu2 %v4394_v39, %s4150_s18  ;;  %3650 = vrot.lane.b32.xlu1 %v3649_v23, %s5263_s12  ;;  %v606_v39 = vmax.f32 %v590_v35, 0.0  ;;  %v822_v18 = vld [vmem:[#allocation2] sm:$0xff]  ;;  %v1081_v21 = vld [vmem:[#allocation2 + $0x92] sm:$0xff]  ;;  %v3729_v25 = vpack.i.bf16 %v1445_v15, %v1444_v14 }
  0xcf   : > { %3670 = vrot.lane.b32.xlu0 %v4436_v24, %s4150_s18  ;;  %v592_v58 = vadd.f32 %v4345_v20, %v573_v57  ;;  %v719_v10 = vpop.f32.mrf.mxu1  ;;  %v1040_v14 = vld [vmem:[#allocation2 + $0x20] sm:$0xff] }
  0xd0   : > { %v585_v31 = vadd.f32 %v4345_v20, %v566_v26  ;;  %623 = vst.msk [vmem:[#allocation2 + $0xa9] sm:$0xff] %vm374_vm1, %v606_v39  ;;  %v758_v11 = vmul.f32 %v4336_v19, %v719_v10  ;;  %v3606_v26 = vpop.permute.xlu1 %3605 }
  0xd1   : > { %v608_v59 = vmax.f32 %v592_v58, 0.0  ;;  %v3608_v27 = vunpack.i.h.bf16 %v3606_v26  ;;  %v3607_v28 = vunpack.i.l.bf16 %v3606_v26 }
  0xd2   : > { %v601_v37 = vmax.f32 %v585_v31, 0.0  ;;  %v774_v12 = vadd.f32 %v4345_v20, %v758_v11  ;;  %v3759_v31 = vpack.i.bf16 %v1082_v22, %v1081_v21  ;;  %v1447_v43 = vld [vmem:[#allocation2 + $0xb1] sm:$0xff] }
  0xd3   : > { %v1440_v48 = vld [vmem:[#allocation2 + $0x61] sm:$0xff]  ;;  %625 = vst.msk [vmem:[#allocation2 + $0xc1] sm:$0xff] %vm374_vm1, %v608_v59  ;;  %v1084_v45 = vld [vmem:[#allocation2 + $0xb2] sm:$0xff] }
  0xd4   : > { %618 = vst.msk [vmem:[#allocation2 + $0x69] sm:$0xff] %vm374_vm1, %v601_v37  ;;  %v553_v60 = vpop.f32.mrf.mxu2  ;;  %v790_v13 = vmax.f32 %v774_v12, 0.0  ;;  %v4546_v12 = vld [vmem:[#allocation2 + $0x30] sm:$0xff] }
  0xd5   : > { %v574_v61 = vmul.f32 %v4336_v19, %v553_v60 }
  0xd6   : > { %3655 = vrot.lane.b32.xlu2 %v4436_v24, %s4150_s18  ;;  %3665 = vrot.lane.b32.xlu1 %v3649_v23, %s5263_s12  ;;  %807 = vst.msk [vmem:[#allocation2 + $0xe1] sm:$0xff] %vm374_vm1, %v790_v13  ;;  %v4548_v13 = vld [vmem:[#allocation2 + $0x38] sm:$0xff] }
  0xd7   : > { %3675 = vrot.lane.b32.xlu0 %v3649_v23, %s5263_s12  ;;  %v593_v2 = vadd.f32 %v4345_v20, %v574_v61  ;;  %v3598_v23 = vunpack.i.h.bf16 %v3596_v17  ;;  %v722_v32 = vpop.f32.mrf.mxu1  ;;  %v1446_v42 = vld [vmem:[#allocation2 + $0xa9] sm:$0xff] }
  0xd8   : > { %v759_v33 = vmul.f32 %v4336_v19, %v722_v32  ;;  %v1083_v44 = vld [vmem:[#allocation2 + $0xaa] sm:$0xff]  ;;  %v3764_v47 = vpack.i.bf16 %v1447_v43, %v1446_v42 }
  0xd9   : > { %v609_v6 = vmax.f32 %v593_v2, 0.0  ;;  %v999_v29 = vsel %vm374_vm1, %v823_v16, %v3598_v23 }
  0xda   : > { %v1016_v35 = vsel %vm1014_vm5, %v999_v29, %v3608_v27  ;;  %v775_v37 = vadd.f32 %v4345_v20, %v759_v33  ;;  %v1448_v57 = vld [vmem:[#allocation2 + $0xc1] sm:$0xff] }
  0xdb   : > { %v1441_v50 = vld [vmem:[#allocation2 + $0x69] sm:$0xff]  ;;  %626 = vst.msk [vmem:[#allocation2 + $0xc9] sm:$0xff] %vm374_vm1, %v609_v6 }
  0xdc   : > { %v1077_v51 = vld [vmem:[#allocation2 + $0x62] sm:$0xff]  ;;  %v1078_v52 = vld [vmem:[#allocation2 + $0x6a] sm:$0xff]  ;;  %v3679_v54 = vpack.i.bf16 %v1441_v50, %v1440_v48  ;;  %v791_v38 = vmax.f32 %v775_v37, 0.0  ;;  %v4523_v48 = vpack.i.bf16 %v1084_v45, %v1083_v44 }
  0xdd   : > { %v3714_v55 = vpack.i.bf16 %v1078_v52, %v1077_v51  ;;  %v2257_v43 = vld [vmem:[#allocation2 + $0xe2] sm:$0xff] }
  0xde   : > { %3660 = vrot.lane.b32.xlu2 %v4413_v63, %s4150_s18  ;;  %3680 = vrot.lane.b32.xlu1 %v3679_v54, %s5263_s12  ;;  %v757_v63 = vmul.f32 %v4336_v19, %v717_v62  ;;  %808 = vst.msk [vmem:[#allocation2 + $0xf1] sm:$0xff] %vm374_vm1, %v791_v38  ;;  %v1451_v38 = vld [vmem:[#allocation2 + $0xe1] sm:$0xff] }
  0xdf   : > { %3715 = vrot.lane.b32.xlu0 %v3714_v55, %s4150_s18  ;;  %v724_v39 = vpop.f32.mrf.mxu1 }
  0xe0   : > { %v773_v5 = vadd.f32 %v4345_v20, %v757_v63  ;;  %v760_v40 = vmul.f32 %v4336_v19, %v724_v39 }
  0xe2   : > { %v789_v8 = vmax.f32 %v773_v5, 0.0  ;;  %v776_v41 = vadd.f32 %v4345_v20, %v760_v40  ;;  %v1449_v58 = vld [vmem:[#allocation2 + $0xc9] sm:$0xff] }
  0xe3   : > { %v1085_v59 = vld [vmem:[#allocation2 + $0xc2] sm:$0xff]  ;;  %v1086_v60 = vld [vmem:[#allocation2 + $0xca] sm:$0xff]  ;;  %v3799_v62 = vpack.i.bf16 %v1449_v58, %v1448_v57 }
  0xe4   : > { %806 = vst.msk [vmem:[#allocation2 + $0xd9] sm:$0xff] %vm374_vm1, %v789_v8  ;;  %v792_v46 = vmax.f32 %v776_v41, 0.0  ;;  %v4539_v63 = vpack.i.bf16 %v1086_v60, %v1085_v59  ;;  %v1039_v8 = vld [vmem:[#allocation2 + $0x18] sm:$0xff] }
  0xe6   : > { %3685 = vrot.lane.b32.xlu2 %v3714_v55, %s4150_s18  ;;  %3695 = vrot.lane.b32.xlu1 %v3679_v54, %s5263_s12  ;;  %809 = vst.msk [vmem:[#allocation2 + $0xf9] sm:$0xff] %vm374_vm1, %v792_v46 }
  0xe7   : > { %3720 = vrot.lane.b32.xlu0 %v3679_v54, %s5263_s12  ;;  %v727_v49 = vpop.f32.mrf.mxu1 }
  0xe8   : > { %v761_v50 = vmul.f32 %v4336_v19, %v727_v49 }
  0xea   : > { %v777_v51 = vadd.f32 %v4345_v20, %v761_v50 }
  0xeb   : > { %v1450_v37 = vld [vmem:[#allocation2 + $0xd9] sm:$0xff] }
  0xec   : > { %v793_v52 = vmax.f32 %v777_v51, 0.0  ;;  %v2256_v42 = vld [vmem:[#allocation2 + $0xda] sm:$0xff] }
  0xed   : > { %v4574_v51 = vpack.i.bf16 %v2257_v43, %v2256_v42 }
  0xee   : > { %3690 = vrot.lane.b32.xlu2 %v4436_v24, %s4150_s18  ;;  %3700 = vrot.lane.b32.xlu1 %v3699_v7, %s5263_s12  ;;  %v3597_v24 = vunpack.i.l.bf16 %v3596_v17  ;;  %810 = vst.msk [vmem:[#allocation2 + $0x109] sm:$0xff] %vm374_vm1, %v793_v52 }
  0xef   : > { %3725 = vrot.lane.b32.xlu0 %v3724_v9, %s4150_s18  ;;  %v729_v53 = vpop.f32.mrf.mxu1 }
  0xf0   : > { %v998_v30 = vsel %vm374_vm1, %v822_v18, %v3597_v24  ;;  %v762_v54 = vmul.f32 %v4336_v19, %v729_v53  ;;  %v737_v53 = vpop.f32.mrf.mxu3 }
  0xf1   : > { %v1015_v34 = vsel %vm1014_vm5, %v998_v30, %v3607_v28 }
  0xf2   : > { %v1031_v36 = vpack.c.bf16 %v1016_v35, %v1015_v34  ;;  %v778_v56 = vadd.f32 %v4345_v20, %v762_v54  ;;  %v765_v54 = vmul.f32 %v4336_v19, %v737_v53 }
  0xf4   : > { %3351 = vmatmul.msk.bf16.vlgmr.msrb.gmra.mxu3 %vm1260_vm6, %v1031_v36  ;;  %v794_v61 = vmax.f32 %v778_v56, 0.0  ;;  %v781_v60 = vadd.f32 %v4345_v20, %v765_v54 }
  0xf6   : > { %3705 = vrot.lane.b32.xlu2 %v3724_v9, %s4150_s18  ;;  %3710 = vrot.lane.b32.xlu1 %v3699_v7, %s5263_s12  ;;  %811 = vst.msk [vmem:[#allocation2 + $0x111] sm:$0xff] %vm374_vm1, %v794_v61 }
  0xf7   : > { %3745 = vrot.lane.b32.xlu0 %v3699_v7, %s5263_s12  ;;  %v732_v0 = vpop.f32.mrf.mxu1 }
  0xf8   : > { %v763_v3 = vmul.f32 %v4336_v19, %v732_v0  ;;  %v797_v0 = vmax.f32 %v781_v60, 0.0 }
  0xfa   : > { %v779_v17 = vadd.f32 %v4345_v20, %v763_v3  ;;  %814 = vst.msk [vmem:[#allocation2 + $0x139] sm:$0xff] %vm374_vm1, %v797_v0 }
  0xfc   : > { %v795_v30 = vmax.f32 %v779_v17, 0.0 }
  0xfd   : > { %v2260_v0 = vld [vmem:[#allocation2 + $0x10a] sm:$0xff] }
  0xfe   : > { %3730 = vrot.lane.b32.xlu1 %v3729_v25, %s5263_s12  ;;  %3735 = vrot.lane.b32.xlu2 %v3714_v55, %s4150_s18  ;;  %812 = vst.msk [vmem:[#allocation2 + $0x121] sm:$0xff] %vm374_vm1, %v795_v30 }
  0xff   : > { %3760 = vrot.lane.b32.xlu0 %v3759_v31, %s4150_s18 }
 0x106   : > { %3750 = vrot.lane.b32.xlu1 %v3729_v25, %s5263_s12  ;;  %3740 = vrot.lane.b32.xlu2 %v3759_v31, %s4150_s18 }
 0x107   : > { %3775 = vrot.lane.b32.xlu0 %v3729_v25, %s5263_s12 }
 0x10e   : > { %3765 = vrot.lane.b32.xlu1 %v3764_v47, %s5263_s12  ;;  %3755 = vrot.lane.b32.xlu2 %v3724_v9, %s4150_s18 }
 0x10f   : > { %3790 = vrot.lane.b32.xlu0 %v4523_v48, %s4150_s18 }
 0x116   : > { %3780 = vrot.lane.b32.xlu1 %v3764_v47, %s5263_s12  ;;  %3770 = vrot.lane.b32.xlu2 %v4523_v48, %s4150_s18 }
 0x117   : > { %3795 = vrot.lane.b32.xlu0 %v3764_v47, %s5263_s12  ;;  %v3819_v47 = vpack.i.bf16 %v1451_v38, %v1450_v37  ;;  %v1422_v38 = vld [vmem:[#allocation2 + $0x48] sm:$0xff] }
 0x118   : > { %v3621_v55 = vpop.permute.xlu2 %3620 }
 0x119   : > { %v3623_v1 = vunpack.i.h.bf16 %v3621_v55  ;;  %v3622_v2 = vunpack.i.l.bf16 %v3621_v55 }
 0x11b   : > { %v1596_v18 = vsel %vm374_vm1, %v4546_v12, %v3622_v2  ;;  %v1597_v21 = vsel %vm374_vm1, %v4548_v13, %v3623_v1 }
 0x11e   : > { %3800 = vrot.lane.b32.xlu1 %v3799_v62, %s5263_s12  ;;  %3785 = vrot.lane.b32.xlu2 %v3759_v31, %s4150_s18  ;;  %v734_v31 = vpop.f32.mrf.mxu1 }
 0x11f   : > { %3835 = vrot.lane.b32.xlu0 %v4539_v63, %s4150_s18  ;;  %v764_v32 = vmul.f32 %v4336_v19, %v734_v31 }
 0x120   : > { %v3611_v4 = vpop.permute.xlu1 %3610  ;;  %v3626_v11 = vpop.permute.xlu2 %3625 }
 0x121   : > { %v3601_v5 = vpop.permute.xlu0 %3600  ;;  %v3613_v6 = vunpack.i.h.bf16 %v3611_v4  ;;  %v3612_v7 = vunpack.i.l.bf16 %v3611_v4  ;;  %v3628_v15 = vunpack.i.h.bf16 %v3626_v11  ;;  %v3627_v16 = vunpack.i.l.bf16 %v3626_v11  ;;  %v2603_v11 = vld [vmem:[#allocation2 + $0xf1] sm:$0xff] }
 0x122   : > { %v3603_v9 = vunpack.i.h.bf16 %v3601_v5  ;;  %v3602_v10 = vunpack.i.l.bf16 %v3601_v5  ;;  %v780_v39 = vadd.f32 %v4345_v20, %v764_v32  ;;  %v739_v5 = vpop.f32.mrf.mxu3 }
 0x123   : > { %v1612_v24 = vsel %vm1014_vm5, %v1596_v18, %v3627_v16  ;;  %v1613_v25 = vsel %vm1014_vm5, %v1597_v21, %v3628_v15  ;;  %v2258_v18 = vld [vmem:[#allocation2 + $0xf2] sm:$0xff]  ;;  %v2259_v21 = vld [vmem:[#allocation2 + $0xfa] sm:$0xff] }
 0x124   : > { %v1215_v22 = vsel %vm374_vm1, %v1039_v8, %v3602_v10  ;;  %v1216_v23 = vsel %vm374_vm1, %v1040_v14, %v3603_v9  ;;  %v1628_v28 = vpack.c.bf16 %v1613_v25, %v1612_v24  ;;  %v796_v46 = vmax.f32 %v780_v39, 0.0 }
 0x125   : > { %v1231_v26 = vsel %vm1014_vm5, %v1215_v22, %v3612_v7  ;;  %v1232_v27 = vsel %vm1014_vm5, %v1216_v23, %v3613_v6  ;;  %v766_v6 = vmul.f32 %v4336_v19, %v739_v5 }
 0x126   : > { %v1247_v29 = vpack.c.bf16 %v1232_v27, %v1231_v26  ;;  %3815 = vrot.lane.b32.xlu1 %v3799_v62, %s5263_s12  ;;  %3805 = vrot.lane.b32.xlu2 %v4539_v63, %s4150_s18  ;;  %813 = vst.msk [vmem:[#allocation2 + $0x129] sm:$0xff] %vm374_vm1, %v796_v46 }
 0x127   : > { %3363 = vmatmul.msk.bf16.vlgmr.msrb.gmra.mxu0 %vm1260_vm6, %v1628_v28  ;;  %3840 = vrot.lane.b32.xlu0 %v3799_v62, %s5263_s12  ;;  %v782_v15 = vadd.f32 %v4345_v20, %v766_v6  ;;  %v4605_v28 = vpack.i.bf16 %v2259_v21, %v2258_v18 }
 0x128   : > { %3339 = vmatmul.msk.bf16.vlgmr.msrb.gmra.mxu2 %vm1260_vm6, %v1247_v29  ;;  %v3631_v36 = vpop.permute.xlu2 %3630 }
 0x129   : > { %v3616_v33 = vpop.permute.xlu0 %3615  ;;  %v3633_v40 = vunpack.i.h.bf16 %v3631_v36  ;;  %v3632_v41 = vunpack.i.l.bf16 %v3631_v36  ;;  %v798_v24 = vmax.f32 %v782_v15, 0.0 }
 0x12a   : > { %v3618_v34 = vunpack.i.h.bf16 %v3616_v33  ;;  %v3617_v35 = vunpack.i.l.bf16 %v3616_v33 }
 0x12b   : > { %815 = vst.msk [vmem:[#allocation2 + $0x141] sm:$0xff] %vm374_vm1, %v798_v24 }
 0x12c   : > { %v1000_v44 = vsel %vm374_vm1, %v1039_v8, %v3617_v35  ;;  %v1001_v45 = vsel %vm374_vm1, %v1040_v14, %v3618_v34  ;;  %v2604_v14 = vld [vmem:[#allocation2 + $0xf9] sm:$0xff] }
 0x12d   : > { %v1017_v49 = vsel %vm1014_vm5, %v1000_v44, %v3632_v41  ;;  %v1018_v50 = vsel %vm1014_vm5, %v1001_v45, %v3633_v40  ;;  %v3849_v25 = vpack.i.bf16 %v2604_v14, %v2603_v11 }
 0x12e   : > { %v1032_v52 = vpack.c.bf16 %v1018_v50, %v1017_v49  ;;  %3820 = vrot.lane.b32.xlu1 %v3819_v47, %s5263_s12  ;;  %3810 = vrot.lane.b32.xlu2 %v4523_v48, %s4150_s18  ;;  %v2605_v50 = vld [vmem:[#allocation2 + $0x109] sm:$0xff] }
 0x12f   : > { %3845 = vrot.lane.b32.xlu0 %v4574_v51, %s4150_s18 }
 0x130   : > { %3352 = vmatmul.msk.bf16.gmra.mxu3 %vm1260_vm6, %v1032_v52  ;;  %v3636_v58 = vpop.permute.xlu1 %3635  ;;  %v3656_v59 = vpop.permute.xlu2 %3655  ;;  %v2606_v52 = vld [vmem:[#allocation2 + $0x111] sm:$0xff] }
 0x131   : > { %v3641_v55 = vpop.permute.xlu0 %3640  ;;  %v3638_v61 = vunpack.i.h.bf16 %v3636_v58  ;;  %v3637_v62 = vunpack.i.l.bf16 %v3636_v58  ;;  %v3658_v36 = vunpack.i.h.bf16 %v3656_v59  ;;  %v3657_v37 = vunpack.i.l.bf16 %v3656_v59 }
 0x132   : > { %v3643_v56 = vunpack.i.h.bf16 %v3641_v55  ;;  %v3642_v57 = vunpack.i.l.bf16 %v3641_v55 }
 0x133   : > { %v1217_v48 = vsel %vm374_vm1, %v4546_v12, %v3637_v62  ;;  %v1218_v1 = vsel %vm374_vm1, %v4548_v13, %v3638_v61 }
 0x134   : > { %v1233_v2 = vsel %vm1014_vm5, %v1217_v48, %v3642_v57  ;;  %v1234_v3 = vsel %vm1014_vm5, %v1218_v1, %v3643_v56  ;;  %v2261_v48 = vld [vmem:[#allocation2 + $0x112] sm:$0xff] }
 0x135   : > { %v1248_v4 = vpack.c.bf16 %v1234_v3, %v1233_v2  ;;  %v3884_v3 = vpack.i.bf16 %v2606_v52, %v2605_v50  ;;  %v2262_v50 = vld [vmem:[#allocation2 + $0x122] sm:$0xff]  ;;  %v2263_v52 = vld [vmem:[#allocation2 + $0x12a] sm:$0xff] }
 0x136   : > { %3830 = vrot.lane.b32.xlu1 %v3819_v47, %s5263_s12  ;;  %3825 = vrot.lane.b32.xlu2 %v4574_v51, %s4150_s18 }
 0x137   : > { %3865 = vrot.lane.b32.xlu0 %v3819_v47, %s5263_s12 }
 0x138   : > { %3340 = vmatmul.msk.bf16.gmra.mxu2 %vm1260_vm6, %v1248_v4  ;;  %v3661_v10 = vpop.permute.xlu2 %3660 }
 0x139   : > { %v3646_v7 = vpop.permute.xlu0 %3645  ;;  %v3663_v16 = vunpack.i.h.bf16 %v3661_v10  ;;  %v3662_v17 = vunpack.i.l.bf16 %v3661_v10 }
 0x13a   : > { %v3648_v8 = vunpack.i.h.bf16 %v3646_v7  ;;  %v3647_v9 = vunpack.i.l.bf16 %v3646_v7 }
 0x13c   : > { %v1002_v22 = vsel %vm374_vm1, %v4546_v12, %v3647_v9  ;;  %v1003_v23 = vsel %vm374_vm1, %v4548_v13, %v3648_v8  ;;  %v742_v12 = vpop.f32.mrf.mxu3  ;;  %v4636_v9 = vpack.i.bf16 %v2261_v48, %v2260_v0 }
 0x13d   : > { %v1019_v26 = vsel %vm1014_vm5, %v1002_v22, %v3662_v17  ;;  %v1020_v27 = vsel %vm1014_vm5, %v1003_v23, %v3663_v16  ;;  %v767_v13 = vmul.f32 %v4336_v19, %v742_v12 }
 0x13e   : > { %v1033_v29 = vpack.c.bf16 %v1020_v27, %v1019_v26  ;;  %3850 = vrot.lane.b32.xlu1 %v3849_v25, %s5263_s12  ;;  %3855 = vrot.lane.b32.xlu2 %v4539_v63, %s4150_s18  ;;  %v1423_v63 = vld [vmem:[#allocation2 + $0x50] sm:$0xff]  ;;  %v1424_v27 = vld [vmem:[#allocation2 + $0x60] sm:$0xff] }
 0x13f   : > { %3880 = vrot.lane.b32.xlu0 %v4605_v28, %s4150_s18  ;;  %v783_v35 = vadd.f32 %v4345_v20, %v767_v13 }
 0x140   : > { %3353 = vmatmul.msk.bf16.gmra.mxu3 %vm1260_vm6, %v1033_v29  ;;  %v3651_v30 = vpop.permute.xlu1 %3650  ;;  %v4615_v34 = vpop.permute.xlu2 %3685  ;;  %v1425_v29 = vld [vmem:[#allocation2 + $0x68] sm:$0xff] }
 0x141   : > { %v3653_v31 = vunpack.i.h.bf16 %v3651_v30  ;;  %v3652_v32 = vunpack.i.l.bf16 %v3651_v30  ;;  %v3671_v33 = vpop.permute.xlu0 %3670  ;;  %v799_v41 = vmax.f32 %v783_v35, 0.0  ;;  %v3687_v26 = vunpack.i.l.bf16 %v4615_v34 }
 0x142   : > { %v3673_v47 = vunpack.i.h.bf16 %v3671_v33  ;;  %v3672_v53 = vunpack.i.l.bf16 %v3671_v33 }
 0x143   : > { %v1598_v39 = vsel %vm374_vm1, %v1422_v38, %v3652_v32  ;;  %v1599_v40 = vsel %vm374_vm1, %v1423_v63, %v3653_v31  ;;  %816 = vst.msk [vmem:[#allocation2 + $0x151] sm:$0xff] %vm374_vm1, %v799_v41 }
 0x144   : > { %v1614_v42 = vsel %vm1014_vm5, %v1598_v39, %v3657_v37  ;;  %v1615_v43 = vsel %vm1014_vm5, %v1599_v40, %v3658_v36  ;;  %v744_v45 = vpop.f32.mrf.mxu3 }
 0x145   : > { %v1629_v44 = vpack.c.bf16 %v1615_v43, %v1614_v42  ;;  %v768_v46 = vmul.f32 %v4336_v19, %v744_v45 }
 0x146   : > { %3870 = vrot.lane.b32.xlu1 %v3849_v25, %s5263_s12  ;;  %3860 = vrot.lane.b32.xlu2 %v4605_v28, %s4150_s18 }
 0x147   : > { %3895 = vrot.lane.b32.xlu0 %v3849_v25, %s5263_s12  ;;  %3364 = vmatmul.msk.bf16.gmra.mxu0 %vm1260_vm6, %v1629_v44  ;;  %v784_v58 = vadd.f32 %v4345_v20, %v768_v46 }
 0x148   : > { %v3666_v49 = vpop.permute.xlu1 %3665  ;;  %v3691_v57 = vpop.permute.xlu2 %3690 }
 0x149   : > { %v3668_v54 = vunpack.i.h.bf16 %v3666_v49  ;;  %v3667_v55 = vunpack.i.l.bf16 %v3666_v49  ;;  %v3676_v56 = vpop.permute.xlu0 %3675  ;;  %v3693_v61 = vunpack.i.h.bf16 %v3691_v57  ;;  %v3692_v62 = vunpack.i.l.bf16 %v3691_v57 }
 0x14a   : > { %v3678_v59 = vunpack.i.h.bf16 %v3676_v56  ;;  %v3677_v60 = vunpack.i.l.bf16 %v3676_v56  ;;  %v800_v4 = vmax.f32 %v784_v58, 0.0 }
 0x14b   : > { %v1219_v1 = vsel %vm374_vm1, %v1422_v38, %v3667_v55  ;;  %v1220_v2 = vsel %vm374_vm1, %v1423_v63, %v3668_v54 }
 0x14c   : > { %v1004_v5 = vsel %vm374_vm1, %v1422_v38, %v3677_v60  ;;  %v1005_v6 = vsel %vm374_vm1, %v1423_v63, %v3678_v59  ;;  %v1235_v7 = vsel %vm1014_vm5, %v1219_v1, %v3672_v53  ;;  %v1236_v8 = vsel %vm1014_vm5, %v1220_v2, %v3673_v47  ;;  %817 = vst.msk [vmem:[#allocation2 + $0x159] sm:$0xff] %vm374_vm1, %v800_v4  ;;  %v747_v16 = vpop.f32.mrf.mxu3  ;;  %v2607_v38 = vld [vmem:[#allocation2 + $0x121] sm:$0xff]  ;;  %v2608_v63 = vld [vmem:[#allocation2 + $0x129] sm:$0xff] }
 0x14d   : > { %v1249_v10 = vpack.c.bf16 %v1236_v8, %v1235_v7  ;;  %v1021_v11 = vsel %vm1014_vm5, %v1004_v5, %v3692_v62  ;;  %v1022_v14 = vsel %vm1014_vm5, %v1005_v6, %v3693_v61  ;;  %v769_v17 = vmul.f32 %v4336_v19, %v747_v16 }
 0x14e   : > { %3885 = vrot.lane.b32.xlu1 %v3884_v3, %s5263_s12  ;;  %3875 = vrot.lane.b32.xlu2 %v4574_v51, %s4150_s18  ;;  %v1034_v15 = vpack.c.bf16 %v1022_v14, %v1021_v11  ;;  %v3688_v51 = vunpack.i.h.bf16 %v4615_v34  ;;  %v3914_v55 = vpack.i.bf16 %v2608_v63, %v2607_v38  ;;  %v4672_v61 = vpack.i.bf16 %v2263_v52, %v2262_v50  ;;  %v1426_v14 = vld [vmem:[#allocation2 + $0x78] sm:$0xff] }
 0x14f   : > { %3910 = vrot.lane.b32.xlu0 %v4636_v9, %s4150_s18  ;;  %3341 = vmatmul.msk.bf16.gmra.mxu2 %vm1260_vm6, %v1249_v10  ;;  %v785_v25 = vadd.f32 %v4345_v20, %v769_v17 }
 0x150   : > { %3354 = vmatmul.msk.bf16.gmra.mxu3 %vm1260_vm6, %v1034_v15  ;;  %v3681_v18 = vpop.permute.xlu1 %3680  ;;  %v4649_v21 = vpop.permute.xlu2 %3705  ;;  %v1427_v15 = vld [vmem:[#allocation2 + $0x80] sm:$0xff] }
 0x151   : > { %v3683_v22 = vunpack.i.h.bf16 %v3681_v18  ;;  %v3682_v23 = vunpack.i.l.bf16 %v3681_v18  ;;  %v3716_v24 = vpop.permute.xlu0 %3715  ;;  %v801_v30 = vmax.f32 %v785_v25, 0.0  ;;  %v3707_v11 = vunpack.i.l.bf16 %v4649_v21  ;;  %v367_v25 = vld [vmem:[%s5255_s3] sm:$0x3] }
 0x152   : > { %v3718_v36 = vunpack.i.h.bf16 %v3716_v24  ;;  %v3717_v39 = vunpack.i.l.bf16 %v3716_v24 }
 0x153   : > { %v1600_v12 = vsel %vm374_vm1, %v1424_v27, %v3682_v23  ;;  %v1601_v13 = vsel %vm374_vm1, %v1425_v29, %v3683_v22  ;;  %818 = vst.msk [vmem:[#allocation2 + $0x169] sm:$0xff] %vm374_vm1, %v801_v30 }
 0x154   : > { %v1616_v31 = vsel %vm1014_vm5, %v1600_v12, %v3687_v26  ;;  %v1617_v32 = vsel %vm1014_vm5, %v1601_v13, %v3688_v51  ;;  %v749_v34 = vpop.f32.mrf.mxu3  ;;  %v1821_v12 = vsel %vm1819_vm7, %v367_v25, 0 }
 0x155   : > { %v1630_v33 = vpack.c.bf16 %v1617_v32, %v1616_v31  ;;  %v770_v35 = vmul.f32 %v4336_v19, %v749_v34  ;;  %v4081_v34 = vld [vmem:[%s5257_s5] ss:$0 sm:$0xff]  ;;  %1830 = vmatpush.bf16.msrb.mxu1 %v1821_v12 }
 0x156   : > { %3900 = vrot.lane.b32.xlu1 %v3884_v3, %s5263_s12  ;;  %3890 = vrot.lane.b32.xlu2 %v4636_v9, %s4150_s18 }
 0x157   : > { %3925 = vrot.lane.b32.xlu0 %v3884_v3, %s5263_s12  ;;  %3365 = vmatmul.msk.bf16.gmra.mxu0 %vm1260_vm6, %v1630_v33  ;;  %v786_v44 = vadd.f32 %v4345_v20, %v770_v35 }
 0x158   : > { %v3696_v37 = vpop.permute.xlu1 %3695  ;;  %v3736_v42 = vpop.permute.xlu2 %3735 }
 0x159   : > { %v3698_v40 = vunpack.i.h.bf16 %v3696_v37  ;;  %v3697_v41 = vunpack.i.l.bf16 %v3696_v37  ;;  %v3721_v43 = vpop.permute.xlu0 %3720  ;;  %v3738_v45 = vunpack.i.h.bf16 %v3736_v42  ;;  %v3737_v46 = vunpack.i.l.bf16 %v3736_v42  ;;  %2979 = vmatpush.bf16.msra.mxu1 %v1821_v12 }
 0x15a   : > { %v3723_v47 = vunpack.i.h.bf16 %v3721_v43  ;;  %v3722_v49 = vunpack.i.l.bf16 %v3721_v43  ;;  %v802_v56 = vmax.f32 %v786_v44, 0.0 }
 0x15b   : > { %v1221_v53 = vsel %vm374_vm1, %v1424_v27, %v3697_v41  ;;  %v1222_v54 = vsel %vm374_vm1, %v1425_v29, %v3698_v40  ;;  %v2265_v40 = vld [vmem:[#allocation2 + $0x142] sm:$0xff] }
 0x15c   : > { %v1006_v57 = vsel %vm374_vm1, %v1424_v27, %v3722_v49  ;;  %v1007_v58 = vsel %vm374_vm1, %v1425_v29, %v3723_v47  ;;  %v1237_v59 = vsel %vm1014_vm5, %v1221_v53, %v3717_v39  ;;  %v1238_v60 = vsel %vm1014_vm5, %v1222_v54, %v3718_v36  ;;  %819 = vst.msk [vmem:[#allocation2 + $0x171] sm:$0xff] %vm374_vm1, %v802_v56  ;;  %v752_v2 = vpop.f32.mrf.mxu3  ;;  %v2609_v27 = vld [vmem:[#allocation2 + $0x139] sm:$0xff]  ;;  %v2610_v29 = vld [vmem:[#allocation2 + $0x141] sm:$0xff] }
 0x15d   : > { %v1250_v62 = vpack.c.bf16 %v1238_v60, %v1237_v59  ;;  %v1023_v0 = vsel %vm1014_vm5, %v1006_v57, %v3737_v46  ;;  %v1024_v48 = vsel %vm1014_vm5, %v1007_v58, %v3738_v45  ;;  %v771_v3 = vmul.f32 %v4336_v19, %v752_v2  ;;  %v2264_v39 = vld [vmem:[#allocation2 + $0x13a] sm:$0xff] }
 0x15e   : > { %3915 = vrot.lane.b32.xlu1 %v3914_v55, %s5263_s12  ;;  %3905 = vrot.lane.b32.xlu2 %v4605_v28, %s4150_s18  ;;  %v1035_v1 = vpack.c.bf16 %v1024_v48, %v1023_v0  ;;  %v3708_v28 = vunpack.i.h.bf16 %v4649_v21  ;;  %v4080_v21 = vld [vmem:[%s5256_s4] ss:$0 sm:$0xff]  ;;  %v3944_v43 = vpack.i.bf16 %v2610_v29, %v2609_v27  ;;  %v4715_v50 = vpack.i.bf16 %v2265_v40, %v2264_v39  ;;  %v1428_v48 = vld [vmem:[#allocation2 + $0x90] sm:$0xff]  ;;  %v1430_v39 = vld [vmem:[#allocation2 + $0xa8] sm:$0xff] }
 0x15f   : > { %3940 = vrot.lane.b32.xlu0 %v4672_v61, %s4150_s18  ;;  %3342 = vmatmul.msk.bf16.gmra.mxu2 %vm1260_vm6, %v1250_v62  ;;  %v787_v10 = vadd.f32 %v4345_v20, %v771_v3  ;;  %v1431_v40 = vld [vmem:[#allocation2 + $0xb0] sm:$0xff] }
 0x160   : > { %3355 = vmatmul.msk.bf16.gmra.mxu3 %vm1260_vm6, %v1035_v1  ;;  %v3701_v4 = vpop.permute.xlu1 %3700  ;;  %v4685_v7 = vpop.permute.xlu2 %3740  ;;  %v1429_v1 = vld [vmem:[#allocation2 + $0x98] sm:$0xff] }
 0x161   : > { %v3703_v5 = vunpack.i.h.bf16 %v3701_v4  ;;  %v3702_v6 = vunpack.i.l.bf16 %v3701_v4  ;;  %v3726_v8 = vpop.permute.xlu0 %3725  ;;  %v803_v17 = vmax.f32 %v787_v10, 0.0  ;;  %v3743_v62 = vunpack.i.h.bf16 %v4685_v7 }
 0x162   : > { %v3728_v51 = vunpack.i.h.bf16 %v3726_v8  ;;  %v3727_v13 = vunpack.i.l.bf16 %v3726_v8  ;;  %v3742_v0 = vunpack.i.l.bf16 %v4685_v7  ;;  %v2611_v7 = vld [vmem:[#allocation2 + $0x151] sm:$0xff]  ;;  %v2612_v8 = vld [vmem:[#allocation2 + $0x159] sm:$0xff] }
 0x163   : > { %v1603_v16 = vsel %vm374_vm1, %v1427_v15, %v3703_v5  ;;  %v1602_v19 = vsel %vm374_vm1, %v1426_v14, %v3702_v6  ;;  %820 = vst.msk [vmem:[#allocation2 + $0x181] sm:$0xff] %vm374_vm1, %v803_v17  ;;  %v3974_v25 = vpack.i.bf16 %v2612_v8, %v2611_v7 }
 0x164   : > { %v1618_v18 = vsel %vm1014_vm5, %v1602_v19, %v3707_v11  ;;  %v1619_v22 = vsel %vm1014_vm5, %v1603_v16, %v3708_v28  ;;  %v754_v20 = vpop.f32.mrf.mxu3 }
 0x165   : > { %v1631_v23 = vpack.c.bf16 %v1619_v22, %v1618_v18  ;;  %v772_v24 = vmul.f32 %v4080_v21, %v754_v20  ;;  %v2267_v20 = vld [vmem:[#allocation2 + $0x15a] sm:$0xff] }
 0x166   : > { %3930 = vrot.lane.b32.xlu1 %v3914_v55, %s5263_s12  ;;  %3920 = vrot.lane.b32.xlu2 %v4672_v61, %s4150_s18 }
 0x167   : > { %3955 = vrot.lane.b32.xlu0 %v3914_v55, %s5263_s12  ;;  %3366 = vmatmul.msk.bf16.gmra.mxu0 %vm1260_vm6, %v1631_v23  ;;  %v788_v35 = vadd.f32 %v4081_v34, %v772_v24  ;;  %v2266_v23 = vld [vmem:[#allocation2 + $0x152] sm:$0xff] }
 0x168   : > { %v3711_v26 = vpop.permute.xlu1 %3710  ;;  %v3756_v32 = vpop.permute.xlu2 %3755  ;;  %v4744_v12 = vpack.i.bf16 %v2267_v20, %v2266_v23  ;;  %v1433_v23 = vld [vmem:[#allocation2 + $0xc8] sm:$0xff] }
 0x169   : > { %v3713_v30 = vunpack.i.h.bf16 %v3711_v26  ;;  %v3712_v31 = vunpack.i.l.bf16 %v3711_v26  ;;  %v3746_v33 = vpop.permute.xlu0 %3745  ;;  %v3758_v36 = vunpack.i.h.bf16 %v3756_v32  ;;  %v3757_v37 = vunpack.i.l.bf16 %v3756_v32 }
 0x16a   : > { %v3748_v38 = vunpack.i.h.bf16 %v3746_v33  ;;  %v3747_v63 = vunpack.i.l.bf16 %v3746_v33  ;;  %v804_v44 = vmax.f32 %v788_v35, 0.0 }
 0x16b   : > { %v1224_v41 = vsel %vm374_vm1, %v1427_v15, %v3713_v30  ;;  %v1223_v42 = vsel %vm374_vm1, %v1426_v14, %v3712_v31 }
 0x16c   : > { %v1009_v45 = vsel %vm374_vm1, %v1427_v15, %v3748_v38  ;;  %v1008_v46 = vsel %vm374_vm1, %v1426_v14, %v3747_v63  ;;  %v1239_v47 = vsel %vm1014_vm5, %v1223_v42, %v3727_v13  ;;  %v1240_v49 = vsel %vm1014_vm5, %v1224_v41, %v3728_v51  ;;  %821 = vst.msk [vmem:[#allocation2 + $0x189] sm:$0xff] %vm374_vm1, %v804_v44 }
 0x16d   : > { %v1251_v52 = vpack.c.bf16 %v1240_v49, %v1239_v47  ;;  %v1025_v53 = vsel %vm1014_vm5, %v1008_v46, %v3757_v37  ;;  %v1026_v54 = vsel %vm1014_vm5, %v1009_v45, %v3758_v36  ;;  %v2613_v46 = vld [vmem:[#allocation2 + $0x169] sm:$0xff]  ;;  %v2614_v47 = vld [vmem:[#allocation2 + $0x171] sm:$0xff] }
 0x16e   : > { %3945 = vrot.lane.b32.xlu1 %v3944_v43, %s5263_s12  ;;  %3935 = vrot.lane.b32.xlu2 %v4636_v9, %s4150_s18  ;;  %v1036_v55 = vpack.c.bf16 %v1026_v54, %v1025_v53 }
 0x16f   : > { %3970 = vrot.lane.b32.xlu0 %v4715_v50, %s4150_s18  ;;  %3343 = vmatmul.msk.bf16.gmra.mxu2 %vm1260_vm6, %v1251_v52 }
 0x170   : > { %3356 = vmatmul.msk.bf16.gmra.mxu3 %vm1260_vm6, %v1036_v55  ;;  %v3731_v56 = vpop.permute.xlu1 %3730  ;;  %v3771_v59 = vpop.permute.xlu2 %3770 }
 0x171   : > { %v3733_v57 = vunpack.i.h.bf16 %v3731_v56  ;;  %v3732_v58 = vunpack.i.l.bf16 %v3731_v56  ;;  %v3761_v60 = vpop.permute.xlu0 %3760  ;;  %v3773_v38 = vunpack.i.h.bf16 %v3771_v59  ;;  %v3772_v63 = vunpack.i.l.bf16 %v3771_v59 }
 0x172   : > { %v3763_v10 = vunpack.i.h.bf16 %v3761_v60  ;;  %v3762_v28 = vunpack.i.l.bf16 %v3761_v60 }
 0x173   : > { %v1605_v9 = vsel %vm374_vm1, %v1429_v1, %v3733_v57  ;;  %v1604_v2 = vsel %vm374_vm1, %v1428_v48, %v3732_v58 }
 0x174   : > { %v1620_v3 = vsel %vm1014_vm5, %v1604_v2, %v3742_v0  ;;  %v1621_v4 = vsel %vm1014_vm5, %v1605_v9, %v3743_v62  ;;  %v2268_v62 = vld [vmem:[#allocation2 + $0x16a] sm:$0xff]  ;;  %v2269_v0 = vld [vmem:[#allocation2 + $0x172] sm:$0xff]  ;;  %v4004_v9 = vpack.i.bf16 %v2614_v47, %v2613_v46 }
 0x175   : > { %v1632_v5 = vpack.c.bf16 %v1621_v4, %v1620_v3 }
 0x176   : > { %3960 = vrot.lane.b32.xlu1 %v3944_v43, %s5263_s12  ;;  %3950 = vrot.lane.b32.xlu2 %v4715_v50, %s4150_s18 }
 0x177   : > { %3985 = vrot.lane.b32.xlu0 %v3944_v43, %s5263_s12  ;;  %3367 = vmatmul.msk.bf16.gmra.mxu0 %vm1260_vm6, %v1632_v5 }
 0x178   : > { %v3751_v6 = vpop.permute.xlu1 %3750  ;;  %v3786_v15 = vpop.permute.xlu2 %3785 }
 0x179   : > { %v3753_v11 = vunpack.i.h.bf16 %v3751_v6  ;;  %v3752_v14 = vunpack.i.l.bf16 %v3751_v6  ;;  %v3776_v16 = vpop.permute.xlu0 %3775  ;;  %v3788_v19 = vunpack.i.h.bf16 %v3786_v15  ;;  %v3787_v17 = vunpack.i.l.bf16 %v3786_v15 }
 0x17a   : > { %v3778_v18 = vunpack.i.h.bf16 %v3776_v16  ;;  %v3777_v22 = vunpack.i.l.bf16 %v3776_v16  ;;  %v4770_v6 = vpack.i.bf16 %v2269_v0, %v2268_v62  ;;  %v1434_v62 = vld [vmem:[#allocation2 + $0xd8] sm:$0xff]  ;;  %v1435_v0 = vld [vmem:[#allocation2 + $0xe0] sm:$0xff] }
 0x17b   : > { %v1226_v21 = vsel %vm374_vm1, %v1429_v1, %v3753_v11  ;;  %v1225_v24 = vsel %vm374_vm1, %v1428_v48, %v3752_v14 }
 0x17c   : > { %v1011_v51 = vsel %vm374_vm1, %v1429_v1, %v3778_v18  ;;  %v1010_v26 = vsel %vm374_vm1, %v1428_v48, %v3777_v22  ;;  %v1241_v27 = vsel %vm1014_vm5, %v1225_v24, %v3762_v28  ;;  %v1242_v29 = vsel %vm1014_vm5, %v1226_v21, %v3763_v10  ;;  %v1432_v22 = vld [vmem:[#allocation2 + $0xc0] sm:$0xff] }
 0x17d   : > { %v1252_v13 = vpack.c.bf16 %v1242_v29, %v1241_v27  ;;  %v1027_v30 = vsel %vm1014_vm5, %v1010_v26, %v3787_v17  ;;  %v1028_v31 = vsel %vm1014_vm5, %v1011_v51, %v3788_v19  ;;  %v2615_v26 = vld [vmem:[#allocation2 + $0x181] sm:$0xff]  ;;  %v2616_v27 = vld [vmem:[#allocation2 + $0x189] sm:$0xff] }
 0x17e   : > { %3975 = vrot.lane.b32.xlu1 %v3974_v25, %s5263_s12  ;;  %3965 = vrot.lane.b32.xlu2 %v4672_v61, %s4150_s18  ;;  %v1037_v32 = vpack.c.bf16 %v1028_v31, %v1027_v30 }
 0x17f   : > { %4000 = vrot.lane.b32.xlu0 %v4744_v12, %s4150_s18  ;;  %3344 = vmatmul.msk.bf16.gmra.mxu2 %vm1260_vm6, %v1252_v13 }
 0x180   : > { %3357 = vmatmul.msk.bf16.gmra.mxu3 %vm1260_vm6, %v1037_v32  ;;  %v3766_v33 = vpop.permute.xlu1 %3765  ;;  %v3806_v36 = vpop.permute.xlu2 %3805 }
 0x181   : > { %v3768_v34 = vunpack.i.h.bf16 %v3766_v33  ;;  %v3767_v35 = vunpack.i.l.bf16 %v3766_v33  ;;  %v3791_v37 = vpop.permute.xlu0 %3790  ;;  %v3808_v17 = vunpack.i.h.bf16 %v3806_v36  ;;  %v3807_v18 = vunpack.i.l.bf16 %v3806_v36 }
 0x182   : > { %v3793_v49 = vunpack.i.h.bf16 %v3791_v37  ;;  %v3792_v52 = vunpack.i.l.bf16 %v3791_v37 }
 0x183   : > { %v1607_v41 = vsel %vm374_vm1, %v1431_v40, %v3768_v34  ;;  %v1606_v61 = vsel %vm374_vm1, %v1430_v39, %v3767_v35 }
 0x184   : > { %v1622_v42 = vsel %vm1014_vm5, %v1606_v61, %v3772_v63  ;;  %v1623_v43 = vsel %vm1014_vm5, %v1607_v41, %v3773_v38  ;;  %v2270_v38 = vld [vmem:[#allocation2 + $0x182] sm:$0xff]  ;;  %v2271_v63 = vld [vmem:[#allocation2 + $0x18a] sm:$0xff]  ;;  %v4034_v41 = vpack.i.bf16 %v2616_v27, %v2615_v26 }
 0x185   : > { %v1633_v44 = vpack.c.bf16 %v1623_v43, %v1622_v42  ;;  %v4059_v47 = vpack.i.bf16 %v2271_v63, %v2270_v38 }
 0x186   : > { %3990 = vrot.lane.b32.xlu1 %v3974_v25, %s5263_s12  ;;  %3980 = vrot.lane.b32.xlu2 %v4744_v12, %s4150_s18 }
 0x187   : > { %4015 = vrot.lane.b32.xlu0 %v3974_v25, %s5263_s12  ;;  %3368 = vmatmul.msk.bf16.gmra.mxu0 %vm1260_vm6, %v1633_v44 }
 0x188   : > { %v3781_v45 = vpop.permute.xlu1 %3780  ;;  %v3811_v55 = vpop.permute.xlu2 %3810 }
 0x189   : > { %v3783_v53 = vunpack.i.h.bf16 %v3781_v45  ;;  %v3782_v54 = vunpack.i.l.bf16 %v3781_v45  ;;  %v3796_v56 = vpop.permute.xlu0 %3795  ;;  %v3813_v57 = vunpack.i.h.bf16 %v3811_v55  ;;  %v3812_v58 = vunpack.i.l.bf16 %v3811_v55 }
 0x18a   : > { %v3798_v59 = vunpack.i.h.bf16 %v3796_v56  ;;  %v3797_v60 = vunpack.i.l.bf16 %v3796_v56 }
 0x18b   : > { %v1228_v48 = vsel %vm374_vm1, %v1431_v40, %v3783_v53  ;;  %v1227_v1 = vsel %vm374_vm1, %v1430_v39, %v3782_v54  ;;  %v1379_v53 = vpop.f32.mrf.mxu3 }
 0x18c   : > { %v1013_v2 = vsel %vm374_vm1, %v1431_v40, %v3798_v59  ;;  %v1012_v3 = vsel %vm374_vm1, %v1430_v39, %v3797_v60  ;;  %v1243_v4 = vsel %vm1014_vm5, %v1227_v1, %v3792_v52  ;;  %v1244_v5 = vsel %vm1014_vm5, %v1228_v48, %v3793_v49 }
 0x18d   : > { %v1253_v7 = vpack.c.bf16 %v1244_v5, %v1243_v4  ;;  %v1029_v8 = vsel %vm1014_vm5, %v1012_v3, %v3812_v58  ;;  %v1030_v10 = vsel %vm1014_vm5, %v1013_v2, %v3813_v57  ;;  %v2617_v3 = vld [vmem:[#allocation2 + $0x199] sm:$0xff]  ;;  %v2618_v4 = vld [vmem:[#allocation2 + $0x1a1] sm:$0xff] }
 0x18e   : > { %4005 = vrot.lane.b32.xlu1 %v4004_v9, %s5263_s12  ;;  %3995 = vrot.lane.b32.xlu2 %v4715_v50, %s4150_s18  ;;  %v1038_v28 = vpack.c.bf16 %v1030_v10, %v1029_v8  ;;  %v4064_v8 = vpack.i.bf16 %v2618_v4, %v2617_v3 }
 0x18f   : > { %4030 = vrot.lane.b32.xlu0 %v4770_v6, %s4150_s18  ;;  %3345 = vmatmul.msk.bf16.gmra.mxu2 %vm1260_vm6, %v1253_v7 }
 0x190   : > { %3358 = vmatmul.msk.bf16.gmra.mxu3 %vm1260_vm6, %v1038_v28  ;;  %v3801_v11 = vpop.permute.xlu1 %3800  ;;  %v3826_v16 = vpop.permute.xlu2 %3825 }
 0x191   : > { %v3803_v14 = vunpack.i.h.bf16 %v3801_v11  ;;  %v3802_v15 = vunpack.i.l.bf16 %v3801_v11  ;;  %v3836_v19 = vpop.permute.xlu0 %3835  ;;  %v3828_v59 = vunpack.i.h.bf16 %v3826_v16  ;;  %v3827_v60 = vunpack.i.l.bf16 %v3826_v16 }
 0x192   : > { %v3838_v29 = vunpack.i.h.bf16 %v3836_v19  ;;  %v3837_v13 = vunpack.i.l.bf16 %v3836_v19 }
 0x193   : > { %v1609_v20 = vsel %vm374_vm1, %v1433_v23, %v3803_v14  ;;  %v1608_v50 = vsel %vm374_vm1, %v1432_v22, %v3802_v15  ;;  %v1381_v7 = vpop.f32.mrf.mxu3 }
 0x194   : > { %v1624_v21 = vsel %vm1014_vm5, %v1608_v50, %v3807_v18  ;;  %v1625_v24 = vsel %vm1014_vm5, %v1609_v20, %v3808_v17 }
 0x195   : > { %v1634_v25 = vpack.c.bf16 %v1625_v24, %v1624_v21 }
 0x196   : > { %4020 = vrot.lane.b32.xlu1 %v4004_v9, %s5263_s12  ;;  %4010 = vrot.lane.b32.xlu2 %v4770_v6, %s4150_s18 }
 0x197   : > { %4045 = vrot.lane.b32.xlu0 %v4004_v9, %s5263_s12  ;;  %3369 = vmatmul.msk.bf16.gmra.mxu0 %vm1260_vm6, %v1634_v25 }
 0x198   : > { %v3816_v51 = vpop.permute.xlu1 %3815  ;;  %v3856_v32 = vpop.permute.xlu2 %3855 }
 0x199   : > { %v3818_v30 = vunpack.i.h.bf16 %v3816_v51  ;;  %v3817_v31 = vunpack.i.l.bf16 %v3816_v51  ;;  %v3841_v33 = vpop.permute.xlu0 %3840  ;;  %v3858_v34 = vunpack.i.h.bf16 %v3856_v32  ;;  %v3857_v35 = vunpack.i.l.bf16 %v3856_v32  ;;  %v2633_v32 = vld [vmem:[#allocation2 + $0x19a] sm:$0xff] }
 0x19a   : > { %v3843_v36 = vunpack.i.h.bf16 %v3841_v33  ;;  %v3842_v37 = vunpack.i.l.bf16 %v3841_v33  ;;  %v2634_v33 = vld [vmem:[#allocation2 + $0x1a2] sm:$0xff] }
 0x19b   : > { %v1230_v39 = vsel %vm374_vm1, %v1433_v23, %v3818_v30  ;;  %v1229_v40 = vsel %vm374_vm1, %v1432_v22, %v3817_v31 }
 0x19c   : > { %v2185_v61 = vsel %vm374_vm1, %v1433_v23, %v3843_v36  ;;  %v2184_v42 = vsel %vm374_vm1, %v1432_v22, %v3842_v37  ;;  %v1245_v43 = vsel %vm1014_vm5, %v1229_v40, %v3837_v13  ;;  %v1246_v44 = vsel %vm1014_vm5, %v1230_v39, %v3838_v29 }
 0x19d   : > { %v2201_v45 = vsel %vm1014_vm5, %v2185_v61, %v3858_v34  ;;  %v2200_v46 = vsel %vm1014_vm5, %v2184_v42, %v3857_v35  ;;  %v1254_v49 = vpack.c.bf16 %v1246_v44, %v1245_v43  ;;  %v4828_v35 = vld [vmem:[%s5258_s6] ss:$0 sm:$0xff]  ;;  %v2588_v61 = vld [vmem:[#allocation2 + $0xf8] sm:$0xff]  ;;  %v4069_v43 = vpack.i.bf16 %v2634_v33, %v2633_v32 }
 0x19e   : > { %v2216_v52 = vpack.c.bf16 %v2201_v45, %v2200_v46  ;;  %4035 = vrot.lane.b32.xlu1 %v4034_v41, %s5263_s12  ;;  %4025 = vrot.lane.b32.xlu2 %v4744_v12, %s4150_s18 }
 0x19f   : > { %4060 = vrot.lane.b32.xlu0 %v4059_v47, %s4150_s18  ;;  %3346 = vmatmul.msk.bf16.gmra.mxu2 %vm1260_vm6, %v1254_v49  ;;  %v4841_v49 = vld [vmem:[%s5259_s7] ss:$0 sm:$0xff] }
 0x1a0   : > { %3387 = vmatmul.msk.bf16.vlgmr.msra.gmra.mxu3 %vm1260_vm6, %v2216_v52  ;;  %v3821_v54 = vpop.permute.xlu1 %3820  ;;  %v4804_v57 = vpop.permute.xlu2 %3860 }
 0x1a1   : > { %v3823_v55 = vunpack.i.h.bf16 %v3821_v54  ;;  %v3822_v56 = vunpack.i.l.bf16 %v3821_v54  ;;  %v3846_v58 = vpop.permute.xlu0 %3845  ;;  %v3862_v40 = vunpack.i.l.bf16 %v4804_v57 }
 0x1a2   : > { %v3848_v10 = vunpack.i.h.bf16 %v3846_v58  ;;  %v3847_v28 = vunpack.i.l.bf16 %v3846_v58 }
 0x1a3   : > { %v1611_v48 = vsel %vm374_vm1, %v1435_v0, %v3823_v55  ;;  %v1610_v12 = vsel %vm374_vm1, %v1434_v62, %v3822_v56 }
 0x1a4   : > { %v1626_v1 = vsel %vm1014_vm5, %v1610_v12, %v3827_v60  ;;  %v1627_v9 = vsel %vm1014_vm5, %v1611_v48, %v3828_v59  ;;  %v1677_v23 = vpop.f32.mrf.mxu0 }
 0x1a5   : > { %v1635_v2 = vpack.c.bf16 %v1627_v9, %v1626_v1 }
 0x1a6   : > { %4050 = vrot.lane.b32.xlu1 %v4034_v41, %s5263_s12  ;;  %4040 = vrot.lane.b32.xlu2 %v4059_v47, %s4150_s18  ;;  %v2587_v41 = vld [vmem:[#allocation2 + $0xf0] sm:$0xff] }
 0x1a7   : > { %3370 = vmatmul.msk.bf16.gmra.mxu0 %vm1260_vm6, %v1635_v2 }
 0x1a8   : > { %v3831_v5 = vpop.permute.xlu1 %3830  ;;  %v3876_v15 = vpop.permute.xlu2 %3875 }
 0x1a9   : > { %v3833_v11 = vunpack.i.h.bf16 %v3831_v5  ;;  %v3832_v14 = vunpack.i.l.bf16 %v3831_v5  ;;  %v3866_v16 = vpop.permute.xlu0 %3865  ;;  %v3878_v19 = vunpack.i.h.bf16 %v3876_v15  ;;  %v3877_v17 = vunpack.i.l.bf16 %v3876_v15 }
 0x1aa   : > { %v3868_v18 = vunpack.i.h.bf16 %v3866_v16  ;;  %v3867_v22 = vunpack.i.l.bf16 %v3866_v16 }
 0x1ab   : > { %v2401_v20 = vsel %vm374_vm1, %v1435_v0, %v3833_v11  ;;  %v2400_v50 = vsel %vm374_vm1, %v1434_v62, %v3832_v14  ;;  %v1298_v21 = vpop.f32.mrf.mxu2 }
 0x1ac   : > { %v2416_v24 = vsel %vm1014_vm5, %v2400_v50, %v3847_v28  ;;  %v2417_v25 = vsel %vm1014_vm5, %v2401_v20, %v3848_v10  ;;  %v2187_v51 = vsel %vm374_vm1, %v1435_v0, %v3868_v18  ;;  %v2186_v26 = vsel %vm374_vm1, %v1434_v62, %v3867_v22  ;;  %v1679_v55 = vpop.f32.mrf.mxu0 }
 0x1ad   : > { %v2432_v27 = vpack.c.bf16 %v2417_v25, %v2416_v24  ;;  %v1380_v29 = vadd.f32 %v1379_v53, %v1298_v21  ;;  %v2202_v13 = vsel %vm1014_vm5, %v2186_v26, %v3877_v17  ;;  %v2203_v30 = vsel %vm1014_vm5, %v2187_v51, %v3878_v19 }
 0x1ae   : > { %4065 = vrot.lane.b32.xlu1 %v4064_v8, %s5263_s12  ;;  %4055 = vrot.lane.b32.xlu2 %v4770_v6, %s4150_s18  ;;  %v2217_v31 = vpack.c.bf16 %v2203_v30, %v2202_v13  ;;  %v3863_v6 = vunpack.i.h.bf16 %v4804_v57  ;;  %v2589_v30 = vld [vmem:[#allocation2 + $0x108] sm:$0xff] }
 0x1af   : > { %3379 = vmatmul.msk.bf16.vlgmr.msra.gmra.mxu2 %vm1260_vm6, %v2432_v27  ;;  %v1717_v34 = vadd.f32 %v1677_v23, %v1380_v29 }
 0x1b0   : > { %3388 = vmatmul.msk.bf16.gmra.mxu3 %vm1260_vm6, %v2217_v31  ;;  %v3851_v36 = vpop.permute.xlu1 %3850  ;;  %v4831_v63 = vpop.permute.xlu2 %3890  ;;  %v2590_v31 = vld [vmem:[#allocation2 + $0x110] sm:$0xff] }
 0x1b1   : > { %v3853_v37 = vunpack.i.h.bf16 %v3851_v36  ;;  %v3852_v38 = vunpack.i.l.bf16 %v3851_v36  ;;  %v3881_v39 = vpop.permute.xlu0 %3880  ;;  %v1736_v47 = vmul.f32 %v4828_v35, %v1717_v34  ;;  %v3893_v29 = vunpack.i.h.bf16 %v4831_v63 }
 0x1b2   : > { %v3882_v62 = vunpack.i.l.bf16 %v3881_v39  ;;  %v3892_v13 = vunpack.i.l.bf16 %v4831_v63 }
 0x1b3   : > { %v1384_v42 = vpop.f32.mrf.mxu3  ;;  %v2764_v44 = vsel %vm374_vm1, %v2588_v61, %v3853_v37  ;;  %v2763_v45 = vsel %vm374_vm1, %v2587_v41, %v3852_v38  ;;  %v1300_v46 = vpop.f32.mrf.mxu2  ;;  %v1755_v58 = vadd.f32 %v4841_v49, %v1736_v47 }
 0x1b4   : > { %v2779_v52 = vsel %vm1014_vm5, %v2763_v45, %v3862_v40  ;;  %v2780_v53 = vsel %vm1014_vm5, %v2764_v44, %v3863_v6  ;;  %v1382_v54 = vadd.f32 %v1381_v7, %v1300_v46  ;;  %v3883_v7 = vunpack.i.h.bf16 %v3881_v39 }
 0x1b5   : > { %v2795_v56 = vpack.c.bf16 %v2780_v53, %v2779_v52  ;;  %v1771_v11 = vmax.f32 %v1755_v58, 0.0 }
 0x1b6   : > { %v1718_v57 = vadd.f32 %v1679_v55, %v1382_v54  ;;  %4070 = vrot.lane.b32.xlu2 %v4069_v43, %s4150_s18  ;;  %s4098_s18 = sshra.s32 %s3166_s21, 4  ;;  %s4099_s18 = int_to_ptr.hbm [resolvable:$true] %s4098_s18 }
 0x1b7   : > { %3395 = vmatmul.msk.bf16.vlgmr.msra.gmra.mxu0 %vm1260_vm6, %v2795_v56  ;;  %s4100_s25 = scalar_lea.hbm %s4099_s18, 128  ;;  %p4105_p0 = scmp.lt.s32.totalorder %s4099_s18, %s5262_s10 }
 0x1b8   : > { %v1737_v59 = vmul.f32 %v4828_v35, %v1718_v57  ;;  %v3871_v60 = vpop.permute.xlu1 %3870  ;;  %v3906_v12 = vpop.permute.xlu2 %3905  ;;  %p4101_p11 = scmp.ne.s32.totalorder %s4099_s18, %s4100_s25  ;;  %p4106_p1 = scmp.lt.s32.totalorder %s4104_s27, %s4100_s25 }
 0x1b9   : > { %v3873_v0 = vunpack.i.h.bf16 %v3871_v60  ;;  %v3872_v48 = vunpack.i.l.bf16 %v3871_v60  ;;  %v3896_v1 = vpop.permute.xlu0 %3895  ;;  %v3908_v2 = vunpack.i.h.bf16 %v3906_v12  ;;  %v3907_v3 = vunpack.i.l.bf16 %v3906_v12 }
 0x1ba   : > { %v1756_v9 = vadd.f32 %v4841_v49, %v1737_v59  ;;  %v3898_v4 = vunpack.i.h.bf16 %v3896_v1  ;;  %v3897_v28 = vunpack.i.l.bf16 %v3896_v1  ;;  %p4102_p12 = pnand %p4101_p11, %p4245_p5  ;;  %p4107_p2 = por %p4106_p1, %p4105_p0 }
 0x1bb   : > { %v1386_v5 = vpop.f32.mrf.mxu3  ;;  %v2403_v8 = vsel %vm374_vm1, %v2588_v61, %v3873_v0  ;;  %v2402_v10 = vsel %vm374_vm1, %v2587_v41, %v3872_v48  ;;  %v1303_v22 = vpop.f32.mrf.mxu2 }
 0x1bc   : > { %v1772_v14 = vmax.f32 %v1756_v9, 0.0  ;;  %v2189_v15 = vsel %vm374_vm1, %v2588_v61, %v3898_v4  ;;  %v2418_v16 = vsel %vm1014_vm5, %v2402_v10, %v3882_v62  ;;  %v2188_v19 = vsel %vm374_vm1, %v2587_v41, %v3897_v28  ;;  %p4103_p13 = pneg %p4102_p12 }
 0x1bd   : > { %v2419_v17 = vsel %vm1014_vm5, %v2403_v8, %v3883_v7  ;;  %v2205_v18 = vsel %vm1014_vm5, %v2189_v15, %v3908_v2  ;;  %v2204_v50 = vsel %vm1014_vm5, %v2188_v19, %v3907_v3  ;;  %v1385_v33 = vadd.f32 %v1384_v42, %v1303_v22  ;;  %v2592_v22 = vld [vmem:[#allocation2 + $0x128] sm:$0xff] }
 0x1be   : > { %v1787_v23 = vpack.c.bf16 %v1772_v14, %v1771_v11  ;;  %v2433_v20 = vpack.c.bf16 %v2419_v17, %v2418_v16  ;;  %v2218_v21 = vpack.c.bf16 %v2205_v18, %v2204_v50  ;;  %v2591_v18 = vld [vmem:[#allocation2 + $0x120] sm:$0xff]  ;;  %p4108_p3 = pnand %p4107_p2, %p4103_p13 }
 0x1c0   : > { %3371 = vmatmul.msk.bf16.vlgmr.msrb.gmra.mxu1 %vm374_vm1, %v1787_v23  ;;  %3380 = vmatmul.msk.bf16.gmra.mxu2 %vm1260_vm6, %v2433_v20  ;;  %v3886_v24 = vpop.permute.xlu1 %3885  ;;  %v4861_v26 = vpop.permute.xlu2 %3920 }
 0x1c1   : > { %3389 = vmatmul.msk.bf16.gmra.mxu3 %vm1260_vm6, %v2218_v21  ;;  %v3888_v25 = vunpack.i.h.bf16 %v3886_v24  ;;  %v3887_v51 = vunpack.i.l.bf16 %v3886_v24  ;;  %v3911_v27 = vpop.permute.xlu0 %3910  ;;  %v3923_v16 = vunpack.i.h.bf16 %v4861_v26  ;;  %v3922_v19 = vunpack.i.l.bf16 %v4861_v26 }
 0x1c2   : > { %v3913_v41 = vunpack.i.h.bf16 %v3911_v27  ;;  %v3912_v43 = vunpack.i.l.bf16 %v3911_v27 }
 0x1c3   : > { %v1389_v32 = vpop.f32.mrf.mxu3  ;;  %v2766_v34 = vsel %vm374_vm1, %v2590_v31, %v3888_v25  ;;  %v2765_v36 = vsel %vm374_vm1, %v2589_v30, %v3887_v51  ;;  %v1305_v61 = vpop.f32.mrf.mxu2 }
 0x1c4   : > { %v1682_v37 = vpop.f32.mrf.mxu0  ;;  %v2781_v38 = vsel %vm1014_vm5, %v2765_v36, %v3892_v13  ;;  %v2782_v39 = vsel %vm1014_vm5, %v2766_v34, %v3893_v29  ;;  %v1387_v57 = vadd.f32 %v1386_v5, %v1305_v61 }
 0x1c5   : > { %v1719_v6 = vadd.f32 %v1682_v37, %v1385_v33  ;;  %v2796_v40 = vpack.c.bf16 %v2782_v39, %v2781_v38 }
 0x1c7   : > { %3396 = vmatmul.msk.bf16.gmra.mxu0 %vm1260_vm6, %v2796_v40  ;;  %v1738_v44 = vmul.f32 %v4828_v35, %v1719_v6 }
 0x1c8   : > { %v3901_v63 = vpop.permute.xlu1 %3900  ;;  %v3936_v46 = vpop.permute.xlu2 %3935 }
 0x1c9   : > { %v3903_v42 = vunpack.i.h.bf16 %v3901_v63  ;;  %v3902_v45 = vunpack.i.l.bf16 %v3901_v63  ;;  %v3926_v47 = vpop.permute.xlu0 %3925  ;;  %v3938_v52 = vunpack.i.h.bf16 %v3936_v46  ;;  %v3937_v53 = vunpack.i.l.bf16 %v3936_v46 }
 0x1ca   : > { %v3928_v54 = vunpack.i.h.bf16 %v3926_v47  ;;  %v3927_v55 = vunpack.i.l.bf16 %v3926_v47  ;;  %v1757_v4 = vadd.f32 %v4841_v49, %v1738_v44 }
 0x1cb   : > { %v1391_v56 = vpop.f32.mrf.mxu3  ;;  %v2405_v58 = vsel %vm374_vm1, %v2590_v31, %v3903_v42  ;;  %v2404_v59 = vsel %vm374_vm1, %v2589_v30, %v3902_v45 }
 0x1cc   : > { %v2191_v60 = vsel %vm374_vm1, %v2590_v31, %v3928_v54  ;;  %v2190_v62 = vsel %vm374_vm1, %v2589_v30, %v3927_v55  ;;  %v1684_v0 = vpop.f32.mrf.mxu0  ;;  %v2420_v48 = vsel %vm1014_vm5, %v2404_v59, %v3912_v43  ;;  %v2421_v12 = vsel %vm1014_vm5, %v2405_v58, %v3913_v41 }
 0x1cd   : > { %v1720_v1 = vadd.f32 %v1684_v0, %v1387_v57  ;;  %v2434_v9 = vpack.c.bf16 %v2421_v12, %v2420_v48  ;;  %v2206_v2 = vsel %vm1014_vm5, %v2190_v62, %v3937_v53  ;;  %v2207_v3 = vsel %vm1014_vm5, %v2191_v60, %v3938_v52 }
 0x1ce   : > { %v2219_v5 = vpack.c.bf16 %v2207_v3, %v2206_v2  ;;  %v1773_v17 = vmax.f32 %v1757_v4, 0.0 }
 0x1cf   : > { %v1739_v7 = vmul.f32 %v4828_v35, %v1720_v1 }
 0x1d0   : > { %3381 = vmatmul.msk.bf16.gmra.mxu2 %vm1260_vm6, %v2434_v9  ;;  %v3916_v8 = vpop.permute.xlu1 %3915  ;;  %v4884_v14 = vpop.permute.xlu2 %3950 }
 0x1d1   : > { %v1758_v10 = vadd.f32 %v4841_v49, %v1739_v7  ;;  %3390 = vmatmul.msk.bf16.gmra.mxu3 %vm1260_vm6, %v2219_v5  ;;  %v3918_v28 = vunpack.i.h.bf16 %v3916_v8  ;;  %v3917_v11 = vunpack.i.l.bf16 %v3916_v8  ;;  %v3941_v15 = vpop.permute.xlu0 %3940  ;;  %v3953_v3 = vunpack.i.h.bf16 %v4884_v14  ;;  %v2593_v7 = vld [vmem:[#allocation2 + $0x138] sm:$0xff]  ;;  %v2594_v8 = vld [vmem:[#allocation2 + $0x140] sm:$0xff] }
 0x1d2   : > { %v1308_v23 = vpop.f32.mrf.mxu2  ;;  %v3943_v26 = vunpack.i.h.bf16 %v3941_v15  ;;  %v3942_v34 = vunpack.i.l.bf16 %v3941_v15  ;;  %v3952_v4 = vunpack.i.l.bf16 %v4884_v14 }
 0x1d3   : > { %v2768_v20 = vsel %vm374_vm1, %v2592_v22, %v3918_v28  ;;  %v2767_v50 = vsel %vm374_vm1, %v2591_v18, %v3917_v11  ;;  %v1390_v21 = vadd.f32 %v1389_v32, %v1308_v23  ;;  %v1394_v24 = vpop.f32.mrf.mxu3  ;;  %v1774_v25 = vmax.f32 %v1758_v10, 0.0 }
 0x1d4   : > { %v1687_v51 = vpop.f32.mrf.mxu0  ;;  %v2783_v27 = vsel %vm1014_vm5, %v2767_v50, %v3922_v19  ;;  %v2784_v29 = vsel %vm1014_vm5, %v2768_v20, %v3923_v16 }
 0x1d5   : > { %v1721_v13 = vadd.f32 %v1687_v51, %v1390_v21  ;;  %v1788_v30 = vpack.c.bf16 %v1774_v25, %v1773_v17  ;;  %v2797_v31 = vpack.c.bf16 %v2784_v29, %v2783_v27 }
 0x1d7   : > { %3372 = vmatmul.msk.bf16.gmra.mxu1 %vm374_vm1, %v1788_v30  ;;  %3397 = vmatmul.msk.bf16.gmra.mxu0 %vm1260_vm6, %v2797_v31  ;;  %v1740_v36 = vmul.f32 %v4828_v35, %v1721_v13 }
 0x1d8   : > { %v3931_v33 = vpop.permute.xlu1 %3930  ;;  %v3966_v38 = vpop.permute.xlu2 %3965 }
 0x1d9   : > { %v3933_v32 = vunpack.i.h.bf16 %v3931_v33  ;;  %v3932_v37 = vunpack.i.l.bf16 %v3931_v33  ;;  %v3956_v39 = vpop.permute.xlu0 %3955  ;;  %v3968_v6 = vunpack.i.h.bf16 %v3966_v38  ;;  %v3967_v40 = vunpack.i.l.bf16 %v3966_v38 }
 0x1da   : > { %v3958_v41 = vunpack.i.h.bf16 %v3956_v39  ;;  %v3957_v61 = vunpack.i.l.bf16 %v3956_v39  ;;  %v1310_v63 = vpop.f32.mrf.mxu2  ;;  %v1759_v60 = vadd.f32 %v4841_v49, %v1740_v36 }
 0x1db   : > { %v2407_v43 = vsel %vm374_vm1, %v2592_v22, %v3933_v32  ;;  %v2406_v44 = vsel %vm374_vm1, %v2591_v18, %v3932_v37  ;;  %v1392_v42 = vadd.f32 %v1391_v56, %v1310_v63  ;;  %v1396_v45 = vpop.f32.mrf.mxu3 }
 0x1dc   : > { %v2193_v46 = vsel %vm374_vm1, %v2592_v22, %v3958_v41  ;;  %v2192_v47 = vsel %vm374_vm1, %v2591_v18, %v3957_v61  ;;  %v1689_v52 = vpop.f32.mrf.mxu0  ;;  %v2422_v53 = vsel %vm1014_vm5, %v2406_v44, %v3942_v34  ;;  %v2423_v54 = vsel %vm1014_vm5, %v2407_v43, %v3943_v26 }
 0x1dd   : > { %v1722_v55 = vadd.f32 %v1689_v52, %v1392_v42  ;;  %v2435_v57 = vpack.c.bf16 %v2423_v54, %v2422_v53  ;;  %v2208_v58 = vsel %vm1014_vm5, %v2192_v47, %v3967_v40  ;;  %v2209_v59 = vsel %vm1014_vm5, %v2193_v46, %v3968_v6 }
 0x1de   : > { %v2220_v62 = vpack.c.bf16 %v2209_v59, %v2208_v58  ;;  %v1775_v5 = vmax.f32 %v1759_v60, 0.0 }
 0x1df   : > { %v1741_v56 = vmul.f32 %v4828_v35, %v1722_v55 }
 0x1e0   : > { %3382 = vmatmul.msk.bf16.gmra.mxu2 %vm1260_vm6, %v2435_v57  ;;  %v3946_v0 = vpop.permute.xlu1 %3945  ;;  %v4908_v9 = vpop.permute.xlu2 %3980 }
 0x1e1   : > { %v1760_v48 = vadd.f32 %v4841_v49, %v1741_v56  ;;  %3391 = vmatmul.msk.bf16.gmra.mxu3 %vm1260_vm6, %v2220_v62  ;;  %v3948_v12 = vunpack.i.h.bf16 %v3946_v0  ;;  %v3947_v1 = vunpack.i.l.bf16 %v3946_v0  ;;  %v3971_v2 = vpop.permute.xlu0 %3970  ;;  %v3983_v59 = vunpack.i.h.bf16 %v4908_v9  ;;  %v2595_v56 = vld [vmem:[#allocation2 + $0x150] sm:$0xff]  ;;  %v2596_v0 = vld [vmem:[#allocation2 + $0x158] sm:$0xff] }
 0x1e2   : > { %v1313_v10 = vpop.f32.mrf.mxu2  ;;  %v3973_v14 = vunpack.i.h.bf16 %v3971_v2  ;;  %v3972_v25 = vunpack.i.l.bf16 %v3971_v2  ;;  %v3982_v60 = vunpack.i.l.bf16 %v4908_v9 }
 0x1e3   : > { %v2770_v28 = vsel %vm374_vm1, %v2594_v8, %v3948_v12  ;;  %v2769_v11 = vsel %vm374_vm1, %v2593_v7, %v3947_v1  ;;  %v1395_v15 = vadd.f32 %v1394_v24, %v1313_v10  ;;  %v1399_v16 = vpop.f32.mrf.mxu3  ;;  %v1776_v19 = vmax.f32 %v1760_v48, 0.0 }
 0x1e4   : > { %v1692_v17 = vpop.f32.mrf.mxu0  ;;  %v2785_v18 = vsel %vm1014_vm5, %v2769_v11, %v3952_v4  ;;  %v2786_v22 = vsel %vm1014_vm5, %v2770_v28, %v3953_v3 }
 0x1e5   : > { %v1723_v23 = vadd.f32 %v1692_v17, %v1395_v15  ;;  %v1789_v20 = vpack.c.bf16 %v1776_v19, %v1775_v5  ;;  %v2798_v50 = vpack.c.bf16 %v2786_v22, %v2785_v18 }
 0x1e7   : > { %3373 = vmatmul.msk.bf16.gmra.mxu1 %vm374_vm1, %v1789_v20  ;;  %3398 = vmatmul.msk.bf16.gmra.mxu0 %vm1260_vm6, %v2798_v50  ;;  %v1742_v51 = vmul.f32 %v4828_v35, %v1723_v23 }
 0x1e8   : > { %v3961_v21 = vpop.permute.xlu1 %3960  ;;  %v3996_v29 = vpop.permute.xlu2 %3995 }
 0x1e9   : > { %v3963_v24 = vunpack.i.h.bf16 %v3961_v21  ;;  %v3962_v27 = vunpack.i.l.bf16 %v3961_v21  ;;  %v3986_v13 = vpop.permute.xlu0 %3985  ;;  %v3998_v30 = vunpack.i.h.bf16 %v3996_v29  ;;  %v3997_v31 = vunpack.i.l.bf16 %v3996_v29 }
 0x1ea   : > { %v3988_v26 = vunpack.i.h.bf16 %v3986_v13  ;;  %v3987_v33 = vunpack.i.l.bf16 %v3986_v13  ;;  %v1315_v34 = vpop.f32.mrf.mxu2  ;;  %v1761_v46 = vadd.f32 %v4841_v49, %v1742_v51 }
 0x1eb   : > { %v2409_v36 = vsel %vm374_vm1, %v2594_v8, %v3963_v24  ;;  %v2408_v32 = vsel %vm374_vm1, %v2593_v7, %v3962_v27  ;;  %v1397_v37 = vadd.f32 %v1396_v45, %v1315_v34  ;;  %v1401_v38 = vpop.f32.mrf.mxu3 }
 0x1ec   : > { %v2195_v39 = vsel %vm374_vm1, %v2594_v8, %v3988_v26  ;;  %v2194_v6 = vsel %vm374_vm1, %v2593_v7, %v3987_v33  ;;  %v1694_v40 = vpop.f32.mrf.mxu0  ;;  %v2424_v41 = vsel %vm1014_vm5, %v2408_v32, %v3972_v25  ;;  %v2425_v61 = vsel %vm1014_vm5, %v2409_v36, %v3973_v14 }
 0x1ed   : > { %v1724_v63 = vadd.f32 %v1694_v40, %v1397_v37  ;;  %v2436_v43 = vpack.c.bf16 %v2425_v61, %v2424_v41  ;;  %v2210_v44 = vsel %vm1014_vm5, %v2194_v6, %v3997_v31  ;;  %v2211_v42 = vsel %vm1014_vm5, %v2195_v39, %v3998_v30 }
 0x1ee   : > { %v2221_v47 = vpack.c.bf16 %v2211_v42, %v2210_v44  ;;  %v1777_v62 = vmax.f32 %v1761_v46, 0.0 }
 0x1ef   : > { %v1743_v45 = vmul.f32 %v4828_v35, %v1724_v63 }
 0x1f0   : > { %3383 = vmatmul.msk.bf16.gmra.mxu2 %vm1260_vm6, %v2436_v43  ;;  %v3976_v52 = vpop.permute.xlu1 %3975  ;;  %v4932_v57 = vpop.permute.xlu2 %4010 }
 0x1f1   : > { %v1762_v53 = vadd.f32 %v4841_v49, %v1743_v45  ;;  %3392 = vmatmul.msk.bf16.gmra.mxu3 %vm1260_vm6, %v2221_v47  ;;  %v3978_v54 = vunpack.i.h.bf16 %v3976_v52  ;;  %v3977_v55 = vunpack.i.l.bf16 %v3976_v52  ;;  %v4001_v58 = vpop.permute.xlu0 %4000  ;;  %v4013_v42 = vunpack.i.h.bf16 %v4932_v57  ;;  %v2597_v45 = vld [vmem:[#allocation2 + $0x168] sm:$0xff]  ;;  %v2598_v52 = vld [vmem:[#allocation2 + $0x170] sm:$0xff] }
 0x1f2   : > { %v1318_v48 = vpop.f32.mrf.mxu2  ;;  %v4003_v9 = vunpack.i.h.bf16 %v4001_v58  ;;  %v4002_v19 = vunpack.i.l.bf16 %v4001_v58  ;;  %v4012_v46 = vunpack.i.l.bf16 %v4932_v57 }
 0x1f3   : > { %v2772_v12 = vsel %vm374_vm1, %v2596_v0, %v3978_v54  ;;  %v2771_v1 = vsel %vm374_vm1, %v2595_v56, %v3977_v55  ;;  %v1400_v2 = vadd.f32 %v1399_v16, %v1318_v48  ;;  %v1404_v3 = vpop.f32.mrf.mxu3  ;;  %v1778_v4 = vmax.f32 %v1762_v53, 0.0 }
 0x1f4   : > { %v1697_v5 = vpop.f32.mrf.mxu0  ;;  %v2787_v7 = vsel %vm1014_vm5, %v2771_v1, %v3982_v60  ;;  %v2788_v8 = vsel %vm1014_vm5, %v2772_v12, %v3983_v59 }
 0x1f5   : > { %v1725_v10 = vadd.f32 %v1697_v5, %v1400_v2  ;;  %v1790_v28 = vpack.c.bf16 %v1778_v4, %v1777_v62  ;;  %v2799_v11 = vpack.c.bf16 %v2788_v8, %v2787_v7 }
 0x1f7   : > { %3374 = vmatmul.msk.bf16.gmra.mxu1 %vm374_vm1, %v1790_v28  ;;  %3399 = vmatmul.msk.bf16.gmra.mxu0 %vm1260_vm6, %v2799_v11  ;;  %v1744_v17 = vmul.f32 %v4828_v35, %v1725_v10 }
 0x1f8   : > { %v3991_v15 = vpop.permute.xlu1 %3990  ;;  %v4026_v22 = vpop.permute.xlu2 %4025 }
 0x1f9   : > { %v3993_v16 = vunpack.i.h.bf16 %v3991_v15  ;;  %v3992_v18 = vunpack.i.l.bf16 %v3991_v15  ;;  %v4016_v23 = vpop.permute.xlu0 %4015  ;;  %v4028_v20 = vunpack.i.h.bf16 %v4026_v22  ;;  %v4027_v50 = vunpack.i.l.bf16 %v4026_v22 }
 0x1fa   : > { %v4018_v14 = vunpack.i.h.bf16 %v4016_v23  ;;  %v4017_v21 = vunpack.i.l.bf16 %v4016_v23  ;;  %v1320_v25 = vpop.f32.mrf.mxu2  ;;  %v1763_v39 = vadd.f32 %v4841_v49, %v1744_v17 }
 0x1fb   : > { %v2411_v51 = vsel %vm374_vm1, %v2596_v0, %v3993_v16  ;;  %v2410_v24 = vsel %vm374_vm1, %v2595_v56, %v3992_v18  ;;  %v1402_v27 = vadd.f32 %v1401_v38, %v1320_v25  ;;  %v1406_v29 = vpop.f32.mrf.mxu3 }
 0x1fc   : > { %v2197_v13 = vsel %vm374_vm1, %v2596_v0, %v4018_v14  ;;  %v2196_v30 = vsel %vm374_vm1, %v2595_v56, %v4017_v21  ;;  %v1699_v31 = vpop.f32.mrf.mxu0  ;;  %v2426_v26 = vsel %vm1014_vm5, %v2410_v24, %v4002_v19  ;;  %v2427_v33 = vsel %vm1014_vm5, %v2411_v51, %v4003_v9 }
 0x1fd   : > { %v1726_v34 = vadd.f32 %v1699_v31, %v1402_v27  ;;  %v2437_v36 = vpack.c.bf16 %v2427_v33, %v2426_v26  ;;  %v2212_v32 = vsel %vm1014_vm5, %v2196_v30, %v4027_v50  ;;  %v2213_v37 = vsel %vm1014_vm5, %v2197_v13, %v4028_v20 }
 0x1fe   : > { %v2222_v6 = vpack.c.bf16 %v2213_v37, %v2212_v32  ;;  %v1779_v47 = vmax.f32 %v1763_v39, 0.0  ;;  %v2599_v39 = vld [vmem:[#allocation2 + $0x180] sm:$0xff] }
 0x1ff   : > { %v1745_v38 = vmul.f32 %v4828_v35, %v1726_v34 }
 0x200   : > { %3384 = vmatmul.msk.bf16.gmra.mxu2 %vm1260_vm6, %v2437_v36  ;;  %v4006_v40 = vpop.permute.xlu1 %4005  ;;  %v4956_v43 = vpop.permute.xlu2 %4040 }
 0x201   : > { %v1764_v41 = vadd.f32 %v4841_v49, %v1745_v38  ;;  %3393 = vmatmul.msk.bf16.gmra.mxu3 %vm1260_vm6, %v2222_v6  ;;  %v4008_v61 = vunpack.i.h.bf16 %v4006_v40  ;;  %v4007_v63 = vunpack.i.l.bf16 %v4006_v40  ;;  %v4031_v44 = vpop.permute.xlu0 %4030  ;;  %v4043_v36 = vunpack.i.h.bf16 %v4956_v43  ;;  %v2600_v6 = vld [vmem:[#allocation2 + $0x188] sm:$0xff] }
 0x202   : > { %v1323_v53 = vpop.f32.mrf.mxu2  ;;  %v4033_v57 = vunpack.i.h.bf16 %v4031_v44  ;;  %v4032_v4 = vunpack.i.l.bf16 %v4031_v44  ;;  %v4042_v32 = vunpack.i.l.bf16 %v4956_v43 }
 0x203   : > { %v1780_v54 = vmax.f32 %v1764_v41, 0.0  ;;  %v2774_v55 = vsel %vm374_vm1, %v2598_v52, %v4008_v61  ;;  %v2773_v58 = vsel %vm374_vm1, %v2597_v45, %v4007_v63  ;;  %v1405_v59 = vadd.f32 %v1404_v3, %v1323_v53  ;;  %v1409_v60 = vpop.f32.mrf.mxu3 }
 0x204   : > { %v1702_v62 = vpop.f32.mrf.mxu0  ;;  %v2789_v56 = vsel %vm1014_vm5, %v2773_v58, %v4012_v46  ;;  %v2790_v0 = vsel %vm1014_vm5, %v2774_v55, %v4013_v42 }
 0x205   : > { %v1727_v48 = vadd.f32 %v1702_v62, %v1405_v59  ;;  %v1791_v12 = vpack.c.bf16 %v1780_v54, %v1779_v47  ;;  %v2800_v1 = vpack.c.bf16 %v2790_v0, %v2789_v56 }
 0x207   : > { %3375 = vmatmul.msk.bf16.gmra.mxu1 %vm374_vm1, %v1791_v12  ;;  %3400 = vmatmul.msk.bf16.gmra.mxu0 %vm1260_vm6, %v2800_v1  ;;  %v1746_v5 = vmul.f32 %v4828_v35, %v1727_v48 }
 0x208   : > { %v4021_v2 = vpop.permute.xlu1 %4020  ;;  %v4056_v8 = vpop.permute.xlu2 %4055 }
 0x209   : > { %v4023_v7 = vunpack.i.h.bf16 %v4021_v2  ;;  %v4022_v3 = vunpack.i.l.bf16 %v4021_v2  ;;  %v4046_v10 = vpop.permute.xlu0 %4045  ;;  %v4058_v28 = vunpack.i.h.bf16 %v4056_v8  ;;  %v4057_v11 = vunpack.i.l.bf16 %v4056_v8 }
 0x20a   : > { %v4048_v9 = vunpack.i.h.bf16 %v4046_v10  ;;  %v4047_v15 = vunpack.i.l.bf16 %v4046_v10  ;;  %v1325_v19 = vpop.f32.mrf.mxu2  ;;  %v1765_v13 = vadd.f32 %v4841_v49, %v1746_v5 }
 0x20b   : > { %v2413_v17 = vsel %vm374_vm1, %v2598_v52, %v4023_v7  ;;  %v2412_v16 = vsel %vm374_vm1, %v2597_v45, %v4022_v3  ;;  %v1407_v18 = vadd.f32 %v1406_v29, %v1325_v19  ;;  %v1411_v22 = vpop.f32.mrf.mxu3 }
 0x20c   : > { %v2199_v23 = vsel %vm374_vm1, %v2598_v52, %v4048_v9  ;;  %v2198_v20 = vsel %vm374_vm1, %v2597_v45, %v4047_v15  ;;  %v1704_v50 = vpop.f32.mrf.mxu0  ;;  %v2428_v14 = vsel %vm1014_vm5, %v2412_v16, %v4032_v4  ;;  %v2429_v21 = vsel %vm1014_vm5, %v2413_v17, %v4033_v57 }
 0x20d   : > { %v1728_v25 = vadd.f32 %v1704_v50, %v1407_v18  ;;  %v2438_v51 = vpack.c.bf16 %v2429_v21, %v2428_v14  ;;  %v2214_v24 = vsel %vm1014_vm5, %v2198_v20, %v4057_v11  ;;  %v2215_v27 = vsel %vm1014_vm5, %v2199_v23, %v4058_v28  ;;  %v2601_v28 = vld [vmem:[#allocation2 + $0x198] sm:$0xff]  ;;  %v2602_v11 = vld [vmem:[#allocation2 + $0x1a0] sm:$0xff] }
 0x20e   : > { %v2223_v30 = vpack.c.bf16 %v2215_v27, %v2214_v24  ;;  %v1781_v37 = vmax.f32 %v1765_v13, 0.0 }
 0x20f   : > { %v1747_v29 = vmul.f32 %v4828_v35, %v1728_v25 }
 0x210   : > { %3385 = vmatmul.msk.bf16.gmra.mxu2 %vm1260_vm6, %v2438_v51  ;;  %v4036_v31 = vpop.permute.xlu1 %4035  ;;  %v4071_v3 = vpop.permute.xlu2 %4070 }
 0x211   : > { %v1766_v26 = vadd.f32 %v4841_v49, %v1747_v29  ;;  %3394 = vmatmul.msk.bf16.gmra.mxu3 %vm1260_vm6, %v2223_v30  ;;  %v4038_v33 = vunpack.i.h.bf16 %v4036_v31  ;;  %v4037_v34 = vunpack.i.l.bf16 %v4036_v31  ;;  %v4061_v43 = vpop.permute.xlu0 %4060  ;;  %v4073_v15 = vunpack.i.h.bf16 %v4071_v3 }
 0x212   : > { %v1328_v38 = vpop.f32.mrf.mxu2  ;;  %v4063_v59 = vunpack.i.h.bf16 %v4061_v43  ;;  %v4062_v62 = vunpack.i.l.bf16 %v4061_v43  ;;  %v4072_v19 = vunpack.i.l.bf16 %v4071_v3 }
 0x213   : > { %v1782_v40 = vmax.f32 %v1766_v26, 0.0  ;;  %v2776_v41 = vsel %vm374_vm1, %v2600_v6, %v4038_v33  ;;  %v2775_v61 = vsel %vm374_vm1, %v2599_v39, %v4037_v34  ;;  %v1410_v63 = vadd.f32 %v1409_v60, %v1328_v38  ;;  %v1414_v44 = vpop.f32.mrf.mxu3 }
 0x214   : > { %v1707_v42 = vpop.f32.mrf.mxu0  ;;  %v2791_v46 = vsel %vm1014_vm5, %v2775_v61, %v4042_v32  ;;  %v2792_v47 = vsel %vm1014_vm5, %v2776_v41, %v4043_v36 }
 0x215   : > { %v1792_v45 = vpack.c.bf16 %v1782_v40, %v1781_v37  ;;  %v2801_v52 = vpack.c.bf16 %v2792_v47, %v2791_v46  ;;  %v1729_v53 = vadd.f32 %v1707_v42, %v1410_v63 }
 0x217   : > { %3376 = vmatmul.msk.bf16.gmra.mxu1 %vm374_vm1, %v1792_v45  ;;  %3401 = vmatmul.msk.bf16.gmra.mxu0 %vm1260_vm6, %v2801_v52  ;;  %v1748_v60 = vmul.f32 %v4828_v35, %v1729_v53  ;;  %v5011_v45 = vld [vmem:[%s5260_s8] ss:$0 sm:$0xff] }
 0x218   : > { %v4051_v54 = vpop.permute.xlu1 %4050 }
 0x219   : > { %v4053_v55 = vunpack.i.h.bf16 %v4051_v54  ;;  %v4052_v58 = vunpack.i.l.bf16 %v4051_v54  ;;  %v1767_v8 = vadd.f32 %v4841_v49, %v1748_v60  ;;  %v3471_v54 = vld [vmem:[%s4263_s11] sm:$0xff]  }
 0x21a   : > { %v1330_v56 = vpop.f32.mrf.mxu2  ;;  %v3472_v60 = vunpack.c.l.bf16 %v3471_v54 }
 0x21b   : > { %v2415_v0 = vsel %vm374_vm1, %v2600_v6, %v4053_v55  ;;  %v2414_v48 = vsel %vm374_vm1, %v2599_v39, %v4052_v58  ;;  %v1412_v12 = vadd.f32 %v1411_v22, %v1330_v56  ;;  %v1416_v1 = vpop.f32.mrf.mxu3  ;;  %v1783_v22 = vmax.f32 %v1767_v8, 0.0  ;;  %v5018_v55 = vld [vmem:[%s5261_s9] ss:$0 sm:$0xff] }
 0x21c   : > { %v1709_v57 = vpop.f32.mrf.mxu0  ;;  %v2430_v2 = vsel %vm1014_vm5, %v2414_v48, %v4062_v62  ;;  %v2431_v4 = vsel %vm1014_vm5, %v2415_v0, %v4063_v59 }
 0x21d   : > { %v1730_v5 = vadd.f32 %v1709_v57, %v1412_v12  ;;  %v2439_v7 = vpack.c.bf16 %v2431_v4, %v2430_v2 }
 0x21f   : > { %v1749_v10 = vmul.f32 %v4828_v35, %v1730_v5 }
 0x220   : > { %3386 = vmatmul.msk.bf16.gmra.mxu2 %vm1260_vm6, %v2439_v7  ;;  %v4066_v9 = vpop.permute.xlu1 %4065 }
 0x221   : > { %v1768_v17 = vadd.f32 %v4841_v49, %v1749_v10  ;;  %v4068_v16 = vunpack.i.h.bf16 %v4066_v9  ;;  %v4067_v18 = vunpack.i.l.bf16 %v4066_v9 }
 0x222   : > { %v1333_v23 = vpop.f32.mrf.mxu2 }
 0x223   : > { %v1784_v20 = vmax.f32 %v1768_v17, 0.0  ;;  %v2778_v50 = vsel %vm374_vm1, %v2602_v11, %v4068_v16  ;;  %v2777_v14 = vsel %vm374_vm1, %v2601_v28, %v4067_v18  ;;  %v1415_v21 = vadd.f32 %v1414_v44, %v1333_v23  ;;  %v2546_v25 = vpop.f32.mrf.mxu3 }
 0x224   : > { %v2794_v51 = vsel %vm1014_vm5, %v2778_v50, %v4073_v15  ;;  %v2793_v24 = vsel %vm1014_vm5, %v2777_v14, %v4072_v19  ;;  %v1712_v27 = vpop.f32.mrf.mxu0  ;;  %v3473_v15 = vunpack.c.h.bf16 %v3471_v54 }
 0x225   : > { %v2802_v13 = vpack.c.bf16 %v2794_v51, %v2793_v24  ;;  %v1793_v30 = vpack.c.bf16 %v1784_v20, %v1783_v22  ;;  %v1731_v29 = vadd.f32 %v1712_v27, %v1415_v21 }
 0x227   : > { %3377 = vmatmul.msk.bf16.gmra.mxu1 %vm374_vm1, %v1793_v30  ;;  %3402 = vmatmul.msk.bf16.gmra.mxu0 %vm1260_vm6, %v2802_v13  ;;  %v1750_v26 = vmul.f32 %v4828_v35, %v1731_v29  ;;  %v3534_v30 = vld [vmem:[%s4263_s11 + $0x8] sm:$0xff]  }
 0x229   : > { %v1769_v37 = vadd.f32 %v4841_v49, %v1750_v26 }
 0x22a   : > { %v1335_v31 = vpop.f32.mrf.mxu2 }
 0x22b   : > { %v1417_v33 = vadd.f32 %v1416_v1, %v1335_v31  ;;  %v2548_v34 = vpop.f32.mrf.mxu3  ;;  %v1785_v40 = vmax.f32 %v1769_v37, 0.0 }
 0x22c   : > { %v1714_v36 = vpop.f32.mrf.mxu0 }
 0x22d   : > { %v1732_v32 = vadd.f32 %v1714_v36, %v1417_v33 }
 0x22f   : > { %v1751_v39 = vmul.f32 %v4828_v35, %v1732_v32  ;;  %v3476_v32 = vunpack.c.l.bf16 %v3534_v30 }
 0x231   : > { %v1770_v6 = vadd.f32 %v4841_v49, %v1751_v39 }
 0x232   : > { %v2473_v38 = vpop.f32.mrf.mxu2 }
 0x233   : > { %v1786_v41 = vmax.f32 %v1770_v6, 0.0  ;;  %v2547_v61 = vadd.f32 %v2546_v25, %v2473_v38  ;;  %v2551_v63 = vpop.f32.mrf.mxu3 }
 0x234   : > { %v2836_v44 = vpop.f32.mrf.mxu0 }
 0x235   : > { %v1794_v42 = vpack.c.bf16 %v1786_v41, %v1785_v40  ;;  %v2876_v46 = vadd.f32 %v2836_v44, %v2547_v61 }
 0x237   : > { %3378 = vmatmul.msk.bf16.gmra.mxu1 %vm374_vm1, %v1794_v42  ;;  %v2892_v52 = vmul.f32 %v4828_v35, %v2876_v46 }
 0x239   : > { %v2908_v0 = vadd.f32 %v4841_v49, %v2892_v52 }
 0x23a   : > { %v2475_v47 = vpop.f32.mrf.mxu2 }
 0x23b   : > { %v2549_v53 = vadd.f32 %v2548_v34, %v2475_v47  ;;  %v2553_v43 = vpop.f32.mrf.mxu3  ;;  %v2924_v2 = vmax.f32 %v2908_v0, 0.0 }
 0x23c   : > { %v2838_v58 = vpop.f32.mrf.mxu0 }
 0x23d   : > { %v1832_v59 = vpop.f32.mrf.mxu1  ;;  %v2877_v62 = vadd.f32 %v2838_v58, %v2549_v53  ;;  %v3477_v53 = vunpack.c.h.bf16 %v3534_v30 }
 0x23e   : > { %v1907_v56 = vmul.f32 %v5011_v45, %v1832_v59 }
 0x23f   : > { %v2893_v48 = vmul.f32 %v4828_v35, %v2877_v62 }
 0x240   : > { %v1926_v12 = vadd.f32 %v5018_v55, %v1907_v56 }
 0x241   : > { %v2909_v1 = vadd.f32 %v4841_v49, %v2893_v48  ;;  %v3535_v48 = vld [vmem:[%s4263_s11 + $0x10] sm:$0xff]  }
 0x242   : > { %v1942_v57 = vadd.f32 %v3472_v60, %v1926_v12 }
 0x243   : > { %v2925_v4 = vmax.f32 %v2909_v1, 0.0  ;;  %v2478_v5 = vpop.f32.mrf.mxu2 }
 0x244   : > { %v1958_v7 = vmax.f32 %v1942_v57, 0.0  ;;  %v2552_v3 = vadd.f32 %v2551_v63, %v2478_v5  ;;  %v2556_v8 = vpop.f32.mrf.mxu3  ;;  %v2841_v10 = vpop.f32.mrf.mxu0 }
 0x245   : > { %v2940_v28 = vpack.c.bf16 %v2925_v4, %v2924_v2  ;;  %v1834_v11 = vpop.f32.mrf.mxu1 }
 0x246   : > { %v1974_v9 = vpack.c.bf16 %v1958_v7, %v1958_v7  ;;  %v1908_v19 = vmul.f32 %v5011_v45, %v1834_v11  ;;  %v2878_v16 = vadd.f32 %v2841_v10, %v2552_v3 }
 0x247   : > { %3403 = vmatmul.msk.bf16.vlgmr.msra.gmra.mxu1 %vm374_vm1, %v2940_v28 }
 0x248   : > { %1991 = vst.msk [vmem:[%s5030_s30] sm:$0xf] %vm1990_vm8, %v1974_v9  ;;  %v1927_v17 = vadd.f32 %v5018_v55, %v1908_v19  ;;  %v2894_v20 = vmul.f32 %v4828_v35, %v2878_v16 }
 0x24a   : > { %v1943_v18 = vadd.f32 %v3473_v15, %v1927_v17  ;;  %v2910_v24 = vadd.f32 %v4841_v49, %v2894_v20  ;;  %v5062_v17 = vld [vmem:[%s5258_s6] ss:$0 sm:$0xff]  ;;  %v3481_v20 = vunpack.c.h.bf16 %v3535_v48 }
 0x24b   : > { %v2480_v22 = vpop.f32.mrf.mxu2 }
 0x24c   : > { %v1959_v23 = vmax.f32 %v1943_v18, 0.0  ;;  %v2554_v50 = vadd.f32 %v2553_v43, %v2480_v22  ;;  %v2558_v14 = vpop.f32.mrf.mxu3  ;;  %v2843_v21 = vpop.f32.mrf.mxu0  ;;  %v2926_v31 = vmax.f32 %v2910_v24, 0.0  ;;  %v5072_v24 = vld [vmem:[%s5259_s7] ss:$0 sm:$0xff] }
 0x24e   : > { %v1975_v25 = vpack.c.bf16 %v1959_v23, %v1959_v23  ;;  %v2879_v51 = vadd.f32 %v2843_v21, %v2554_v50 }
 0x250   : > { %1992 = vst.msk [vmem:[%s5030_s30 + $0x4] sm:$0xf] %vm1990_vm8, %v1975_v25  ;;  %v2895_v27 = vmul.f32 %v4828_v35, %v2879_v51 }
 0x252   : > { %v2911_v13 = vadd.f32 %v4841_v49, %v2895_v27 }
 0x253   : > { %v2483_v29 = vpop.f32.mrf.mxu2 }
 0x254   : > { %v2927_v26 = vmax.f32 %v2911_v13, 0.0  ;;  %v2557_v33 = vadd.f32 %v2556_v8, %v2483_v29  ;;  %v2561_v34 = vpop.f32.mrf.mxu3  ;;  %v1837_v36 = vpop.f32.mrf.mxu1  ;;  %v3480_v8 = vunpack.c.l.bf16 %v3535_v48 }
 0x255   : > { %v1909_v37 = vmul.f32 %v5011_v45, %v1837_v36  ;;  %v2846_v39 = vpop.f32.mrf.mxu0 }
 0x256   : > { %v2941_v6 = vpack.c.bf16 %v2927_v26, %v2926_v31  ;;  %v2880_v40 = vadd.f32 %v2846_v39, %v2557_v33  ;;  %v3536_v31 = vld [vmem:[%s4263_s11 + $0x18] sm:$0xff]  }
 0x257   : > { %v1928_v38 = vadd.f32 %v5018_v55, %v1909_v37 }
 0x258   : > { %3404 = vmatmul.msk.bf16.gmra.mxu1 %vm374_vm1, %v2941_v6  ;;  %v2896_v44 = vmul.f32 %v4828_v35, %v2880_v40  ;;  %v3484_v6 = vunpack.c.l.bf16 %v3536_v31 }
 0x259   : > { %v1944_v41 = vadd.f32 %v3476_v32, %v1928_v38 }
 0x25a   : > { %v2912_v62 = vadd.f32 %v4841_v49, %v2896_v44 }
 0x25b   : > { %v1960_v61 = vmax.f32 %v1944_v41, 0.0  ;;  %v2485_v63 = vpop.f32.mrf.mxu2 }
 0x25c   : > { %v2559_v42 = vadd.f32 %v2558_v14, %v2485_v63  ;;  %v2563_v46 = vpop.f32.mrf.mxu3  ;;  %v1839_v47 = vpop.f32.mrf.mxu1  ;;  %v2928_v57 = vmax.f32 %v2912_v62, 0.0 }
 0x25d   : > { %v1976_v52 = vpack.c.bf16 %v1960_v61, %v1960_v61  ;;  %v1910_v43 = vmul.f32 %v5011_v45, %v1839_v47  ;;  %v2848_v54 = vpop.f32.mrf.mxu0 }
 0x25e   : > { %v2881_v58 = vadd.f32 %v2848_v54, %v2559_v42 }
 0x25f   : > { %1993 = vst.msk [vmem:[%s5030_s30 + $0x8] sm:$0xf] %vm1990_vm8, %v1976_v52  ;;  %v1929_v59 = vadd.f32 %v5018_v55, %v1910_v43 }
 0x260   : > { %v2897_v60 = vmul.f32 %v4828_v35, %v2881_v58  ;;  %v3485_v58 = vunpack.c.h.bf16 %v3536_v31 }
 0x261   : > { %v1945_v56 = vadd.f32 %v3477_v53, %v1929_v59 }
 0x262   : > { %v2913_v0 = vadd.f32 %v4841_v49, %v2897_v60 }
 0x263   : > { %v1961_v12 = vmax.f32 %v1945_v56, 0.0  ;;  %v2488_v1 = vpop.f32.mrf.mxu2 }
 0x264   : > { %v2929_v2 = vmax.f32 %v2913_v0, 0.0  ;;  %v2562_v4 = vadd.f32 %v2561_v34, %v2488_v1  ;;  %v1842_v5 = vpop.f32.mrf.mxu1  ;;  %v2566_v3 = vpop.f32.mrf.mxu3 }
 0x265   : > { %v1977_v7 = vpack.c.bf16 %v1961_v12, %v1961_v12  ;;  %v1911_v10 = vmul.f32 %v5011_v45, %v1842_v5  ;;  %v2851_v28 = vpop.f32.mrf.mxu0 }
 0x266   : > { %v2942_v11 = vpack.c.bf16 %v2929_v2, %v2928_v57  ;;  %v2882_v49 = vadd.f32 %v2851_v28, %v2562_v4  ;;  %v3537_v57 = vld [vmem:[%s4263_s11 + $0x20] sm:$0xff]  }
 0x267   : > { %1994 = vst.msk [vmem:[%s5030_s30 + $0xc] sm:$0xf] %vm1990_vm8, %v1977_v7  ;;  %v1930_v35 = vadd.f32 %v5018_v55, %v1911_v10 }
 0x268   : > { %3405 = vmatmul.msk.bf16.gmra.mxu1 %vm374_vm1, %v2942_v11  ;;  %v2898_v16 = vmul.f32 %v5062_v17, %v2882_v49  ;;  %v3488_v11 = vunpack.c.l.bf16 %v3537_v57 }
 0x269   : > { %v1946_v9 = vadd.f32 %v3480_v8, %v1930_v35 }
 0x26a   : > { %v2914_v27 = vadd.f32 %v5072_v24, %v2898_v16 }
 0x26b   : > { %v1962_v15 = vmax.f32 %v1946_v9, 0.0  ;;  %v2490_v19 = vpop.f32.mrf.mxu2 }
 0x26c   : > { %v2564_v18 = vadd.f32 %v2563_v46, %v2490_v19  ;;  %v1844_v22 = vpop.f32.mrf.mxu1  ;;  %v2568_v25 = vpop.f32.mrf.mxu3  ;;  %v2930_v34 = vmax.f32 %v2914_v27, 0.0 }
 0x26d   : > { %v1978_v23 = vpack.c.bf16 %v1962_v15, %v1962_v15  ;;  %v1912_v50 = vmul.f32 %v5011_v45, %v1844_v22  ;;  %v2853_v14 = vpop.f32.mrf.mxu0 }
 0x26e   : > { %v2883_v21 = vadd.f32 %v2853_v14, %v2564_v18 }
 0x26f   : > { %1995 = vst.msk [vmem:[%s5030_s30 + $0x10] sm:$0xf] %vm1990_vm8, %v1978_v23  ;;  %v1931_v51 = vadd.f32 %v5018_v55, %v1912_v50 }
 0x270   : > { %v2899_v13 = vmul.f32 %v5062_v17, %v2883_v21 }
 0x271   : > { %v1947_v30 = vadd.f32 %v3481_v20, %v1931_v51 }
 0x272   : > { %v2915_v29 = vadd.f32 %v5072_v24, %v2899_v13 }
 0x273   : > { %v1963_v26 = vmax.f32 %v1947_v30, 0.0  ;;  %v2493_v33 = vpop.f32.mrf.mxu2 }
 0x274   : > { %v2931_v36 = vmax.f32 %v2915_v29, 0.0  ;;  %v2567_v32 = vadd.f32 %v2566_v3, %v2493_v33  ;;  %v1847_v37 = vpop.f32.mrf.mxu1  ;;  %v2571_v44 = vpop.f32.mrf.mxu3 }
 0x275   : > { %v1979_v39 = vpack.c.bf16 %v1963_v26, %v1963_v26  ;;  %v1913_v38 = vmul.f32 %v5011_v45, %v1847_v37  ;;  %v2856_v40 = vpop.f32.mrf.mxu0 }
 0x276   : > { %v2943_v41 = vpack.c.bf16 %v2931_v36, %v2930_v34  ;;  %v2884_v63 = vadd.f32 %v2856_v40, %v2567_v32  ;;  %v3538_v34 = vld [vmem:[%s4263_s11 + $0x28] sm:$0xff]  }
 0x277   : > { %1996 = vst.msk [vmem:[%s5030_s30 + $0x14] sm:$0xf] %vm1990_vm8, %v1979_v39  ;;  %v1932_v61 = vadd.f32 %v5018_v55, %v1913_v38 }
 0x278   : > { %3406 = vmatmul.msk.bf16.gmra.mxu1 %vm374_vm1, %v2943_v41  ;;  %v2900_v52 = vmul.f32 %v5062_v17, %v2884_v63  ;;  %v3492_v41 = vunpack.c.l.bf16 %v3538_v34 }
 0x279   : > { %v1948_v42 = vadd.f32 %v3484_v6, %v1932_v61 }
 0x27a   : > { %v2916_v0 = vadd.f32 %v5072_v24, %v2900_v52 }
 0x27b   : > { %v1964_v46 = vmax.f32 %v1948_v42, 0.0  ;;  %v2495_v47 = vpop.f32.mrf.mxu2 }
 0x27c   : > { %v2569_v53 = vadd.f32 %v2568_v25, %v2495_v47  ;;  %v1849_v43 = vpop.f32.mrf.mxu1  ;;  %v2573_v2 = vpop.f32.mrf.mxu3  ;;  %v2932_v7 = vmax.f32 %v2916_v0, 0.0  ;;  %v3489_v25 = vunpack.c.h.bf16 %v3537_v57 }
 0x27d   : > { %v1980_v54 = vpack.c.bf16 %v1964_v46, %v1964_v46  ;;  %v1914_v59 = vmul.f32 %v5011_v45, %v1849_v43  ;;  %v2858_v62 = vpop.f32.mrf.mxu0 }
 0x27e   : > { %v2885_v60 = vadd.f32 %v2858_v62, %v2569_v53 }
 0x27f   : > { %1997 = vst.msk [vmem:[%s5030_s30 + $0x18] sm:$0xf] %vm1990_vm8, %v1980_v54  ;;  %v1933_v56 = vadd.f32 %v5018_v55, %v1914_v59 }
 0x280   : > { %v2901_v48 = vmul.f32 %v5062_v17, %v2885_v60  ;;  %v3493_v60 = vunpack.c.h.bf16 %v3538_v34 }
 0x281   : > { %v1949_v12 = vadd.f32 %v3485_v58, %v1933_v56 }
 0x282   : > { %v2917_v1 = vadd.f32 %v5072_v24, %v2901_v48 }
 0x283   : > { %v1965_v4 = vmax.f32 %v1949_v12, 0.0  ;;  %v2498_v5 = vpop.f32.mrf.mxu2 }
 0x284   : > { %v2933_v3 = vmax.f32 %v2917_v1, 0.0  ;;  %v2572_v8 = vadd.f32 %v2571_v44, %v2498_v5  ;;  %v1852_v10 = vpop.f32.mrf.mxu1  ;;  %v2576_v14 = vpop.f32.mrf.mxu3 }
 0x285   : > { %v1981_v28 = vpack.c.bf16 %v1965_v4, %v1965_v4  ;;  %v1915_v35 = vmul.f32 %v5011_v45, %v1852_v10  ;;  %v2861_v49 = vpop.f32.mrf.mxu0 }
 0x286   : > { %v2944_v9 = vpack.c.bf16 %v2933_v3, %v2932_v7  ;;  %v2886_v19 = vadd.f32 %v2861_v49, %v2572_v8  ;;  %v3539_v7 = vld [vmem:[%s4263_s11 + $0x30] sm:$0xff]  }
 0x287   : > { %1998 = vst.msk [vmem:[%s5030_s30 + $0x1c] sm:$0xf] %vm1990_vm8, %v1981_v28  ;;  %v1934_v15 = vadd.f32 %v5018_v55, %v1915_v35 }
 0x288   : > { %3407 = vmatmul.msk.bf16.gmra.mxu1 %vm374_vm1, %v2944_v9  ;;  %v2902_v23 = vmul.f32 %v5062_v17, %v2886_v19  ;;  %v3496_v9 = vunpack.c.l.bf16 %v3539_v7 }
 0x289   : > { %v1950_v16 = vadd.f32 %v3488_v11, %v1934_v15 }
 0x28a   : > { %v2918_v29 = vadd.f32 %v5072_v24, %v2902_v23 }
 0x28b   : > { %v1966_v18 = vmax.f32 %v1950_v16, 0.0  ;;  %v2500_v22 = vpop.f32.mrf.mxu2 }
 0x28c   : > { %v2574_v20 = vadd.f32 %v2573_v2, %v2500_v22  ;;  %v1854_v50 = vpop.f32.mrf.mxu1  ;;  %v2934_v37 = vmax.f32 %v2918_v29, 0.0  ;;  %v2578_v42 = vpop.f32.mrf.mxu3 }
 0x28d   : > { %v1982_v21 = vpack.c.bf16 %v1966_v18, %v1966_v18  ;;  %v1916_v51 = vmul.f32 %v5011_v45, %v1854_v50  ;;  %v2863_v27 = vpop.f32.mrf.mxu0 }
 0x28e   : > { %v2887_v13 = vadd.f32 %v2863_v27, %v2574_v20 }
 0x28f   : > { %1999 = vst.msk [vmem:[%s5030_s30 + $0x20] sm:$0xf] %vm1990_vm8, %v1982_v21  ;;  %v1935_v30 = vadd.f32 %v5018_v55, %v1916_v51 }
 0x290   : > { %v2903_v31 = vmul.f32 %v5062_v17, %v2887_v13  ;;  %v3497_v13 = vunpack.c.h.bf16 %v3539_v7 }
 0x291   : > { %v1951_v26 = vadd.f32 %v3489_v25, %v1935_v30 }
 0x292   : > { %v2919_v33 = vadd.f32 %v5072_v24, %v2903_v31 }
 0x293   : > { %v1967_v36 = vmax.f32 %v1951_v26, 0.0  ;;  %v2503_v32 = vpop.f32.mrf.mxu2 }
 0x294   : > { %v2935_v39 = vmax.f32 %v2919_v33, 0.0  ;;  %v2577_v6 = vadd.f32 %v2576_v14, %v2503_v32  ;;  %v1857_v38 = vpop.f32.mrf.mxu1  ;;  %v2581_v2 = vpop.f32.mrf.mxu3 }
 0x295   : > { %v1983_v40 = vpack.c.bf16 %v1967_v36, %v1967_v36  ;;  %v1917_v61 = vmul.f32 %v5011_v45, %v1857_v38  ;;  %v2866_v63 = vpop.f32.mrf.mxu0 }
 0x296   : > { %v2945_v44 = vpack.c.bf16 %v2935_v39, %v2934_v37  ;;  %v2888_v47 = vadd.f32 %v2866_v63, %v2577_v6  ;;  %v3540_v37 = vld [vmem:[%s4263_s11 + $0x38] sm:$0xff]  }
 0x297   : > { %2000 = vst.msk [vmem:[%s5030_s30 + $0x24] sm:$0xf] %vm1990_vm8, %v1983_v40  ;;  %v1936_v46 = vadd.f32 %v5018_v55, %v1917_v61  ;;  %v3500_v61 = vunpack.c.l.bf16 %v3540_v37 }
 0x298   : > { %3408 = vmatmul.msk.bf16.gmra.mxu1 %vm374_vm1, %v2945_v44  ;;  %v2904_v54 = vmul.f32 %v5062_v17, %v2888_v47 }
 0x299   : > { %v1952_v52 = vadd.f32 %v3492_v41, %v1936_v46 }
 0x29a   : > { %v2920_v1 = vadd.f32 %v5072_v24, %v2904_v54 }
 0x29b   : > { %v1968_v53 = vmax.f32 %v1952_v52, 0.0  ;;  %v2505_v43 = vpop.f32.mrf.mxu2  ;;  %v3501_v52 = vunpack.c.h.bf16 %v3540_v37 }
 0x29c   : > { %v2579_v58 = vadd.f32 %v2578_v42, %v2505_v43  ;;  %v1859_v59 = vpop.f32.mrf.mxu1  ;;  %v2936_v10 = vmax.f32 %v2920_v1, 0.0  ;;  %v2583_v20 = vpop.f32.mrf.mxu3 }
 0x29d   : > { %v1984_v62 = vpack.c.bf16 %v1968_v53, %v1968_v53  ;;  %v1918_v56 = vmul.f32 %v5011_v45, %v1859_v59  ;;  %v2868_v0 = vpop.f32.mrf.mxu0 }
 0x29e   : > { %v2889_v48 = vadd.f32 %v2868_v0, %v2579_v58  ;;  %v3541_v58 = vld [vmem:[%s4263_s11 + $0x40] sm:$0xff]  }
 0x29f   : > { %2001 = vst.msk [vmem:[%s5030_s30 + $0x28] sm:$0xf] %vm1990_vm8, %v1984_v62  ;;  %v1937_v12 = vadd.f32 %v5018_v55, %v1918_v56  ;;  %v3504_v56 = vunpack.c.l.bf16 %v3541_v58 }
 0x2a0   : > { %v2905_v57 = vmul.f32 %v5062_v17, %v2889_v48 }
 0x2a1   : > { %v1953_v4 = vadd.f32 %v3493_v60, %v1937_v12 }
 0x2a2   : > { %v2921_v5 = vadd.f32 %v5072_v24, %v2905_v57 }
 0x2a3   : > { %v1969_v3 = vmax.f32 %v1953_v4, 0.0  ;;  %v2508_v8 = vpop.f32.mrf.mxu2  ;;  %v3505_v4 = vunpack.c.h.bf16 %v3541_v58 }
 0x2a4   : > { %v2937_v28 = vmax.f32 %v2921_v5, 0.0  ;;  %v2582_v11 = vadd.f32 %v2581_v2, %v2508_v8  ;;  %v1862_v35 = vpop.f32.mrf.mxu1 }
 0x2a5   : > { %v1985_v49 = vpack.c.bf16 %v1969_v3, %v1969_v3  ;;  %v1919_v15 = vmul.f32 %v5011_v45, %v1862_v35  ;;  %v2871_v19 = vpop.f32.mrf.mxu0 }
 0x2a6   : > { %v2946_v16 = vpack.c.bf16 %v2937_v28, %v2936_v10  ;;  %v2890_v22 = vadd.f32 %v2871_v19, %v2582_v11  ;;  %v3542_v10 = vld [vmem:[%s4263_s11 + $0x48] sm:$0xff]  }
 0x2a7   : > { %2002 = vst.msk [vmem:[%s5030_s30 + $0x2c] sm:$0xf] %vm1990_vm8, %v1985_v49  ;;  %v1938_v18 = vadd.f32 %v5018_v55, %v1919_v15  ;;  %v3508_v35 = vunpack.c.l.bf16 %v3542_v10 }
 0x2a8   : > { %3409 = vmatmul.msk.bf16.gmra.mxu1 %vm374_vm1, %v2946_v16  ;;  %v2906_v21 = vmul.f32 %v5062_v17, %v2890_v22  ;;  %v3509_v22 = vunpack.c.h.bf16 %v3542_v10 }
 0x2a9   : > { %v1954_v23 = vadd.f32 %v3496_v9, %v1938_v18 }
 0x2aa   : > { %v2922_v33 = vadd.f32 %v5072_v24, %v2906_v21 }
 0x2ab   : > { %v1970_v50 = vmax.f32 %v1954_v23, 0.0  ;;  %v2510_v14 = vpop.f32.mrf.mxu2 }
 0x2ac   : > { %v2584_v25 = vadd.f32 %v2583_v20, %v2510_v14  ;;  %v1864_v51 = vpop.f32.mrf.mxu1  ;;  %v2938_v6 = vmax.f32 %v2922_v33, 0.0  ;;  %v3543_v14 = vld [vmem:[%s4263_s11 + $0x50] sm:$0xff]  }
 0x2ad   : > { %v1986_v27 = vpack.c.bf16 %v1970_v50, %v1970_v50  ;;  %v1920_v30 = vmul.f32 %v5011_v45, %v1864_v51  ;;  %v2873_v29 = vpop.f32.mrf.mxu0 }
 0x2ae   : > { %v2891_v31 = vadd.f32 %v2873_v29, %v2584_v25 }
 0x2af   : > { %2003 = vst.msk [vmem:[%s5030_s30 + $0x30] sm:$0xf] %vm1990_vm8, %v1986_v27  ;;  %v1939_v26 = vadd.f32 %v5018_v55, %v1920_v30  ;;  %v3512_v27 = vunpack.c.l.bf16 %v3543_v14 }
 0x2b0   : > { %v2907_v34 = vmul.f32 %v5062_v17, %v2891_v31 }
 0x2b1   : > { %v1955_v36 = vadd.f32 %v3497_v13, %v1939_v26 }
 0x2b2   : > { %v2923_v32 = vadd.f32 %v5072_v24, %v2907_v34  ;;  %v3513_v34 = vunpack.c.h.bf16 %v3543_v14 }
 0x2b3   : > { %v1971_v39 = vmax.f32 %v1955_v36, 0.0 }
 0x2b4   : > { %v2939_v38 = vmax.f32 %v2923_v32, 0.0  ;;  %v1867_v40 = vpop.f32.mrf.mxu1 }
 0x2b5   : > { %v1987_v41 = vpack.c.bf16 %v1971_v39, %v1971_v39  ;;  %v1921_v63 = vmul.f32 %v5011_v45, %v1867_v40  ;;  %v3544_v39 = vld [vmem:[%s4263_s11 + $0x58] sm:$0xff]  }
 0x2b6   : > { %v2947_v44 = vpack.c.bf16 %v2939_v38, %v2938_v6 }
 0x2b7   : > { %2004 = vst.msk [vmem:[%s5030_s30 + $0x34] sm:$0xf] %vm1990_vm8, %v1987_v41  ;;  %v1940_v42 = vadd.f32 %v5018_v55, %v1921_v63  ;;  %v3516_v41 = vunpack.c.l.bf16 %v3544_v39 }
 0x2b8   : > { %3410 = vmatmul.msk.bf16.gmra.mxu1 %vm374_vm1, %v2947_v44 }
 0x2b9   : > { %v1956_v17 = vadd.f32 %v3500_v61, %v1940_v42 }
 0x2bb   : > { %v1972_v24 = vmax.f32 %v1956_v17, 0.0 }
 0x2bc   : > { %v1869_v46 = vpop.f32.mrf.mxu1 }
 0x2bd   : > { %v1988_v47 = vpack.c.bf16 %v1972_v24, %v1972_v24  ;;  %v1922_v53 = vmul.f32 %v5011_v45, %v1869_v46  ;;  %v3517_v46 = vunpack.c.h.bf16 %v3544_v39 }
 0x2bf   : > { %2005 = vst.msk [vmem:[%s5030_s30 + $0x38] sm:$0xf] %vm1990_vm8, %v1988_v47  ;;  %v1941_v43 = vadd.f32 %v5018_v55, %v1922_v53 }
 0x2c1   : > { %v1957_v54 = vadd.f32 %v3501_v52, %v1941_v43  ;;  %v3545_v43 = vld [vmem:[%s4263_s11 + $0x60] sm:$0xff]  }
 0x2c3   : > { %v1973_v59 = vmax.f32 %v1957_v54, 0.0 }
 0x2c4   : > { %v2981_v62 = vpop.f32.mrf.mxu1 }
 0x2c5   : > { %v1989_v60 = vpack.c.bf16 %v1973_v59, %v1973_v59  ;;  %v3053_v0 = vmul.f32 %v5011_v45, %v2981_v62  ;;  %v3520_v62 = vunpack.c.l.bf16 %v3545_v43 }
 0x2c7   : > { %2006 = vst.msk [vmem:[%s5030_s30 + $0x3c] sm:$0xf] %vm1990_vm8, %v1989_v60  ;;  %v3069_v48 = vadd.f32 %v5018_v55, %v3053_v0 }
 0x2c9   : > { %v3085_v12 = vadd.f32 %v3504_v56, %v3069_v48 }
 0x2cb   : > { %v3101_v1 = vmax.f32 %v3085_v12, 0.0 }
 0x2cc   : > { %v2983_v57 = vpop.f32.mrf.mxu1 }
 0x2cd   : > { %v3117_v2 = vpack.c.bf16 %v3101_v1, %v3101_v1  ;;  %v3054_v5 = vmul.f32 %v5011_v45, %v2983_v57  ;;  %v3521_v57 = vunpack.c.h.bf16 %v3545_v43 }
 0x2cf   : > { %3427 = vst.msk [vmem:[%s5030_s30 + $0x40] sm:$0xf] %vm1990_vm8, %v3117_v2  ;;  %v3070_v7 = vadd.f32 %v5018_v55, %v3054_v5 }
 0x2d1   : > { %v3086_v3 = vadd.f32 %v3505_v4, %v3070_v7  ;;  %v3546_v7 = vld [vmem:[%s4263_s11 + $0x68] sm:$0xff]  }
 0x2d3   : > { %v3102_v8 = vmax.f32 %v3086_v3, 0.0 }
 0x2d5   : > { %v3118_v28 = vpack.c.bf16 %v3102_v8, %v3102_v8  ;;  %v2986_v11 = vpop.f32.mrf.mxu1 }
 0x2d6   : > { %v3055_v49 = vmul.f32 %v5011_v45, %v2986_v11 }
 0x2d7   : > { %3428 = vst.msk [vmem:[%s5030_s30 + $0x44] sm:$0xf] %vm1990_vm8, %v3118_v28  ;;  %v3524_v28 = vunpack.c.l.bf16 %v3546_v7 }
 0x2d8   : > { %v3071_v9 = vadd.f32 %v5018_v55, %v3055_v49 }
 0x2da   : > { %v3087_v15 = vadd.f32 %v3508_v35, %v3071_v9 }
 0x2dc   : > { %v3103_v19 = vmax.f32 %v3087_v15, 0.0 }
 0x2dd   : > { %v2988_v16 = vpop.f32.mrf.mxu1 }
 0x2de   : > { %v3119_v18 = vpack.c.bf16 %v3103_v19, %v3103_v19  ;;  %v3056_v23 = vmul.f32 %v5011_v45, %v2988_v16  ;;  %v3525_v16 = vunpack.c.h.bf16 %v3546_v7 }
 0x2e0   : > { %3429 = vst.msk [vmem:[%s5030_s30 + $0x48] sm:$0xf] %vm1990_vm8, %v3119_v18  ;;  %v3072_v20 = vadd.f32 %v5018_v55, %v3056_v23 }
 0x2e2   : > { %v3088_v50 = vadd.f32 %v3509_v22, %v3072_v20  ;;  %v3547_v20 = vld [vmem:[%s4263_s11 + $0x70] sm:$0xff]  }
 0x2e4   : > { %v3104_v21 = vmax.f32 %v3088_v50, 0.0 }
 0x2e5   : > { %v2991_v25 = vpop.f32.mrf.mxu1 }
 0x2e6   : > { %v3120_v51 = vpack.c.bf16 %v3104_v21, %v3104_v21  ;;  %v3057_v13 = vmul.f32 %v5011_v45, %v2991_v25  ;;  %v3528_v25 = vunpack.c.l.bf16 %v3547_v20 }
 0x2e8   : > { %3430 = vst.msk [vmem:[%s5030_s30 + $0x4c] sm:$0xf] %vm1990_vm8, %v3120_v51  ;;  %v3073_v30 = vadd.f32 %v5018_v55, %v3057_v13 }
 0x2ea   : > { %v3089_v29 = vadd.f32 %v3512_v27, %v3073_v30 }
 0x2ec   : > { %v3105_v31 = vmax.f32 %v3089_v29, 0.0 }
 0x2ed   : > { %v2993_v26 = vpop.f32.mrf.mxu1 }
 0x2ee   : > { %v3121_v33 = vpack.c.bf16 %v3105_v31, %v3105_v31  ;;  %v3058_v36 = vmul.f32 %v5011_v45, %v2993_v26  ;;  %v3529_v26 = vunpack.c.h.bf16 %v3547_v20 }
 0x2f0   : > { %3431 = vst.msk [vmem:[%s5030_s30 + $0x50] sm:$0xf] %vm1990_vm8, %v3121_v33  ;;  %v3074_v32 = vadd.f32 %v5018_v55, %v3058_v36 }
 0x2f2   : > { %v3090_v37 = vadd.f32 %v3513_v34, %v3074_v32  ;;  %v3548_v32 = vld [vmem:[%s4263_s11 + $0x78] sm:$0xff]  }
 0x2f4   : > { %v3106_v6 = vmax.f32 %v3090_v37, 0.0 }
 0x2f5   : > { %v2996_v38 = vpop.f32.mrf.mxu1 }
 0x2f6   : > { %v3122_v40 = vpack.c.bf16 %v3106_v6, %v3106_v6  ;;  %v3059_v61 = vmul.f32 %v5011_v45, %v2996_v38  ;;  %v3532_v38 = vunpack.c.l.bf16 %v3548_v32 }
 0x2f8   : > { %3432 = vst.msk [vmem:[%s5030_s30 + $0x54] sm:$0xf] %vm1990_vm8, %v3122_v40  ;;  %v3075_v63 = vadd.f32 %v5018_v55, %v3059_v61 }
 0x2fa   : > { %v3091_v44 = vadd.f32 %v3516_v41, %v3075_v63 }
 0x2fc   : > { %v3107_v42 = vmax.f32 %v3091_v44, 0.0 }
 0x2fd   : > { %v2998_v17 = vpop.f32.mrf.mxu1 }
 0x2fe   : > { %v3123_v24 = vpack.c.bf16 %v3107_v42, %v3107_v42  ;;  %v3060_v47 = vmul.f32 %v5011_v45, %v2998_v17  ;;  %v3533_v17 = vunpack.c.h.bf16 %v3548_v32 }
 0x300   : > { %3433 = vst.msk [vmem:[%s5030_s30 + $0x58] sm:$0xf] %vm1990_vm8, %v3123_v24  ;;  %v3076_v52 = vadd.f32 %v5018_v55, %v3060_v47 }
 0x302   : > { %v3092_v53 = vadd.f32 %v3517_v46, %v3076_v52 }
 0x304   : > { %v3108_v54 = vmax.f32 %v3092_v53, 0.0 }
 0x305   : > { %v3001_v58 = vpop.f32.mrf.mxu1 }
 0x306   : > { %v3124_v59 = vpack.c.bf16 %v3108_v54, %v3108_v54  ;;  %v3061_v60 = vmul.f32 %v5011_v45, %v3001_v58 }
 0x308   : > { %3434 = vst.msk [vmem:[%s5030_s30 + $0x5c] sm:$0xf] %vm1990_vm8, %v3124_v59  ;;  %v3077_v56 = vadd.f32 %v5018_v55, %v3061_v60 }
 0x30a   : > { %v3093_v0 = vadd.f32 %v3520_v62, %v3077_v56 }
 0x30c   : > { %v3109_v48 = vmax.f32 %v3093_v0, 0.0 }
 0x30d   : > { %v3003_v12 = vpop.f32.mrf.mxu1 }
 0x30e   : > { %v3125_v1 = vpack.c.bf16 %v3109_v48, %v3109_v48  ;;  %v3062_v2 = vmul.f32 %v5011_v45, %v3003_v12 }
 0x310   : > { %3435 = vst.msk [vmem:[%s5030_s30 + $0x60] sm:$0xf] %vm1990_vm8, %v3125_v1  ;;  %v3078_v4 = vadd.f32 %v5018_v55, %v3062_v2 }
 0x312   : > { %v3094_v5 = vadd.f32 %v3521_v57, %v3078_v4 }
 0x314   : > { %v3110_v3 = vmax.f32 %v3094_v5, 0.0 }
 0x315   : > { %v3006_v8 = vpop.f32.mrf.mxu1 }
 0x316   : > { %v3126_v10 = vpack.c.bf16 %v3110_v3, %v3110_v3  ;;  %v3063_v11 = vmul.f32 %v5011_v45, %v3006_v8 }
 0x318   : > { %3436 = vst.msk [vmem:[%s5030_s30 + $0x64] sm:$0xf] %vm1990_vm8, %v3126_v10  ;;  %v3079_v35 = vadd.f32 %v5018_v55, %v3063_v11 }
 0x31a   : > { %v3095_v49 = vadd.f32 %v3524_v28, %v3079_v35 }
 0x31c   : > { %v3111_v9 = vmax.f32 %v3095_v49, 0.0 }
 0x31d   : > { %v3008_v15 = vpop.f32.mrf.mxu1 }
 0x31e   : > { %v3127_v19 = vpack.c.bf16 %v3111_v9, %v3111_v9  ;;  %v3064_v18 = vmul.f32 %v5011_v45, %v3008_v15 }
 0x320   : > { %3437 = vst.msk [vmem:[%s5030_s30 + $0x68] sm:$0xf] %vm1990_vm8, %v3127_v19  ;;  %v3080_v22 = vadd.f32 %v5018_v55, %v3064_v18 }
 0x322   : > { %v3096_v23 = vadd.f32 %v3525_v16, %v3080_v22 }
 0x324   : > { %v3112_v50 = vmax.f32 %v3096_v23, 0.0 }
 0x325   : > { %v3011_v14 = vpop.f32.mrf.mxu1 }
 0x326   : > { %v3128_v21 = vpack.c.bf16 %v3112_v50, %v3112_v50  ;;  %v3065_v51 = vmul.f32 %v5011_v45, %v3011_v14 }
 0x328   : > { %3438 = vst.msk [vmem:[%s5030_s30 + $0x6c] sm:$0xf] %vm1990_vm8, %v3128_v21  ;;  %v3081_v27 = vadd.f32 %v5018_v55, %v3065_v51 }
 0x32a   : > { %v3097_v13 = vadd.f32 %v3528_v25, %v3081_v27 }
 0x32c   : > { %v3113_v30 = vmax.f32 %v3097_v13, 0.0 }
 0x32d   : > { %v3013_v29 = vpop.f32.mrf.mxu1 }
 0x32e   : > { %v3129_v31 = vpack.c.bf16 %v3113_v30, %v3113_v30  ;;  %v3066_v33 = vmul.f32 %v5011_v45, %v3013_v29 }
 0x330   : > { %3439 = vst.msk [vmem:[%s5030_s30 + $0x70] sm:$0xf] %vm1990_vm8, %v3129_v31  ;;  %v3082_v34 = vadd.f32 %v5018_v55, %v3066_v33 }
 0x332   : > { %v3098_v36 = vadd.f32 %v3529_v26, %v3082_v34 }
 0x334   : > { %v3114_v37 = vmax.f32 %v3098_v36, 0.0 }
 0x335   : > { %v3016_v39 = vpop.f32.mrf.mxu1 }
 0x336   : > { %v3130_v6 = vpack.c.bf16 %v3114_v37, %v3114_v37  ;;  %v3067_v40 = vmul.f32 %v5011_v45, %v3016_v39 }
 0x338   : > { %3440 = vst.msk [vmem:[%s5030_s30 + $0x74] sm:$0xf] %vm1990_vm8, %v3130_v6  ;;  %v3083_v41 = vadd.f32 %v5018_v55, %v3067_v40 }
 0x33a   : > { %v3099_v61 = vadd.f32 %v3532_v38, %v3083_v41 }
 0x33c   : > { %v3115_v63 = vmax.f32 %v3099_v61, 0.0 }
 0x33d   : > { %v3018_v44 = vpop.f32.mrf.mxu1 }
 0x33e   : > { %v3131_v42 = vpack.c.bf16 %v3115_v63, %v3115_v63  ;;  %v3068_v24 = vmul.f32 %v5011_v45, %v3018_v44 }
 0x340   : > { %3441 = vst.msk [vmem:[%s5030_s30 + $0x78] sm:$0xf] %vm1990_vm8, %v3131_v42  ;;  %v3084_v46 = vadd.f32 %v5018_v55, %v3068_v24 }
 0x342   : > { %v3100_v47 = vadd.f32 %v3533_v17, %v3084_v46 }
 0x344   : > { %v3116_v52 = vmax.f32 %v3100_v47, 0.0 }
 0x346   : > { %v3132_v53 = vpack.c.bf16 %v3116_v52, %v3116_v52 }
 0x348   : > { %3442 = vst.msk [vmem:[%s5030_s30 + $0x7c] sm:$0xf] %vm1990_vm8, %v3132_v53 }
 0x349   : > { %4111 = shalt.err (!%p4108_p3)
}
 0x34a   : > { %s4151_s28 = smov 64   ;;  %s5266_s30 = smov 4  }
 0x34b   : > { %3551 = dma.vmem_to_hbm [thread:$0]  (%p4245_p5), %s3164_s20, 2048, %s3166_s21, %s3151_s17, %s4151_s28, %s4151_s28, %s5266_s30  }
 0x34c PF: > { %p3557_p4 = scmp.ge.s32.totalorder %s4146_s16, 2  ;;  %s3180_s11 = sand.u32 1, %s4134_s13  }
 0x34d   : > { %s3181_s12 = scalar_lea.sflag [#allocation4], %s3180_s11 }
 0x34e   : > { %p3554_p7 = pnand %p3557_p4, %p4249_p6 }
 0x350   : > { %p3555_p8 = pneg %p3554_p7 }
 0x352   : > { %4129 = dma.done.wait (%p3555_p8), %s3181_s12, 2048  }
 0x353   : > { %4131 = vsyncadd (%p3555_p8), %s3181_s12, 4294965248  ;;  %p20_p9 = scmp.ge.s32.totalorder %s4232_s19, 4   ;;  %s5267_s13 = smov %s4138_s14 }
 0x354   : > { %s5268_s14 = smov %s4142_s15  ;;  %s5269_s15 = smov %s4243_s22 }
 0x355   : > { %s5270_s16 = smov %s4232_s19  ;;  %22 = sbr.rel (!%p20_p9) target bundleno = 3 (0x3), region = 103 }
 0x35a   :  { %3187 = vsyncpa [#allocation4], 1 }
 0x35b   :  { %3189 = vsyncpa [#allocation4 + $0x1], 1 }

</bundles_post_ra>
